<compile_context>
chip_gen: v7x
topology: tpu7x:2x2x1
jax: 0.10.0
libtpu: 0.0.40
codegen_flags: <defaults>
</compile_context>

<pallas_src>
import numpy as np
import jax
import jax.numpy as jnp
from jax.experimental import pallas as pl
from jax.experimental.pallas import tpu as pltpu


# ----------------------------------------------------------------------------
# Parameter helpers (plain JAX glue)
# ----------------------------------------------------------------------------
def fold_bn_into_conv(w, b, gamma, beta, mean, var, eps=1e-5):
    """Fold inference-mode BatchNorm into a conv (PyTorch OIDHW weight layout)."""
    scale = gamma / jnp.sqrt(var + eps)
    w_f = w * scale.reshape((-1,) + (1,) * (w.ndim - 1))
    b_f = (b - mean) * scale + beta
    return w_f, b_f


def to_matmul_weight_1x1(w):
    """(Cout, Cin, 1, 1, 1) PyTorch conv weight -> (Cin, Cout) matmul weight."""
    return jnp.transpose(w.reshape(w.shape[0], w.shape[1]), (1, 0))


def _pick_tm(M, row_bytes, budget_bytes=12 * 1024 * 1024, cap=4096):
    """Row-tile: large (amortize per-step overhead), multiple of 8, within a
    double-buffered VMEM budget, and >= 2 grid steps when M allows so both
    v7x TensorCores get work."""
    tm = min(cap, max(256, budget_bytes // max(1, 2 * row_bytes)))
    tm = max(8, (tm // 8) * 8)
    if tm >= M:
        half = -(-M // 2)                      # ceil(M/2)
        half = ((half + 7) // 8) * 8
        tm = half if half < M else M
    return tm


_VMEM_SMALL = 32 * 1024 * 1024
_VMEM_CONV2 = 48 * 1024 * 1024


# ----------------------------------------------------------------------------
# conv1: 1x1x1 conv (+ folded BN) + ReLU as one big flat matmul
# ----------------------------------------------------------------------------
def pointwise_conv_bn_relu(x_flat, w, b):
    """relu((M, Ci) @ (Ci, Co) + b).  bf16 operands, f32 accumulation/epilogue."""
    M, Ci = x_flat.shape
    Co = w.shape[1]
    row_bytes = (Ci + Co) * x_flat.dtype.itemsize
    tm = _pick_tm(M, row_bytes)

    def kernel(x_ref, w_ref, b_ref, o_ref):
        y = jnp.dot(x_ref[...], w_ref[...], preferred_element_type=jnp.float32)
        o_ref[...] = jnp.maximum(y + b_ref[...], 0.0).astype(o_ref.dtype)

    return pl.pallas_call(
        kernel,
        out_shape=jax.ShapeDtypeStruct((M, Co), x_flat.dtype),
        grid=(pl.cdiv(M, tm),),
        in_specs=[
            pl.BlockSpec((tm, Ci), lambda i: (i, 0)),
            pl.BlockSpec((Ci, Co), lambda i: (0, 0)),     # constant -> fetched once
            pl.BlockSpec((1, Co), lambda i: (0, 0)),
        ],
        out_specs=pl.BlockSpec((tm, Co), lambda i: (i, 0)),
        compiler_params=pltpu.CompilerParams(
            dimension_semantics=("parallel",),
            vmem_limit_bytes=_VMEM_SMALL),
    )(x_flat, w, b)


# ----------------------------------------------------------------------------
# conv2: 3x3x3 conv, stride 1, padding 1 (+ folded BN + ReLU)
# ----------------------------------------------------------------------------
def conv3x3x3_bn_relu(xp, w, b, *, D, H, W):
    """xp: (N, D+2, Lp, Ci) zero-padded channels-last planes, Lp = (H+3)*(W+2).
    w:  (3, 3, 3, Ci, Co) bf16;  b: (1, Co) f32.
    Returns (N, D, HWQ, Co) with HWQ = H*(W+2).  Columns w in [W, W+2) of each
    H-row are junk; they are dropped by the fused tail (never re-written to HBM).

    Each per-sample padded volume is DMA'd from HBM exactly once (constant index
    across the d axis), the 27 taps accumulate in an SSA f32 value, and the whole
    weight is loaded once.  Each in-plane tap is a contiguous window of the
    flattened (Hpad*Wpad) axis, so no strided-slice gathers of the activations."""
    N, Dp, Lp, Ci = xp.shape
    Co = w.shape[-1]
    Wp = W + 2
    HWQ = H * Wp
    assert Dp == D + 2 and Lp == (H + 3) * Wp

    def kernel(x_ref, w_ref, b_ref, o_ref):
        d = pl.program_id(1)
        acc = jnp.zeros((HWQ, Co), jnp.float32)       # SSA accumulator (registers)
        for kd in range(3):
            for kh in range(3):
                for kw in range(3):
                    off = kh * Wp + kw                # contiguous in-plane window
                    xs = x_ref[0, d + kd, off:off + HWQ, :]
                    acc = acc + jnp.dot(xs, w_ref[kd, kh, kw],
                                        preferred_element_type=jnp.float32)
        y = jnp.maximum(acc + b_ref[...], 0.0)
        o_ref[0, 0] = y.astype(o_ref.dtype)           # single full-block store

    return pl.pallas_call(
        kernel,
        out_shape=jax.ShapeDtypeStruct((N, D, HWQ, Co), xp.dtype),
        grid=(N, D),
        in_specs=[
            # whole padded per-sample volume; index constant across d -> DMA'd once/n
            pl.BlockSpec((1, D + 2, Lp, Ci), lambda n, d: (n, 0, 0, 0)),
            # full 3x3x3 weight, constant index -> fetched once total
            pl.BlockSpec((3, 3, 3, Ci, Co), lambda n, d: (0, 0, 0, 0, 0)),
            pl.BlockSpec((1, Co), lambda n, d: (0, 0)),
        ],
        out_specs=pl.BlockSpec((1, 1, HWQ, Co), lambda n, d: (n, d, 0, 0)),
        compiler_params=pltpu.CompilerParams(
            dimension_semantics=("parallel", "parallel"),
            vmem_limit_bytes=_VMEM_CONV2),
    )(xp, w, b)


# ----------------------------------------------------------------------------
# tail: conv3 (1x1x1 + folded BN) + shortcut + residual add + final ReLU, fused,
#        consuming the padded-row conv2 output directly (no strip pass).
# ----------------------------------------------------------------------------
def tail_fused(h2q, w3, b3, shortcut, ws=None, bs=None, *, H, W, out_dtype):
    """h2q:      (P, HWQ, Cm) conv2 output in padded-row layout, HWQ = H*(W+2).
    shortcut: (P, H*W, Ci).
      ws is None -> identity shortcut: out = relu(h2 @ w3 + b3 + shortcut),
                    shortcut kept in its ORIGINAL (f32) dtype for the add.
      ws given   -> projection:        out = relu(h2 @ w3 + b3 + shortcut @ ws + bs).
    Junk columns of h2q are dropped here via per-row f32 stores."""
    P, HWQ, Cm = h2q.shape
    Co = w3.shape[1]
    Ci = shortcut.shape[2]
    Wp = W + 2
    HW = H * W
    assert HWQ == H * Wp and shortcut.shape[1] == HW

    if ws is None:
        def kernel(h_ref, w3_ref, b3_ref, x_ref, o_ref):
            y = jnp.dot(h_ref[0], w3_ref[...], preferred_element_type=jnp.float32)
            y = y + b3_ref[...]                                   # (HWQ, Co) f32
            s = x_ref[0].astype(jnp.float32)                      # f32 skip add
            for h in range(H):                                    # drop junk cols
                row = y[h * Wp:h * Wp + W, :] + s[h * W:(h + 1) * W, :]
                o_ref[0, h * W:(h + 1) * W, :] = \
                    jnp.maximum(row, 0.0).astype(o_ref.dtype)
        operands = (h2q, w3, b3, shortcut)
        in_specs = [
            pl.BlockSpec((1, HWQ, Cm), lambda p: (p, 0, 0)),
            pl.BlockSpec((Cm, Co), lambda p: (0, 0)),
            pl.BlockSpec((1, Co), lambda p: (0, 0)),
            pl.BlockSpec((1, HW, Ci), lambda p: (p, 0, 0)),
        ]
    else:
        def kernel(h_ref, w3_ref, b3_ref, x_ref, ws_ref, bs_ref, o_ref):
            y = jnp.dot(h_ref[0], w3_ref[...], preferred_element_type=jnp.float32)
            y = y + b3_ref[...]
            s = jnp.dot(x_ref[0], ws_ref[...], preferred_element_type=jnp.float32)
            s = s + bs_ref[...]
            for h in range(H):
                row = y[h * Wp:h * Wp + W, :] + s[h * W:(h + 1) * W, :]
                o_ref[0, h * W:(h + 1) * W, :] = \
                    jnp.maximum(row, 0.0).astype(o_ref.dtype)
        operands = (h2q, w3, b3, shortcut, ws, bs)
        in_specs = [
            pl.BlockSpec((1, HWQ, Cm), lambda p: (p, 0, 0)),
            pl.BlockSpec((Cm, Co), lambda p: (0, 0)),
            pl.BlockSpec((1, Co), lambda p: (0, 0)),
            pl.BlockSpec((1, HW, Ci), lambda p: (p, 0, 0)),
            pl.BlockSpec((Ci, Co), lambda p: (0, 0)),
            pl.BlockSpec((1, Co), lambda p: (0, 0)),
        ]

    return pl.pallas_call(
        kernel,
        out_shape=jax.ShapeDtypeStruct((P, HW, Co), out_dtype),
        grid=(P,),
        in_specs=in_specs,
        out_specs=pl.BlockSpec((1, HW, Co), lambda p: (p, 0, 0)),
        compiler_params=pltpu.CompilerParams(
            dimension_semantics=("parallel",),
            vmem_limit_bytes=_VMEM_SMALL),
    )(*operands)


# ----------------------------------------------------------------------------
# ResidualUnit3d forward (Pallas-backed)
# ----------------------------------------------------------------------------
def residual_unit3d_forward(x, p, compute_dtype=jnp.bfloat16):
    """x: (N, Cin, D, H, W) NCDHW like PyTorch.  Returns (N, Cout, D, H, W)."""
    N, Ci, D, H, W = x.shape
    Cm = p["conv1_w"].shape[0]
    Co = p["conv3_w"].shape[0]
    out_dtype = x.dtype
    cd = compute_dtype        # bf16 MXU operands; f32 accumulation & epilogues

    # Fold inference-mode BatchNorm into the convs.
    w1, b1 = fold_bn_into_conv(p["conv1_w"], p["conv1_b"], *p["bn1"])
    w2, b2 = fold_bn_into_conv(p["conv2_w"], p["conv2_b"], *p["bn2"])
    w3, b3 = fold_bn_into_conv(p["conv3_w"], p["conv3_b"], *p["bn3"])

    # NCDHW -> channels-last
    x_cl = jnp.transpose(x, (0, 2, 3, 4, 1))              # (N, D, H, W, Ci) f32
    x_bf = x_cl.astype(cd)
    M = N * D * H * W
    HW = H * W
    Wp = W + 2
    Lp = (H + 3) * Wp

    # conv1 (1x1x1) + BN + ReLU: one flat matmul with a budget-derived row tile.
    h1 = pointwise_conv_bn_relu(
        x_bf.reshape(M, Ci),
        to_matmul_weight_1x1(w1).astype(cd),
        b1.reshape(1, -1).astype(jnp.float32))

    # Zero halo for conv2: depth (1,1), H (1,2), W (1,1).  The extra bottom H row
    # gives the flattened-window taps their slack.
    # TODO(synk): this pad is still one wrapper-side HBM pass over h1.
    h1_pad = jnp.pad(h1.reshape(N, D, H, W, Cm),
                     ((0, 0), (1, 1), (1, 2), (1, 1), (0, 0)))
    h1_pad = h1_pad.reshape(N, D + 2, Lp, Cm)

    # conv2 (3x3x3) + BN + ReLU: per-sample volume read once, register accumulation.
    h2q = conv3x3x3_bn_relu(
        h1_pad, jnp.transpose(w2, (2, 3, 4, 1, 0)).astype(cd),
        b2.reshape(1, -1).astype(jnp.float32), D=D, H=H, W=W)
    h2q = h2q.reshape(N * D, H * Wp, Cm)

    # conv3 (1x1x1) + BN + shortcut + add + ReLU, fused; consumes padded-row h2.
    if "convs_w" in p:
        ws, bs = fold_bn_into_conv(p["convs_w"], p["convs_b"], *p["bns"])
        out_flat = tail_fused(
            h2q, to_matmul_weight_1x1(w3).astype(cd),
            b3.reshape(1, -1).astype(jnp.float32),
            x_bf.reshape(N * D, HW, Ci),                        # projection matmul LHS
            to_matmul_weight_1x1(ws).astype(cd),
            bs.reshape(1, -1).astype(jnp.float32),
            H=H, W=W, out_dtype=out_dtype)
    else:
        # Identity shortcut: no eye matmul; add the original (f32) x in the epilogue.
        out_flat = tail_fused(
            h2q, to_matmul_weight_1x1(w3).astype(cd),
            b3.reshape(1, -1).astype(jnp.float32),
            x_cl.reshape(N * D, HW, Ci),                        # original dtype skip
            H=H, W=W, out_dtype=out_dtype)

    out = out_flat.reshape(N, D, H, W, Co)
    return jnp.transpose(out, (0, 4, 1, 2, 3))                  # back to NCDHW


# ----------------------------------------------------------------------------
# Pure-JAX reference (unfused f32, for correctness check)
# ----------------------------------------------------------------------------
def residual_unit3d_reference(x, p):
    def conv(x, w, b, pad):
        y = jax.lax.conv_general_dilated(
            x, w, (1, 1, 1), [(pad, pad)] * 3,
            dimension_numbers=("NCDHW", "OIDHW", "NCDHW"))
        return y + b.reshape(1, -1, 1, 1, 1)

    def bn(x, gamma, beta, mean, var, eps=1e-5):
        sh = (1, -1, 1, 1, 1)
        return (x - mean.reshape(sh)) * (gamma.reshape(sh) / jnp.sqrt(var.reshape(sh) + eps)) \
            + beta.reshape(sh)

    h = jax.nn.relu(bn(conv(x, p["conv1_w"], p["conv1_b"], 0), *p["bn1"]))
    h = jax.nn.relu(bn(conv(h, p["conv2_w"], p["conv2_b"], 1), *p["bn2"]))
    left = bn(conv(h, p["conv3_w"], p["conv3_b"], 0), *p["bn3"])
    if "convs_w" in p:
        sc = bn(conv(x, p["convs_w"], p["convs_b"], 0), *p["bns"])
    else:
        sc = x
    return jax.nn.relu(left + sc)


# ----------------------------------------------------------------------------
# Deterministic parameter construction + test
# ----------------------------------------------------------------------------
def make_params(key, inchannel, outchannel, reduction):
    mid = inchannel // reduction
    ks = jax.random.split(key, 8)

    def conv_p(k, cout, cin, ksize):
        kw, kb = jax.random.split(k)
        w = 0.1 * jax.random.normal(kw, (cout, cin, ksize, ksize, ksize), jnp.float32)
        b = 0.1 * jax.random.normal(kb, (cout,), jnp.float32)
        return w, b

    def bn_p(k, c):
        k1, k2, k3, k4 = jax.random.split(k, 4)
        gamma = 1.0 + 0.2 * jax.random.normal(k1, (c,), jnp.float32)
        beta = 0.1 * jax.random.normal(k2, (c,), jnp.float32)
        mean = 0.1 * jax.random.normal(k3, (c,), jnp.float32)
        var = 0.5 + jax.random.uniform(k4, (c,), jnp.float32)
        return (gamma, beta, mean, var)

    p = {}
    p["conv1_w"], p["conv1_b"] = conv_p(ks[0], mid, inchannel, 1)
    p["bn1"] = bn_p(ks[1], mid)
    p["conv2_w"], p["conv2_b"] = conv_p(ks[2], mid, mid, 3)
    p["bn2"] = bn_p(ks[3], mid)
    p["conv3_w"], p["conv3_b"] = conv_p(ks[4], outchannel, mid, 1)
    p["bn3"] = bn_p(ks[5], outchannel)
    if inchannel != outchannel:  # stride is always 1 in this module's usage
        p["convs_w"], p["convs_b"] = conv_p(ks[6], outchannel, inchannel, 1)
        p["bns"] = bn_p(ks[7], outchannel)
    return p


if __name__ == "__main__":
    key = jax.random.PRNGKey(0)
    k1, k2, k3, k4 = jax.random.split(key, 4)
    TOL = dict(atol=3e-2, rtol=3e-2)   # bf16 operands / f32 accumulation

    # Case 1: projection shortcut (inchannel != outchannel), even spatial dims.
    N, Ci, Co, red = 2, 4, 8, 2
    D = H = W = 8
    x = jax.random.normal(k1, (N, Ci, D, H, W), jnp.float32)
    p = make_params(k2, Ci, Co, red)
    out = jax.block_until_ready(jax.jit(residual_unit3d_forward)(x, p))
    ref = jax.block_until_ready(residual_unit3d_reference(x, p))
    assert out.shape == (N, Co, D, H, W)
    assert np.allclose(np.asarray(out), np.asarray(ref), **TOL), "projection mismatch"

    # Case 2: identity shortcut (inchannel == outchannel), odd/non-divisible sizes
    # (exercises partial last tiles in the flat conv1 matmul and odd W row pitch).
    Ci2 = Co2 = 8
    D2, H2, W2 = 7, 8, 5
    x2 = jax.random.normal(k3, (1, Ci2, D2, H2, W2), jnp.float32)
    p2 = make_params(k4, Ci2, Co2, red)
    out2 = jax.block_until_ready(jax.jit(residual_unit3d_forward)(x2, p2))
    ref2 = jax.block_until_ready(residual_unit3d_reference(x2, p2))
    assert out2.shape == (1, Co2, D2, H2, W2)
    assert np.allclose(np.asarray(out2), np.asarray(ref2), **TOL), "identity mismatch"

    print("KERNEL_OK")
</pallas_src>

<mosaic_0001>
module attributes {stable_mosaic.version = 11 : i64} {
  func.func @kernel(%arg0: i32, %arg1: memref<512x4xbf16, #tpu.memory_space<vmem>>, %arg2: memref<4x2xbf16, #tpu.memory_space<vmem>>, %arg3: memref<1x2xf32, #tpu.memory_space<vmem>>, %arg4: memref<512x2xbf16, #tpu.memory_space<vmem>>) attributes {dimension_semantics = [#tpu.dimension_semantics<parallel>], iteration_bounds = array<i64: 2>, scalar_prefetch = 0 : i64, scratch_operands = 0 : i64, tpu.core_type = #tpu.core_type<tc>, window_params = [{transform_indices = @transform_0, window_bounds = array<i64: 512, 4>}, {pipeline_mode = #tpu.pipeline_mode<synchronous>, transform_indices = @transform_1, window_bounds = array<i64: 4, 2>}, {pipeline_mode = #tpu.pipeline_mode<synchronous>, transform_indices = @transform_2, window_bounds = array<i64: 1, 2>}, {transform_indices = @transform_3, window_bounds = array<i64: 512, 2>}]} {
    %c0 = arith.constant 0 : index
    %c0_0 = arith.constant 0 : index
    %0 = vector.load %arg1[%c0, %c0_0] : memref<512x4xbf16, #tpu.memory_space<vmem>>, vector<512x4xbf16>
    %c0_1 = arith.constant 0 : index
    %c0_2 = arith.constant 0 : index
    %1 = vector.load %arg2[%c0_1, %c0_2] : memref<4x2xbf16, #tpu.memory_space<vmem>>, vector<4x2xbf16>
    %cst = arith.constant dense<0.000000e+00> : vector<512x2xf32>
    %2 = tpu.matmul %0, %1, %cst {dimension_numbers = #tpu.dot_dimension_numbers<[1], [0], [0], [1], [0, 0, 1, 1], [], []>} : vector<512x4xbf16>, vector<4x2xbf16>, vector<512x2xf32> -> vector<512x2xf32>
    %c0_3 = arith.constant 0 : index
    %c0_4 = arith.constant 0 : index
    %3 = vector.load %arg3[%c0_3, %c0_4] : memref<1x2xf32, #tpu.memory_space<vmem>>, vector<1x2xf32>
    %4 = vector.broadcast %3 : vector<1x2xf32> to vector<512x2xf32>
    %5 = arith.addf %2, %4 : vector<512x2xf32>
    %cst_5 = arith.constant 0.000000e+00 : f32
    %6 = vector.broadcast %cst_5 : f32 to vector<512x2xf32>
    %7 = arith.maximumf %5, %6 : vector<512x2xf32>
    %8 = arith.truncf %7 : vector<512x2xf32> to vector<512x2xbf16>
    %c0_6 = arith.constant 0 : index
    %c0_7 = arith.constant 0 : index
    %9 = vector.load %arg4[%c0_6, %c0_7] : memref<512x2xbf16, #tpu.memory_space<vmem>>, vector<512x2xbf16>
    tpu.vector_store %arg4[%c0_6, %c0_7], %8 {strides = array<i32>} : memref<512x2xbf16, #tpu.memory_space<vmem>>, vector<512x2xbf16>,
    return
  }
  func.func @transform_0(%arg0: i32) -> (i32, i32) {
    %c0_i32 = arith.constant 0 : i32
    %c0_i32_0 = arith.constant 0 : i32
    return %arg0, %c0_i32 : i32, i32
  }
  func.func @transform_1(%arg0: i32) -> (i32, i32) {
    %c0_i32 = arith.constant 0 : i32
    %c0_i32_0 = arith.constant 0 : i32
    %c0_i32_1 = arith.constant 0 : i32
    return %c0_i32, %c0_i32_0 : i32, i32
  }
  func.func @transform_2(%arg0: i32) -> (i32, i32) {
    %c0_i32 = arith.constant 0 : i32
    %c0_i32_0 = arith.constant 0 : i32
    %c0_i32_1 = arith.constant 0 : i32
    return %c0_i32, %c0_i32_0 : i32, i32
  }
  func.func @transform_3(%arg0: i32) -> (i32, i32) {
    %c0_i32 = arith.constant 0 : i32
    %c0_i32_0 = arith.constant 0 : i32
    return %arg0, %c0_i32 : i32, i32
  }
}

module attributes {stable_mosaic.version = 11 : i64} {
  func.func @kernel(%arg0: i32, %arg1: i32, %arg2: memref<1x10x110x2xbf16, #tpu.memory_space<vmem>>, %arg3: memref<3x3x3x2x2xbf16, #tpu.memory_space<vmem>>, %arg4: memref<1x2xf32, #tpu.memory_space<vmem>>, %arg5: memref<1x1x80x2xbf16, #tpu.memory_space<vmem>>) attributes {dimension_semantics = [#tpu.dimension_semantics<parallel>, #tpu.dimension_semantics<parallel>], iteration_bounds = array<i64: 2, 8>, scalar_prefetch = 0 : i64, scratch_operands = 0 : i64, tpu.core_type = #tpu.core_type<tc>, window_params = [{transform_indices = @transform_0, window_bounds = array<i64: 1, 10, 110, 2>}, {pipeline_mode = #tpu.pipeline_mode<synchronous>, transform_indices = @transform_1, window_bounds = array<i64: 3, 3, 3, 2, 2>}, {pipeline_mode = #tpu.pipeline_mode<synchronous>, transform_indices = @transform_2, window_bounds = array<i64: 1, 2>}, {transform_indices = @transform_3, window_bounds = array<i64: 1, 1, 80, 2>}]} {
    %cst = arith.constant 0.000000e+00 : f32
    %0 = vector.broadcast %cst : f32 to vector<80x2xf32>
    %c0_i32 = arith.constant 0 : i32
    %1 = arith.addi %arg1, %c0_i32 : i32
    %c0 = arith.constant 0 : index
    %2 = arith.index_cast %1 : i32 to index
    %c0_0 = arith.constant 0 : index
    %c0_1 = arith.constant 0 : index
    %3 = vector.load %arg2[%c0, %2, %c0_0, %c0_1] : memref<1x10x110x2xbf16, #tpu.memory_space<vmem>>, vector<1x1x80x2xbf16>
    %4 = vector.shape_cast %3 : vector<1x1x80x2xbf16> to vector<80x2xbf16>
    %c0_2 = arith.constant 0 : index
    %c0_3 = arith.constant 0 : index
    %c0_4 = arith.constant 0 : index
    %c0_5 = arith.constant 0 : index
    %c0_6 = arith.constant 0 : index
    %5 = vector.load %arg3[%c0_2, %c0_3, %c0_4, %c0_5, %c0_6] : memref<3x3x3x2x2xbf16, #tpu.memory_space<vmem>>, vector<1x1x1x2x2xbf16>
    %6 = vector.shape_cast %5 : vector<1x1x1x2x2xbf16> to vector<2x2xbf16>
    %cst_7 = arith.constant dense<0.000000e+00> : vector<80x2xf32>
    %7 = tpu.matmul %4, %6, %cst_7 {dimension_numbers = #tpu.dot_dimension_numbers<[1], [0], [0], [1], [0, 0, 1, 1], [], []>} : vector<80x2xbf16>, vector<2x2xbf16>, vector<80x2xf32> -> vector<80x2xf32>
    %8 = arith.addf %0, %7 : vector<80x2xf32>
    %c0_i32_8 = arith.constant 0 : i32
    %9 = arith.addi %arg1, %c0_i32_8 : i32
    %c0_9 = arith.constant 0 : index
    %10 = arith.index_cast %9 : i32 to index
    %c1 = arith.constant 1 : index
    %c0_10 = arith.constant 0 : index
    %11 = vector.load %arg2[%c0_9, %10, %c1, %c0_10] : memref<1x10x110x2xbf16, #tpu.memory_space<vmem>>, vector<1x1x80x2xbf16>
    %12 = vector.shape_cast %11 : vector<1x1x80x2xbf16> to vector<80x2xbf16>
    %c0_11 = arith.constant 0 : index
    %c0_12 = arith.constant 0 : index
    %c1_13 = arith.constant 1 : index
    %c0_14 = arith.constant 0 : index
    %c0_15 = arith.constant 0 : index
    %13 = vector.load %arg3[%c0_11, %c0_12, %c1_13, %c0_14, %c0_15] : memref<3x3x3x2x2xbf16, #tpu.memory_space<vmem>>, vector<1x1x1x2x2xbf16>
    %14 = vector.shape_cast %13 : vector<1x1x1x2x2xbf16> to vector<2x2xbf16>
    %cst_16 = arith.constant dense<0.000000e+00> : vector<80x2xf32>
    %15 = tpu.matmul %12, %14, %cst_16 {dimension_numbers = #tpu.dot_dimension_numbers<[1], [0], [0], [1], [0, 0, 1, 1], [], []>} : vector<80x2xbf16>, vector<2x2xbf16>, vector<80x2xf32> -> vector<80x2xf32>
    %16 = arith.addf %8, %15 : vector<80x2xf32>
    %c0_i32_17 = arith.constant 0 : i32
    %17 = arith.addi %arg1, %c0_i32_17 : i32
    %c0_18 = arith.constant 0 : index
    %18 = arith.index_cast %17 : i32 to index
    %c2 = arith.constant 2 : index
    %c0_19 = arith.constant 0 : index
    %19 = vector.load %arg2[%c0_18, %18, %c2, %c0_19] : memref<1x10x110x2xbf16, #tpu.memory_space<vmem>>, vector<1x1x80x2xbf16>
    %20 = vector.shape_cast %19 : vector<1x1x80x2xbf16> to vector<80x2xbf16>
    %c0_20 = arith.constant 0 : index
    %c0_21 = arith.constant 0 : index
    %c2_22 = arith.constant 2 : index
    %c0_23 = arith.constant 0 : index
    %c0_24 = arith.constant 0 : index
    %21 = vector.load %arg3[%c0_20, %c0_21, %c2_22, %c0_23, %c0_24] : memref<3x3x3x2x2xbf16, #tpu.memory_space<vmem>>, vector<1x1x1x2x2xbf16>
    %22 = vector.shape_cast %21 : vector<1x1x1x2x2xbf16> to vector<2x2xbf16>
    %cst_25 = arith.constant dense<0.000000e+00> : vector<80x2xf32>
    %23 = tpu.matmul %20, %22, %cst_25 {dimension_numbers = #tpu.dot_dimension_numbers<[1], [0], [0], [1], [0, 0, 1, 1], [], []>} : vector<80x2xbf16>, vector<2x2xbf16>, vector<80x2xf32> -> vector<80x2xf32>
    %24 = arith.addf %16, %23 : vector<80x2xf32>
    %c0_i32_26 = arith.constant 0 : i32
    %25 = arith.addi %arg1, %c0_i32_26 : i32
    %c0_27 = arith.constant 0 : index
    %26 = arith.index_cast %25 : i32 to index
    %c10 = arith.constant 10 : index
    %c0_28 = arith.constant 0 : index
    %27 = vector.load %arg2[%c0_27, %26, %c10, %c0_28] : memref<1x10x110x2xbf16, #tpu.memory_space<vmem>>, vector<1x1x80x2xbf16>
    %28 = vector.shape_cast %27 : vector<1x1x80x2xbf16> to vector<80x2xbf16>
    %c0_29 = arith.constant 0 : index
    %c1_30 = arith.constant 1 : index
    %c0_31 = arith.constant 0 : index
    %c0_32 = arith.constant 0 : index
    %c0_33 = arith.constant 0 : index
    %29 = vector.load %arg3[%c0_29, %c1_30, %c0_31, %c0_32, %c0_33] : memref<3x3x3x2x2xbf16, #tpu.memory_space<vmem>>, vector<1x1x1x2x2xbf16>
    %30 = vector.shape_cast %29 : vector<1x1x1x2x2xbf16> to vector<2x2xbf16>
    %cst_34 = arith.constant dense<0.000000e+00> : vector<80x2xf32>
    %31 = tpu.matmul %28, %30, %cst_34 {dimension_numbers = #tpu.dot_dimension_numbers<[1], [0], [0], [1], [0, 0, 1, 1], [], []>} : vector<80x2xbf16>, vector<2x2xbf16>, vector<80x2xf32> -> vector<80x2xf32>
    %32 = arith.addf %24, %31 : vector<80x2xf32>
    %c0_i32_35 = arith.constant 0 : i32
    %33 = arith.addi %arg1, %c0_i32_35 : i32
    %c0_36 = arith.constant 0 : index
    %34 = arith.index_cast %33 : i32 to index
    %c11 = arith.constant 11 : index
    %c0_37 = arith.constant 0 : index
    %35 = vector.load %arg2[%c0_36, %34, %c11, %c0_37] : memref<1x10x110x2xbf16, #tpu.memory_space<vmem>>, vector<1x1x80x2xbf16>
    %36 = vector.shape_cast %35 : vector<1x1x80x2xbf16> to vector<80x2xbf16>
    %c0_38 = arith.constant 0 : index
    %c1_39 = arith.constant 1 : index
    %c1_40 = arith.constant 1 : index
    %c0_41 = arith.constant 0 : index
    %c0_42 = arith.constant 0 : index
    %37 = vector.load %arg3[%c0_38, %c1_39, %c1_40, %c0_41, %c0_42] : memref<3x3x3x2x2xbf16, #tpu.memory_space<vmem>>, vector<1x1x1x2x2xbf16>
    %38 = vector.shape_cast %37 : vector<1x1x1x2x2xbf16> to vector<2x2xbf16>
    %cst_43 = arith.constant dense<0.000000e+00> : vector<80x2xf32>
    %39 = tpu.matmul %36, %38, %cst_43 {dimension_numbers = #tpu.dot_dimension_numbers<[1], [0], [0], [1], [0, 0, 1, 1], [], []>} : vector<80x2xbf16>, vector<2x2xbf16>, vector<80x2xf32> -> vector<80x2xf32>
    %40 = arith.addf %32, %39 : vector<80x2xf32>
    %c0_i32_44 = arith.constant 0 : i32
    %41 = arith.addi %arg1, %c0_i32_44 : i32
    %c0_45 = arith.constant 0 : index
    %42 = arith.index_cast %41 : i32 to index
    %c12 = arith.constant 12 : index
    %c0_46 = arith.constant 0 : index
    %43 = vector.load %arg2[%c0_45, %42, %c12, %c0_46] : memref<1x10x110x2xbf16, #tpu.memory_space<vmem>>, vector<1x1x80x2xbf16>
    %44 = vector.shape_cast %43 : vector<1x1x80x2xbf16> to vector<80x2xbf16>
    %c0_47 = arith.constant 0 : index
    %c1_48 = arith.constant 1 : index
    %c2_49 = arith.constant 2 : index
    %c0_50 = arith.constant 0 : index
    %c0_51 = arith.constant 0 : index
    %45 = vector.load %arg3[%c0_47, %c1_48, %c2_49, %c0_50, %c0_51] : memref<3x3x3x2x2xbf16, #tpu.memory_space<vmem>>, vector<1x1x1x2x2xbf16>
    %46 = vector.shape_cast %45 : vector<1x1x1x2x2xbf16> to vector<2x2xbf16>
    %cst_52 = arith.constant dense<0.000000e+00> : vector<80x2xf32>
    %47 = tpu.matmul %44, %46, %cst_52 {dimension_numbers = #tpu.dot_dimension_numbers<[1], [0], [0], [1], [0, 0, 1, 1], [], []>} : vector<80x2xbf16>, vector<2x2xbf16>, vector<80x2xf32> -> vector<80x2xf32>
    %48 = arith.addf %40, %47 : vector<80x2xf32>
    %c0_i32_53 = arith.constant 0 : i32
    %49 = arith.addi %arg1, %c0_i32_53 : i32
    %c0_54 = arith.constant 0 : index
    %50 = arith.index_cast %49 : i32 to index
    %c20 = arith.constant 20 : index
    %c0_55 = arith.constant 0 : index
    %51 = vector.load %arg2[%c0_54, %50, %c20, %c0_55] : memref<1x10x110x2xbf16, #tpu.memory_space<vmem>>, vector<1x1x80x2xbf16>
    %52 = vector.shape_cast %51 : vector<1x1x80x2xbf16> to vector<80x2xbf16>
    %c0_56 = arith.constant 0 : index
    %c2_57 = arith.constant 2 : index
    %c0_58 = arith.constant 0 : index
    %c0_59 = arith.constant 0 : index
    %c0_60 = arith.constant 0 : index
    %53 = vector.load %arg3[%c0_56, %c2_57, %c0_58, %c0_59, %c0_60] : memref<3x3x3x2x2xbf16, #tpu.memory_space<vmem>>, vector<1x1x1x2x2xbf16>
    %54 = vector.shape_cast %53 : vector<1x1x1x2x2xbf16> to vector<2x2xbf16>
    %cst_61 = arith.constant dense<0.000000e+00> : vector<80x2xf32>
    %55 = tpu.matmul %52, %54, %cst_61 {dimension_numbers = #tpu.dot_dimension_numbers<[1], [0], [0], [1], [0, 0, 1, 1], [], []>} : vector<80x2xbf16>, vector<2x2xbf16>, vector<80x2xf32> -> vector<80x2xf32>
    %56 = arith.addf %48, %55 : vector<80x2xf32>
    %c0_i32_62 = arith.constant 0 : i32
    %57 = arith.addi %arg1, %c0_i32_62 : i32
    %c0_63 = arith.constant 0 : index
    %58 = arith.index_cast %57 : i32 to index
    %c21 = arith.constant 21 : index
    %c0_64 = arith.constant 0 : index
    %59 = vector.load %arg2[%c0_63, %58, %c21, %c0_64] : memref<1x10x110x2xbf16, #tpu.memory_space<vmem>>, vector<1x1x80x2xbf16>
    %60 = vector.shape_cast %59 : vector<1x1x80x2xbf16> to vector<80x2xbf16>
    %c0_65 = arith.constant 0 : index
    %c2_66 = arith.constant 2 : index
    %c1_67 = arith.constant 1 : index
    %c0_68 = arith.constant 0 : index
    %c0_69 = arith.constant 0 : index
    %61 = vector.load %arg3[%c0_65, %c2_66, %c1_67, %c0_68, %c0_69] : memref<3x3x3x2x2xbf16, #tpu.memory_space<vmem>>, vector<1x1x1x2x2xbf16>
    %62 = vector.shape_cast %61 : vector<1x1x1x2x2xbf16> to vector<2x2xbf16>
    %cst_70 = arith.constant dense<0.000000e+00> : vector<80x2xf32>
    %63 = tpu.matmul %60, %62, %cst_70 {dimension_numbers = #tpu.dot_dimension_numbers<[1], [0], [0], [1], [0, 0, 1, 1], [], []>} : vector<80x2xbf16>, vector<2x2xbf16>, vector<80x2xf32> -> vector<80x2xf32>
    %64 = arith.addf %56, %63 : vector<80x2xf32>
    %c0_i32_71 = arith.constant 0 : i32
    %65 = arith.addi %arg1, %c0_i32_71 : i32
    %c0_72 = arith.constant 0 : index
    %66 = arith.index_cast %65 : i32 to index
    %c22 = arith.constant 22 : index
    %c0_73 = arith.constant 0 : index
    %67 = vector.load %arg2[%c0_72, %66, %c22, %c0_73] : memref<1x10x110x2xbf16, #tpu.memory_space<vmem>>, vector<1x1x80x2xbf16>
    %68 = vector.shape_cast %67 : vector<1x1x80x2xbf16> to vector<80x2xbf16>
    %c0_74 = arith.constant 0 : index
    %c2_75 = arith.constant 2 : index
    %c2_76 = arith.constant 2 : index
    %c0_77 = arith.constant 0 : index
    %c0_78 = arith.constant 0 : index
    %69 = vector.load %arg3[%c0_74, %c2_75, %c2_76, %c0_77, %c0_78] : memref<3x3x3x2x2xbf16, #tpu.memory_space<vmem>>, vector<1x1x1x2x2xbf16>
    %70 = vector.shape_cast %69 : vector<1x1x1x2x2xbf16> to vector<2x2xbf16>
    %cst_79 = arith.constant dense<0.000000e+00> : vector<80x2xf32>
    %71 = tpu.matmul %68, %70, %cst_79 {dimension_numbers = #tpu.dot_dimension_numbers<[1], [0], [0], [1], [0, 0, 1, 1], [], []>} : vector<80x2xbf16>, vector<2x2xbf16>, vector<80x2xf32> -> vector<80x2xf32>
    %72 = arith.addf %64, %71 : vector<80x2xf32>
    %c1_i32 = arith.constant 1 : i32
    %73 = arith.addi %arg1, %c1_i32 : i32
    %c0_80 = arith.constant 0 : index
    %74 = arith.index_cast %73 : i32 to index
    %c0_81 = arith.constant 0 : index
    %c0_82 = arith.constant 0 : index
    %75 = vector.load %arg2[%c0_80, %74, %c0_81, %c0_82] : memref<1x10x110x2xbf16, #tpu.memory_space<vmem>>, vector<1x1x80x2xbf16>
    %76 = vector.shape_cast %75 : vector<1x1x80x2xbf16> to vector<80x2xbf16>
    %c1_83 = arith.constant 1 : index
    %c0_84 = arith.constant 0 : index
    %c0_85 = arith.constant 0 : index
    %c0_86 = arith.constant 0 : index
    %c0_87 = arith.constant 0 : index
    %77 = vector.load %arg3[%c1_83, %c0_84, %c0_85, %c0_86, %c0_87] : memref<3x3x3x2x2xbf16, #tpu.memory_space<vmem>>, vector<1x1x1x2x2xbf16>
    %78 = vector.shape_cast %77 : vector<1x1x1x2x2xbf16> to vector<2x2xbf16>
    %cst_88 = arith.constant dense<0.000000e+00> : vector<80x2xf32>
    %79 = tpu.matmul %76, %78, %cst_88 {dimension_numbers = #tpu.dot_dimension_numbers<[1], [0], [0], [1], [0, 0, 1, 1], [], []>} : vector<80x2xbf16>, vector<2x2xbf16>, vector<80x2xf32> -> vector<80x2xf32>
    %80 = arith.addf %72, %79 : vector<80x2xf32>
    %c1_i32_89 = arith.constant 1 : i32
    %81 = arith.addi %arg1, %c1_i32_89 : i32
    %c0_90 = arith.constant 0 : index
    %82 = arith.index_cast %81 : i32 to index
    %c1_91 = arith.constant 1 : index
    %c0_92 = arith.constant 0 : index
    %83 = vector.load %arg2[%c0_90, %82, %c1_91, %c0_92] : memref<1x10x110x2xbf16, #tpu.memory_space<vmem>>, vector<1x1x80x2xbf16>
    %84 = vector.shape_cast %83 : vector<1x1x80x2xbf16> to vector<80x2xbf16>
    %c1_93 = arith.constant 1 : index
    %c0_94 = arith.constant 0 : index
    %c1_95 = arith.constant 1 : index
    %c0_96 = arith.constant 0 : index
    %c0_97 = arith.constant 0 : index
    %85 = vector.load %arg3[%c1_93, %c0_94, %c1_95, %c0_96, %c0_97] : memref<3x3x3x2x2xbf16, #tpu.memory_space<vmem>>, vector<1x1x1x2x2xbf16>
    %86 = vector.shape_cast %85 : vector<1x1x1x2x2xbf16> to vector<2x2xbf16>
    %cst_98 = arith.constant dense<0.000000e+00> : vector<80x2xf32>
    %87 = tpu.matmul %84, %86, %cst_98 {dimension_numbers = #tpu.dot_dimension_numbers<[1], [0], [0], [1], [0, 0, 1, 1], [], []>} : vector<80x2xbf16>, vector<2x2xbf16>, vector<80x2xf32> -> vector<80x2xf32>
    %88 = arith.addf %80, %87 : vector<80x2xf32>
    %c1_i32_99 = arith.constant 1 : i32
    %89 = arith.addi %arg1, %c1_i32_99 : i32
    %c0_100 = arith.constant 0 : index
    %90 = arith.index_cast %89 : i32 to index
    %c2_101 = arith.constant 2 : index
    %c0_102 = arith.constant 0 : index
    %91 = vector.load %arg2[%c0_100, %90, %c2_101, %c0_102] : memref<1x10x110x2xbf16, #tpu.memory_space<vmem>>, vector<1x1x80x2xbf16>
    %92 = vector.shape_cast %91 : vector<1x1x80x2xbf16> to vector<80x2xbf16>
    %c1_103 = arith.constant 1 : index
    %c0_104 = arith.constant 0 : index
    %c2_105 = arith.constant 2 : index
    %c0_106 = arith.constant 0 : index
    %c0_107 = arith.constant 0 : index
    %93 = vector.load %arg3[%c1_103, %c0_104, %c2_105, %c0_106, %c0_107] : memref<3x3x3x2x2xbf16, #tpu.memory_space<vmem>>, vector<1x1x1x2x2xbf16>
    %94 = vector.shape_cast %93 : vector<1x1x1x2x2xbf16> to vector<2x2xbf16>
    %cst_108 = arith.constant dense<0.000000e+00> : vector<80x2xf32>
    %95 = tpu.matmul %92, %94, %cst_108 {dimension_numbers = #tpu.dot_dimension_numbers<[1], [0], [0], [1], [0, 0, 1, 1], [], []>} : vector<80x2xbf16>, vector<2x2xbf16>, vector<80x2xf32> -> vector<80x2xf32>
    %96 = arith.addf %88, %95 : vector<80x2xf32>
    %c1_i32_109 = arith.constant 1 : i32
    %97 = arith.addi %arg1, %c1_i32_109 : i32
    %c0_110 = arith.constant 0 : index
    %98 = arith.index_cast %97 : i32 to index
    %c10_111 = arith.constant 10 : index
    %c0_112 = arith.constant 0 : index
    %99 = vector.load %arg2[%c0_110, %98, %c10_111, %c0_112] : memref<1x10x110x2xbf16, #tpu.memory_space<vmem>>, vector<1x1x80x2xbf16>
    %100 = vector.shape_cast %99 : vector<1x1x80x2xbf16> to vector<80x2xbf16>
    %c1_113 = arith.constant 1 : index
    %c1_114 = arith.constant 1 : index
    %c0_115 = arith.constant 0 : index
    %c0_116 = arith.constant 0 : index
    %c0_117 = arith.constant 0 : index
    %101 = vector.load %arg3[%c1_113, %c1_114, %c0_115, %c0_116, %c0_117] : memref<3x3x3x2x2xbf16, #tpu.memory_space<vmem>>, vector<1x1x1x2x2xbf16>
    %102 = vector.shape_cast %101 : vector<1x1x1x2x2xbf16> to vector<2x2xbf16>
    %cst_118 = arith.constant dense<0.000000e+00> : vector<80x2xf32>
    %103 = tpu.matmul %100, %102, %cst_118 {dimension_numbers = #tpu.dot_dimension_numbers<[1], [0], [0], [1], [0, 0, 1, 1], [], []>} : vector<80x2xbf16>, vector<2x2xbf16>, vector<80x2xf32> -> vector<80x2xf32>
    %104 = arith.addf %96, %103 : vector<80x2xf32>
    %c1_i32_119 = arith.constant 1 : i32
    %105 = arith.addi %arg1, %c1_i32_119 : i32
    %c0_120 = arith.constant 0 : index
    %106 = arith.index_cast %105 : i32 to index
    %c11_121 = arith.constant 11 : index
    %c0_122 = arith.constant 0 : index
    %107 = vector.load %arg2[%c0_120, %106, %c11_121, %c0_122] : memref<1x10x110x2xbf16, #tpu.memory_space<vmem>>, vector<1x1x80x2xbf16>
    %108 = vector.shape_cast %107 : vector<1x1x80x2xbf16> to vector<80x2xbf16>
    %c1_123 = arith.constant 1 : index
    %c1_124 = arith.constant 1 : index
    %c1_125 = arith.constant 1 : index
    %c0_126 = arith.constant 0 : index
    %c0_127 = arith.constant 0 : index
    %109 = vector.load %arg3[%c1_123, %c1_124, %c1_125, %c0_126, %c0_127] : memref<3x3x3x2x2xbf16, #tpu.memory_space<vmem>>, vector<1x1x1x2x2xbf16>
    %110 = vector.shape_cast %109 : vector<1x1x1x2x2xbf16> to vector<2x2xbf16>
    %cst_128 = arith.constant dense<0.000000e+00> : vector<80x2xf32>
    %111 = tpu.matmul %108, %110, %cst_128 {dimension_numbers = #tpu.dot_dimension_numbers<[1], [0], [0], [1], [0, 0, 1, 1], [], []>} : vector<80x2xbf16>, vector<2x2xbf16>, vector<80x2xf32> -> vector<80x2xf32>
    %112 = arith.addf %104, %111 : vector<80x2xf32>
    %c1_i32_129 = arith.constant 1 : i32
    %113 = arith.addi %arg1, %c1_i32_129 : i32
    %c0_130 = arith.constant 0 : index
    %114 = arith.index_cast %113 : i32 to index
    %c12_131 = arith.constant 12 : index
    %c0_132 = arith.constant 0 : index
    %115 = vector.load %arg2[%c0_130, %114, %c12_131, %c0_132] : memref<1x10x110x2xbf16, #tpu.memory_space<vmem>>, vector<1x1x80x2xbf16>
    %116 = vector.shape_cast %115 : vector<1x1x80x2xbf16> to vector<80x2xbf16>
    %c1_133 = arith.constant 1 : index
    %c1_134 = arith.constant 1 : index
    %c2_135 = arith.constant 2 : index
    %c0_136 = arith.constant 0 : index
    %c0_137 = arith.constant 0 : index
    %117 = vector.load %arg3[%c1_133, %c1_134, %c2_135, %c0_136, %c0_137] : memref<3x3x3x2x2xbf16, #tpu.memory_space<vmem>>, vector<1x1x1x2x2xbf16>
    %118 = vector.shape_cast %117 : vector<1x1x1x2x2xbf16> to vector<2x2xbf16>
    %cst_138 = arith.constant dense<0.000000e+00> : vector<80x2xf32>
    %119 = tpu.matmul %116, %118, %cst_138 {dimension_numbers = #tpu.dot_dimension_numbers<[1], [0], [0], [1], [0, 0, 1, 1], [], []>} : vector<80x2xbf16>, vector<2x2xbf16>, vector<80x2xf32> -> vector<80x2xf32>
    %120 = arith.addf %112, %119 : vector<80x2xf32>
    %c1_i32_139 = arith.constant 1 : i32
    %121 = arith.addi %arg1, %c1_i32_139 : i32
    %c0_140 = arith.constant 0 : index
    %122 = arith.index_cast %121 : i32 to index
    %c20_141 = arith.constant 20 : index
    %c0_142 = arith.constant 0 : index
    %123 = vector.load %arg2[%c0_140, %122, %c20_141, %c0_142] : memref<1x10x110x2xbf16, #tpu.memory_space<vmem>>, vector<1x1x80x2xbf16>
    %124 = vector.shape_cast %123 : vector<1x1x80x2xbf16> to vector<80x2xbf16>
    %c1_143 = arith.constant 1 : index
    %c2_144 = arith.constant 2 : index
    %c0_145 = arith.constant 0 : index
    %c0_146 = arith.constant 0 : index
    %c0_147 = arith.constant 0 : index
    %125 = vector.load %arg3[%c1_143, %c2_144, %c0_145, %c0_146, %c0_147] : memref<3x3x3x2x2xbf16, #tpu.memory_space<vmem>>, vector<1x1x1x2x2xbf16>
    %126 = vector.shape_cast %125 : vector<1x1x1x2x2xbf16> to vector<2x2xbf16>
    %cst_148 = arith.constant dense<0.000000e+00> : vector<80x2xf32>
    %127 = tpu.matmul %124, %126, %cst_148 {dimension_numbers = #tpu.dot_dimension_numbers<[1], [0], [0], [1], [0, 0, 1, 1], [], []>} : vector<80x2xbf16>, vector<2x2xbf16>, vector<80x2xf32> -> vector<80x2xf32>
    %128 = arith.addf %120, %127 : vector<80x2xf32>
    %c1_i32_149 = arith.constant 1 : i32
    %129 = arith.addi %arg1, %c1_i32_149 : i32
    %c0_150 = arith.constant 0 : index
    %130 = arith.index_cast %129 : i32 to index
    %c21_151 = arith.constant 21 : index
    %c0_152 = arith.constant 0 : index
    %131 = vector.load %arg2[%c0_150, %130, %c21_151, %c0_152] : memref<1x10x110x2xbf16, #tpu.memory_space<vmem>>, vector<1x1x80x2xbf16>
    %132 = vector.shape_cast %131 : vector<1x1x80x2xbf16> to vector<80x2xbf16>
    %c1_153 = arith.constant 1 : index
    %c2_154 = arith.constant 2 : index
    %c1_155 = arith.constant 1 : index
    %c0_156 = arith.constant 0 : index
    %c0_157 = arith.constant 0 : index
    %133 = vector.load %arg3[%c1_153, %c2_154, %c1_155, %c0_156, %c0_157] : memref<3x3x3x2x2xbf16, #tpu.memory_space<vmem>>, vector<1x1x1x2x2xbf16>
    %134 = vector.shape_cast %133 : vector<1x1x1x2x2xbf16> to vector<2x2xbf16>
    %cst_158 = arith.constant dense<0.000000e+00> : vector<80x2xf32>
    %135 = tpu.matmul %132, %134, %cst_158 {dimension_numbers = #tpu.dot_dimension_numbers<[1], [0], [0], [1], [0, 0, 1, 1], [], []>} : vector<80x2xbf16>, vector<2x2xbf16>, vector<80x2xf32> -> vector<80x2xf32>
    %136 = arith.addf %128, %135 : vector<80x2xf32>
    %c1_i32_159 = arith.constant 1 : i32
    %137 = arith.addi %arg1, %c1_i32_159 : i32
    %c0_160 = arith.constant 0 : index
    %138 = arith.index_cast %137 : i32 to index
    %c22_161 = arith.constant 22 : index
    %c0_162 = arith.constant 0 : index
    %139 = vector.load %arg2[%c0_160, %138, %c22_161, %c0_162] : memref<1x10x110x2xbf16, #tpu.memory_space<vmem>>, vector<1x1x80x2xbf16>
    %140 = vector.shape_cast %139 : vector<1x1x80x2xbf16> to vector<80x2xbf16>
    %c1_163 = arith.constant 1 : index
    %c2_164 = arith.constant 2 : index
    %c2_165 = arith.constant 2 : index
    %c0_166 = arith.constant 0 : index
    %c0_167 = arith.constant 0 : index
    %141 = vector.load %arg3[%c1_163, %c2_164, %c2_165, %c0_166, %c0_167] : memref<3x3x3x2x2xbf16, #tpu.memory_space<vmem>>, vector<1x1x1x2x2xbf16>
    %142 = vector.shape_cast %141 : vector<1x1x1x2x2xbf16> to vector<2x2xbf16>
    %cst_168 = arith.constant dense<0.000000e+00> : vector<80x2xf32>
    %143 = tpu.matmul %140, %142, %cst_168 {dimension_numbers = #tpu.dot_dimension_numbers<[1], [0], [0], [1], [0, 0, 1, 1], [], []>} : vector<80x2xbf16>, vector<2x2xbf16>, vector<80x2xf32> -> vector<80x2xf32>
    %144 = arith.addf %136, %143 : vector<80x2xf32>
    %c2_i32 = arith.constant 2 : i32
    %145 = arith.addi %arg1, %c2_i32 : i32
    %c0_169 = arith.constant 0 : index
    %146 = arith.index_cast %145 : i32 to index
    %c0_170 = arith.constant 0 : index
    %c0_171 = arith.constant 0 : index
    %147 = vector.load %arg2[%c0_169, %146, %c0_170, %c0_171] : memref<1x10x110x2xbf16, #tpu.memory_space<vmem>>, vector<1x1x80x2xbf16>
    %148 = vector.shape_cast %147 : vector<1x1x80x2xbf16> to vector<80x2xbf16>
    %c2_172 = arith.constant 2 : index
    %c0_173 = arith.constant 0 : index
    %c0_174 = arith.constant 0 : index
    %c0_175 = arith.constant 0 : index
    %c0_176 = arith.constant 0 : index
    %149 = vector.load %arg3[%c2_172, %c0_173, %c0_174, %c0_175, %c0_176] : memref<3x3x3x2x2xbf16, #tpu.memory_space<vmem>>, vector<1x1x1x2x2xbf16>
    %150 = vector.shape_cast %149 : vector<1x1x1x2x2xbf16> to vector<2x2xbf16>
    %cst_177 = arith.constant dense<0.000000e+00> : vector<80x2xf32>
    %151 = tpu.matmul %148, %150, %cst_177 {dimension_numbers = #tpu.dot_dimension_numbers<[1], [0], [0], [1], [0, 0, 1, 1], [], []>} : vector<80x2xbf16>, vector<2x2xbf16>, vector<80x2xf32> -> vector<80x2xf32>
    %152 = arith.addf %144, %151 : vector<80x2xf32>
    %c2_i32_178 = arith.constant 2 : i32
    %153 = arith.addi %arg1, %c2_i32_178 : i32
    %c0_179 = arith.constant 0 : index
    %154 = arith.index_cast %153 : i32 to index
    %c1_180 = arith.constant 1 : index
    %c0_181 = arith.constant 0 : index
    %155 = vector.load %arg2[%c0_179, %154, %c1_180, %c0_181] : memref<1x10x110x2xbf16, #tpu.memory_space<vmem>>, vector<1x1x80x2xbf16>
    %156 = vector.shape_cast %155 : vector<1x1x80x2xbf16> to vector<80x2xbf16>
    %c2_182 = arith.constant 2 : index
    %c0_183 = arith.constant 0 : index
    %c1_184 = arith.constant 1 : index
    %c0_185 = arith.constant 0 : index
    %c0_186 = arith.constant 0 : index
    %157 = vector.load %arg3[%c2_182, %c0_183, %c1_184, %c0_185, %c0_186] : memref<3x3x3x2x2xbf16, #tpu.memory_space<vmem>>, vector<1x1x1x2x2xbf16>
    %158 = vector.shape_cast %157 : vector<1x1x1x2x2xbf16> to vector<2x2xbf16>
    %cst_187 = arith.constant dense<0.000000e+00> : vector<80x2xf32>
    %159 = tpu.matmul %156, %158, %cst_187 {dimension_numbers = #tpu.dot_dimension_numbers<[1], [0], [0], [1], [0, 0, 1, 1], [], []>} : vector<80x2xbf16>, vector<2x2xbf16>, vector<80x2xf32> -> vector<80x2xf32>
    %160 = arith.addf %152, %159 : vector<80x2xf32>
    %c2_i32_188 = arith.constant 2 : i32
    %161 = arith.addi %arg1, %c2_i32_188 : i32
    %c0_189 = arith.constant 0 : index
    %162 = arith.index_cast %161 : i32 to index
    %c2_190 = arith.constant 2 : index
    %c0_191 = arith.constant 0 : index
    %163 = vector.load %arg2[%c0_189, %162, %c2_190, %c0_191] : memref<1x10x110x2xbf16, #tpu.memory_space<vmem>>, vector<1x1x80x2xbf16>
    %164 = vector.shape_cast %163 : vector<1x1x80x2xbf16> to vector<80x2xbf16>
    %c2_192 = arith.constant 2 : index
    %c0_193 = arith.constant 0 : index
    %c2_194 = arith.constant 2 : index
    %c0_195 = arith.constant 0 : index
    %c0_196 = arith.constant 0 : index
    %165 = vector.load %arg3[%c2_192, %c0_193, %c2_194, %c0_195, %c0_196] : memref<3x3x3x2x2xbf16, #tpu.memory_space<vmem>>, vector<1x1x1x2x2xbf16>
    %166 = vector.shape_cast %165 : vector<1x1x1x2x2xbf16> to vector<2x2xbf16>
    %cst_197 = arith.constant dense<0.000000e+00> : vector<80x2xf32>
    %167 = tpu.matmul %164, %166, %cst_197 {dimension_numbers = #tpu.dot_dimension_numbers<[1], [0], [0], [1], [0, 0, 1, 1], [], []>} : vector<80x2xbf16>, vector<2x2xbf16>, vector<80x2xf32> -> vector<80x2xf32>
    %168 = arith.addf %160, %167 : vector<80x2xf32>
    %c2_i32_198 = arith.constant 2 : i32
    %169 = arith.addi %arg1, %c2_i32_198 : i32
    %c0_199 = arith.constant 0 : index
    %170 = arith.index_cast %169 : i32 to index
    %c10_200 = arith.constant 10 : index
    %c0_201 = arith.constant 0 : index
    %171 = vector.load %arg2[%c0_199, %170, %c10_200, %c0_201] : memref<1x10x110x2xbf16, #tpu.memory_space<vmem>>, vector<1x1x80x2xbf16>
    %172 = vector.shape_cast %171 : vector<1x1x80x2xbf16> to vector<80x2xbf16>
    %c2_202 = arith.constant 2 : index
    %c1_203 = arith.constant 1 : index
    %c0_204 = arith.constant 0 : index
    %c0_205 = arith.constant 0 : index
    %c0_206 = arith.constant 0 : index
    %173 = vector.load %arg3[%c2_202, %c1_203, %c0_204, %c0_205, %c0_206] : memref<3x3x3x2x2xbf16, #tpu.memory_space<vmem>>, vector<1x1x1x2x2xbf16>
    %174 = vector.shape_cast %173 : vector<1x1x1x2x2xbf16> to vector<2x2xbf16>
    %cst_207 = arith.constant dense<0.000000e+00> : vector<80x2xf32>
    %175 = tpu.matmul %172, %174, %cst_207 {dimension_numbers = #tpu.dot_dimension_numbers<[1], [0], [0], [1], [0, 0, 1, 1], [], []>} : vector<80x2xbf16>, vector<2x2xbf16>, vector<80x2xf32> -> vector<80x2xf32>
    %176 = arith.addf %168, %175 : vector<80x2xf32>
    %c2_i32_208 = arith.constant 2 : i32
    %177 = arith.addi %arg1, %c2_i32_208 : i32
    %c0_209 = arith.constant 0 : index
    %178 = arith.index_cast %177 : i32 to index
    %c11_210 = arith.constant 11 : index
    %c0_211 = arith.constant 0 : index
    %179 = vector.load %arg2[%c0_209, %178, %c11_210, %c0_211] : memref<1x10x110x2xbf16, #tpu.memory_space<vmem>>, vector<1x1x80x2xbf16>
    %180 = vector.shape_cast %179 : vector<1x1x80x2xbf16> to vector<80x2xbf16>
    %c2_212 = arith.constant 2 : index
    %c1_213 = arith.constant 1 : index
    %c1_214 = arith.constant 1 : index
    %c0_215 = arith.constant 0 : index
    %c0_216 = arith.constant 0 : index
    %181 = vector.load %arg3[%c2_212, %c1_213, %c1_214, %c0_215, %c0_216] : memref<3x3x3x2x2xbf16, #tpu.memory_space<vmem>>, vector<1x1x1x2x2xbf16>
    %182 = vector.shape_cast %181 : vector<1x1x1x2x2xbf16> to vector<2x2xbf16>
    %cst_217 = arith.constant dense<0.000000e+00> : vector<80x2xf32>
    %183 = tpu.matmul %180, %182, %cst_217 {dimension_numbers = #tpu.dot_dimension_numbers<[1], [0], [0], [1], [0, 0, 1, 1], [], []>} : vector<80x2xbf16>, vector<2x2xbf16>, vector<80x2xf32> -> vector<80x2xf32>
    %184 = arith.addf %176, %183 : vector<80x2xf32>
    %c2_i32_218 = arith.constant 2 : i32
    %185 = arith.addi %arg1, %c2_i32_218 : i32
    %c0_219 = arith.constant 0 : index
    %186 = arith.index_cast %185 : i32 to index
    %c12_220 = arith.constant 12 : index
    %c0_221 = arith.constant 0 : index
    %187 = vector.load %arg2[%c0_219, %186, %c12_220, %c0_221] : memref<1x10x110x2xbf16, #tpu.memory_space<vmem>>, vector<1x1x80x2xbf16>
    %188 = vector.shape_cast %187 : vector<1x1x80x2xbf16> to vector<80x2xbf16>
    %c2_222 = arith.constant 2 : index
    %c1_223 = arith.constant 1 : index
    %c2_224 = arith.constant 2 : index
    %c0_225 = arith.constant 0 : index
    %c0_226 = arith.constant 0 : index
    %189 = vector.load %arg3[%c2_222, %c1_223, %c2_224, %c0_225, %c0_226] : memref<3x3x3x2x2xbf16, #tpu.memory_space<vmem>>, vector<1x1x1x2x2xbf16>
    %190 = vector.shape_cast %189 : vector<1x1x1x2x2xbf16> to vector<2x2xbf16>
    %cst_227 = arith.constant dense<0.000000e+00> : vector<80x2xf32>
    %191 = tpu.matmul %188, %190, %cst_227 {dimension_numbers = #tpu.dot_dimension_numbers<[1], [0], [0], [1], [0, 0, 1, 1], [], []>} : vector<80x2xbf16>, vector<2x2xbf16>, vector<80x2xf32> -> vector<80x2xf32>
    %192 = arith.addf %184, %191 : vector<80x2xf32>
    %c2_i32_228 = arith.constant 2 : i32
    %193 = arith.addi %arg1, %c2_i32_228 : i32
    %c0_229 = arith.constant 0 : index
    %194 = arith.index_cast %193 : i32 to index
    %c20_230 = arith.constant 20 : index
    %c0_231 = arith.constant 0 : index
    %195 = vector.load %arg2[%c0_229, %194, %c20_230, %c0_231] : memref<1x10x110x2xbf16, #tpu.memory_space<vmem>>, vector<1x1x80x2xbf16>
    %196 = vector.shape_cast %195 : vector<1x1x80x2xbf16> to vector<80x2xbf16>
    %c2_232 = arith.constant 2 : index
    %c2_233 = arith.constant 2 : index
    %c0_234 = arith.constant 0 : index
    %c0_235 = arith.constant 0 : index
    %c0_236 = arith.constant 0 : index
    %197 = vector.load %arg3[%c2_232, %c2_233, %c0_234, %c0_235, %c0_236] : memref<3x3x3x2x2xbf16, #tpu.memory_space<vmem>>, vector<1x1x1x2x2xbf16>
    %198 = vector.shape_cast %197 : vector<1x1x1x2x2xbf16> to vector<2x2xbf16>
    %cst_237 = arith.constant dense<0.000000e+00> : vector<80x2xf32>
    %199 = tpu.matmul %196, %198, %cst_237 {dimension_numbers = #tpu.dot_dimension_numbers<[1], [0], [0], [1], [0, 0, 1, 1], [], []>} : vector<80x2xbf16>, vector<2x2xbf16>, vector<80x2xf32> -> vector<80x2xf32>
    %200 = arith.addf %192, %199 : vector<80x2xf32>
    %c2_i32_238 = arith.constant 2 : i32
    %201 = arith.addi %arg1, %c2_i32_238 : i32
    %c0_239 = arith.constant 0 : index
    %202 = arith.index_cast %201 : i32 to index
    %c21_240 = arith.constant 21 : index
    %c0_241 = arith.constant 0 : index
    %203 = vector.load %arg2[%c0_239, %202, %c21_240, %c0_241] : memref<1x10x110x2xbf16, #tpu.memory_space<vmem>>, vector<1x1x80x2xbf16>
    %204 = vector.shape_cast %203 : vector<1x1x80x2xbf16> to vector<80x2xbf16>
    %c2_242 = arith.constant 2 : index
    %c2_243 = arith.constant 2 : index
    %c1_244 = arith.constant 1 : index
    %c0_245 = arith.constant 0 : index
    %c0_246 = arith.constant 0 : index
    %205 = vector.load %arg3[%c2_242, %c2_243, %c1_244, %c0_245, %c0_246] : memref<3x3x3x2x2xbf16, #tpu.memory_space<vmem>>, vector<1x1x1x2x2xbf16>
    %206 = vector.shape_cast %205 : vector<1x1x1x2x2xbf16> to vector<2x2xbf16>
    %cst_247 = arith.constant dense<0.000000e+00> : vector<80x2xf32>
    %207 = tpu.matmul %204, %206, %cst_247 {dimension_numbers = #tpu.dot_dimension_numbers<[1], [0], [0], [1], [0, 0, 1, 1], [], []>} : vector<80x2xbf16>, vector<2x2xbf16>, vector<80x2xf32> -> vector<80x2xf32>
    %208 = arith.addf %200, %207 : vector<80x2xf32>
    %c2_i32_248 = arith.constant 2 : i32
    %209 = arith.addi %arg1, %c2_i32_248 : i32
    %c0_249 = arith.constant 0 : index
    %210 = arith.index_cast %209 : i32 to index
    %c22_250 = arith.constant 22 : index
    %c0_251 = arith.constant 0 : index
    %211 = vector.load %arg2[%c0_249, %210, %c22_250, %c0_251] : memref<1x10x110x2xbf16, #tpu.memory_space<vmem>>, vector<1x1x80x2xbf16>
    %212 = vector.shape_cast %211 : vector<1x1x80x2xbf16> to vector<80x2xbf16>
    %c2_252 = arith.constant 2 : index
    %c2_253 = arith.constant 2 : index
    %c2_254 = arith.constant 2 : index
    %c0_255 = arith.constant 0 : index
    %c0_256 = arith.constant 0 : index
    %213 = vector.load %arg3[%c2_252, %c2_253, %c2_254, %c0_255, %c0_256] : memref<3x3x3x2x2xbf16, #tpu.memory_space<vmem>>, vector<1x1x1x2x2xbf16>
    %214 = vector.shape_cast %213 : vector<1x1x1x2x2xbf16> to vector<2x2xbf16>
    %cst_257 = arith.constant dense<0.000000e+00> : vector<80x2xf32>
    %215 = tpu.matmul %212, %214, %cst_257 {dimension_numbers = #tpu.dot_dimension_numbers<[1], [0], [0], [1], [0, 0, 1, 1], [], []>} : vector<80x2xbf16>, vector<2x2xbf16>, vector<80x2xf32> -> vector<80x2xf32>
    %216 = arith.addf %208, %215 : vector<80x2xf32>
    %c0_258 = arith.constant 0 : index
    %c0_259 = arith.constant 0 : index
    %217 = vector.load %arg4[%c0_258, %c0_259] : memref<1x2xf32, #tpu.memory_space<vmem>>, vector<1x2xf32>
    %218 = vector.broadcast %217 : vector<1x2xf32> to vector<80x2xf32>
    %219 = arith.addf %216, %218 : vector<80x2xf32>
    %cst_260 = arith.constant 0.000000e+00 : f32
    %220 = vector.broadcast %cst_260 : f32 to vector<80x2xf32>
    %221 = arith.maximumf %219, %220 : vector<80x2xf32>
    %222 = arith.truncf %221 : vector<80x2xf32> to vector<80x2xbf16>
    %c0_261 = arith.constant 0 : index
    %c0_262 = arith.constant 0 : index
    %c0_263 = arith.constant 0 : index
    %c0_264 = arith.constant 0 : index
    %223 = vector.load %arg5[%c0_261, %c0_262, %c0_263, %c0_264] : memref<1x1x80x2xbf16, #tpu.memory_space<vmem>>, vector<1x1x80x2xbf16>
    %224 = vector.shape_cast %223 : vector<1x1x80x2xbf16> to vector<80x2xbf16>
    %225 = vector.shape_cast %222 : vector<80x2xbf16> to vector<1x1x80x2xbf16>
    tpu.vector_store %arg5[%c0_261, %c0_262, %c0_263, %c0_264], %225 {strides = array<i32>} : memref<1x1x80x2xbf16, #tpu.memory_space<vmem>>, vector<1x1x80x2xbf16>,
    return
  }
  func.func @transform_0(%arg0: i32, %arg1: i32) -> (i32, i32, i32, i32) {
    %c0_i32 = arith.constant 0 : i32
    %c0_i32_0 = arith.constant 0 : i32
    %c0_i32_1 = arith.constant 0 : i32
    %c0_i32_2 = arith.constant 0 : i32
    return %arg0, %c0_i32, %c0_i32_0, %c0_i32_1 : i32, i32, i32, i32
  }
  func.func @transform_1(%arg0: i32, %arg1: i32) -> (i32, i32, i32, i32, i32) {
    %c0_i32 = arith.constant 0 : i32
    %c0_i32_0 = arith.constant 0 : i32
    %c0_i32_1 = arith.constant 0 : i32
    %c0_i32_2 = arith.constant 0 : i32
    %c0_i32_3 = arith.constant 0 : i32
    %c0_i32_4 = arith.constant 0 : i32
    return %c0_i32, %c0_i32_0, %c0_i32_1, %c0_i32_2, %c0_i32_3 : i32, i32, i32, i32, i32
  }
  func.func @transform_2(%arg0: i32, %arg1: i32) -> (i32, i32) {
    %c0_i32 = arith.constant 0 : i32
    %c0_i32_0 = arith.constant 0 : i32
    %c0_i32_1 = arith.constant 0 : i32
    return %c0_i32, %c0_i32_0 : i32, i32
  }
  func.func @transform_3(%arg0: i32, %arg1: i32) -> (i32, i32, i32, i32) {
    %c0_i32 = arith.constant 0 : i32
    %c0_i32_0 = arith.constant 0 : i32
    %c0_i32_1 = arith.constant 0 : i32
    return %arg0, %arg1, %c0_i32, %c0_i32_0 : i32, i32, i32, i32
  }
}

module attributes {stable_mosaic.version = 11 : i64} {
  func.func @kernel(%arg0: i32, %arg1: memref<1x80x2xbf16, #tpu.memory_space<vmem>>, %arg2: memref<2x8xbf16, #tpu.memory_space<vmem>>, %arg3: memref<1x8xf32, #tpu.memory_space<vmem>>, %arg4: memref<1x64x4xbf16, #tpu.memory_space<vmem>>, %arg5: memref<4x8xbf16, #tpu.memory_space<vmem>>, %arg6: memref<1x8xf32, #tpu.memory_space<vmem>>, %arg7: memref<1x64x8xf32, #tpu.memory_space<vmem>>) attributes {dimension_semantics = [#tpu.dimension_semantics<parallel>], iteration_bounds = array<i64: 16>, scalar_prefetch = 0 : i64, scratch_operands = 0 : i64, tpu.core_type = #tpu.core_type<tc>, window_params = [{transform_indices = @transform_0, window_bounds = array<i64: 1, 80, 2>}, {pipeline_mode = #tpu.pipeline_mode<synchronous>, transform_indices = @transform_1, window_bounds = array<i64: 2, 8>}, {pipeline_mode = #tpu.pipeline_mode<synchronous>, transform_indices = @transform_2, window_bounds = array<i64: 1, 8>}, {transform_indices = @transform_3, window_bounds = array<i64: 1, 64, 4>}, {pipeline_mode = #tpu.pipeline_mode<synchronous>, transform_indices = @transform_4, window_bounds = array<i64: 4, 8>}, {pipeline_mode = #tpu.pipeline_mode<synchronous>, transform_indices = @transform_5, window_bounds = array<i64: 1, 8>}, {transform_indices = @transform_6, window_bounds = array<i64: 1, 64, 8>}]} {
    %c0 = arith.constant 0 : index
    %c0_0 = arith.constant 0 : index
    %c0_1 = arith.constant 0 : index
    %0 = vector.load %arg1[%c0, %c0_0, %c0_1] : memref<1x80x2xbf16, #tpu.memory_space<vmem>>, vector<1x80x2xbf16>
    %1 = vector.shape_cast %0 : vector<1x80x2xbf16> to vector<80x2xbf16>
    %c0_2 = arith.constant 0 : index
    %c0_3 = arith.constant 0 : index
    %2 = vector.load %arg2[%c0_2, %c0_3] : memref<2x8xbf16, #tpu.memory_space<vmem>>, vector<2x8xbf16>
    %cst = arith.constant dense<0.000000e+00> : vector<80x8xf32>
    %3 = tpu.matmul %1, %2, %cst {dimension_numbers = #tpu.dot_dimension_numbers<[1], [0], [0], [1], [0, 0, 1, 1], [], []>} : vector<80x2xbf16>, vector<2x8xbf16>, vector<80x8xf32> -> vector<80x8xf32>
    %c0_4 = arith.constant 0 : index
    %c0_5 = arith.constant 0 : index
    %4 = vector.load %arg3[%c0_4, %c0_5] : memref<1x8xf32, #tpu.memory_space<vmem>>, vector<1x8xf32>
    %5 = vector.broadcast %4 : vector<1x8xf32> to vector<80x8xf32>
    %6 = arith.addf %3, %5 : vector<80x8xf32>
    %c0_6 = arith.constant 0 : index
    %c0_7 = arith.constant 0 : index
    %c0_8 = arith.constant 0 : index
    %7 = vector.load %arg4[%c0_6, %c0_7, %c0_8] : memref<1x64x4xbf16, #tpu.memory_space<vmem>>, vector<1x64x4xbf16>
    %8 = vector.shape_cast %7 : vector<1x64x4xbf16> to vector<64x4xbf16>
    %c0_9 = arith.constant 0 : index
    %c0_10 = arith.constant 0 : index
    %9 = vector.load %arg5[%c0_9, %c0_10] : memref<4x8xbf16, #tpu.memory_space<vmem>>, vector<4x8xbf16>
    %cst_11 = arith.constant dense<0.000000e+00> : vector<64x8xf32>
    %10 = tpu.matmul %8, %9, %cst_11 {dimension_numbers = #tpu.dot_dimension_numbers<[1], [0], [0], [1], [0, 0, 1, 1], [], []>} : vector<64x4xbf16>, vector<4x8xbf16>, vector<64x8xf32> -> vector<64x8xf32>
    %c0_12 = arith.constant 0 : index
    %c0_13 = arith.constant 0 : index
    %11 = vector.load %arg6[%c0_12, %c0_13] : memref<1x8xf32, #tpu.memory_space<vmem>>, vector<1x8xf32>
    %12 = vector.broadcast %11 : vector<1x8xf32> to vector<64x8xf32>
    %13 = arith.addf %10, %12 : vector<64x8xf32>
    %14 = vector.extract_strided_slice %6 {offsets = [0, 0], sizes = [8, 8], strides = [1, 1]} : vector<80x8xf32> to vector<8x8xf32>
    %15 = vector.extract_strided_slice %13 {offsets = [0, 0], sizes = [8, 8], strides = [1, 1]} : vector<64x8xf32> to vector<8x8xf32>
    %16 = arith.addf %14, %15 : vector<8x8xf32>
    %cst_14 = arith.constant 0.000000e+00 : f32
    %17 = vector.broadcast %cst_14 : f32 to vector<8x8xf32>
    %18 = arith.maximumf %16, %17 : vector<8x8xf32>
    %c0_15 = arith.constant 0 : index
    %c0_16 = arith.constant 0 : index
    %c0_17 = arith.constant 0 : index
    %19 = vector.load %arg7[%c0_15, %c0_16, %c0_17] : memref<1x64x8xf32, #tpu.memory_space<vmem>>, vector<1x8x8xf32>
    %20 = vector.shape_cast %19 : vector<1x8x8xf32> to vector<8x8xf32>
    %21 = vector.shape_cast %18 : vector<8x8xf32> to vector<1x8x8xf32>
    tpu.vector_store %arg7[%c0_15, %c0_16, %c0_17], %21 {strides = array<i32>} : memref<1x64x8xf32, #tpu.memory_space<vmem>>, vector<1x8x8xf32>,
    %22 = vector.extract_strided_slice %6 {offsets = [10, 0], sizes = [8, 8], strides = [1, 1]} : vector<80x8xf32> to vector<8x8xf32>
    %23 = vector.extract_strided_slice %13 {offsets = [8, 0], sizes = [8, 8], strides = [1, 1]} : vector<64x8xf32> to vector<8x8xf32>
    %24 = arith.addf %22, %23 : vector<8x8xf32>
    %cst_18 = arith.constant 0.000000e+00 : f32
    %25 = vector.broadcast %cst_18 : f32 to vector<8x8xf32>
    %26 = arith.maximumf %24, %25 : vector<8x8xf32>
    %c0_19 = arith.constant 0 : index
    %c8 = arith.constant 8 : index
    %c0_20 = arith.constant 0 : index
    %27 = vector.load %arg7[%c0_19, %c8, %c0_20] : memref<1x64x8xf32, #tpu.memory_space<vmem>>, vector<1x8x8xf32>
    %28 = vector.shape_cast %27 : vector<1x8x8xf32> to vector<8x8xf32>
    %29 = vector.shape_cast %26 : vector<8x8xf32> to vector<1x8x8xf32>
    tpu.vector_store %arg7[%c0_19, %c8, %c0_20], %29 {strides = array<i32>} : memref<1x64x8xf32, #tpu.memory_space<vmem>>, vector<1x8x8xf32>,
    %30 = vector.extract_strided_slice %6 {offsets = [20, 0], sizes = [8, 8], strides = [1, 1]} : vector<80x8xf32> to vector<8x8xf32>
    %31 = vector.extract_strided_slice %13 {offsets = [16, 0], sizes = [8, 8], strides = [1, 1]} : vector<64x8xf32> to vector<8x8xf32>
    %32 = arith.addf %30, %31 : vector<8x8xf32>
    %cst_21 = arith.constant 0.000000e+00 : f32
    %33 = vector.broadcast %cst_21 : f32 to vector<8x8xf32>
    %34 = arith.maximumf %32, %33 : vector<8x8xf32>
    %c0_22 = arith.constant 0 : index
    %c16 = arith.constant 16 : index
    %c0_23 = arith.constant 0 : index
    %35 = vector.load %arg7[%c0_22, %c16, %c0_23] : memref<1x64x8xf32, #tpu.memory_space<vmem>>, vector<1x8x8xf32>
    %36 = vector.shape_cast %35 : vector<1x8x8xf32> to vector<8x8xf32>
    %37 = vector.shape_cast %34 : vector<8x8xf32> to vector<1x8x8xf32>
    tpu.vector_store %arg7[%c0_22, %c16, %c0_23], %37 {strides = array<i32>} : memref<1x64x8xf32, #tpu.memory_space<vmem>>, vector<1x8x8xf32>,
    %38 = vector.extract_strided_slice %6 {offsets = [30, 0], sizes = [8, 8], strides = [1, 1]} : vector<80x8xf32> to vector<8x8xf32>
    %39 = vector.extract_strided_slice %13 {offsets = [24, 0], sizes = [8, 8], strides = [1, 1]} : vector<64x8xf32> to vector<8x8xf32>
    %40 = arith.addf %38, %39 : vector<8x8xf32>
    %cst_24 = arith.constant 0.000000e+00 : f32
    %41 = vector.broadcast %cst_24 : f32 to vector<8x8xf32>
    %42 = arith.maximumf %40, %41 : vector<8x8xf32>
    %c0_25 = arith.constant 0 : index
    %c24 = arith.constant 24 : index
    %c0_26 = arith.constant 0 : index
    %43 = vector.load %arg7[%c0_25, %c24, %c0_26] : memref<1x64x8xf32, #tpu.memory_space<vmem>>, vector<1x8x8xf32>
    %44 = vector.shape_cast %43 : vector<1x8x8xf32> to vector<8x8xf32>
    %45 = vector.shape_cast %42 : vector<8x8xf32> to vector<1x8x8xf32>
    tpu.vector_store %arg7[%c0_25, %c24, %c0_26], %45 {strides = array<i32>} : memref<1x64x8xf32, #tpu.memory_space<vmem>>, vector<1x8x8xf32>,
    %46 = vector.extract_strided_slice %6 {offsets = [40, 0], sizes = [8, 8], strides = [1, 1]} : vector<80x8xf32> to vector<8x8xf32>
    %47 = vector.extract_strided_slice %13 {offsets = [32, 0], sizes = [8, 8], strides = [1, 1]} : vector<64x8xf32> to vector<8x8xf32>
    %48 = arith.addf %46, %47 : vector<8x8xf32>
    %cst_27 = arith.constant 0.000000e+00 : f32
    %49 = vector.broadcast %cst_27 : f32 to vector<8x8xf32>
    %50 = arith.maximumf %48, %49 : vector<8x8xf32>
    %c0_28 = arith.constant 0 : index
    %c32 = arith.constant 32 : index
    %c0_29 = arith.constant 0 : index
    %51 = vector.load %arg7[%c0_28, %c32, %c0_29] : memref<1x64x8xf32, #tpu.memory_space<vmem>>, vector<1x8x8xf32>
    %52 = vector.shape_cast %51 : vector<1x8x8xf32> to vector<8x8xf32>
    %53 = vector.shape_cast %50 : vector<8x8xf32> to vector<1x8x8xf32>
    tpu.vector_store %arg7[%c0_28, %c32, %c0_29], %53 {strides = array<i32>} : memref<1x64x8xf32, #tpu.memory_space<vmem>>, vector<1x8x8xf32>,
    %54 = vector.extract_strided_slice %6 {offsets = [50, 0], sizes = [8, 8], strides = [1, 1]} : vector<80x8xf32> to vector<8x8xf32>
    %55 = vector.extract_strided_slice %13 {offsets = [40, 0], sizes = [8, 8], strides = [1, 1]} : vector<64x8xf32> to vector<8x8xf32>
    %56 = arith.addf %54, %55 : vector<8x8xf32>
    %cst_30 = arith.constant 0.000000e+00 : f32
    %57 = vector.broadcast %cst_30 : f32 to vector<8x8xf32>
    %58 = arith.maximumf %56, %57 : vector<8x8xf32>
    %c0_31 = arith.constant 0 : index
    %c40 = arith.constant 40 : index
    %c0_32 = arith.constant 0 : index
    %59 = vector.load %arg7[%c0_31, %c40, %c0_32] : memref<1x64x8xf32, #tpu.memory_space<vmem>>, vector<1x8x8xf32>
    %60 = vector.shape_cast %59 : vector<1x8x8xf32> to vector<8x8xf32>
    %61 = vector.shape_cast %58 : vector<8x8xf32> to vector<1x8x8xf32>
    tpu.vector_store %arg7[%c0_31, %c40, %c0_32], %61 {strides = array<i32>} : memref<1x64x8xf32, #tpu.memory_space<vmem>>, vector<1x8x8xf32>,
    %62 = vector.extract_strided_slice %6 {offsets = [60, 0], sizes = [8, 8], strides = [1, 1]} : vector<80x8xf32> to vector<8x8xf32>
    %63 = vector.extract_strided_slice %13 {offsets = [48, 0], sizes = [8, 8], strides = [1, 1]} : vector<64x8xf32> to vector<8x8xf32>
    %64 = arith.addf %62, %63 : vector<8x8xf32>
    %cst_33 = arith.constant 0.000000e+00 : f32
    %65 = vector.broadcast %cst_33 : f32 to vector<8x8xf32>
    %66 = arith.maximumf %64, %65 : vector<8x8xf32>
    %c0_34 = arith.constant 0 : index
    %c48 = arith.constant 48 : index
    %c0_35 = arith.constant 0 : index
    %67 = vector.load %arg7[%c0_34, %c48, %c0_35] : memref<1x64x8xf32, #tpu.memory_space<vmem>>, vector<1x8x8xf32>
    %68 = vector.shape_cast %67 : vector<1x8x8xf32> to vector<8x8xf32>
    %69 = vector.shape_cast %66 : vector<8x8xf32> to vector<1x8x8xf32>
    tpu.vector_store %arg7[%c0_34, %c48, %c0_35], %69 {strides = array<i32>} : memref<1x64x8xf32, #tpu.memory_space<vmem>>, vector<1x8x8xf32>,
    %70 = vector.extract_strided_slice %6 {offsets = [70, 0], sizes = [8, 8], strides = [1, 1]} : vector<80x8xf32> to vector<8x8xf32>
    %71 = vector.extract_strided_slice %13 {offsets = [56, 0], sizes = [8, 8], strides = [1, 1]} : vector<64x8xf32> to vector<8x8xf32>
    %72 = arith.addf %70, %71 : vector<8x8xf32>
    %cst_36 = arith.constant 0.000000e+00 : f32
    %73 = vector.broadcast %cst_36 : f32 to vector<8x8xf32>
    %74 = arith.maximumf %72, %73 : vector<8x8xf32>
    %c0_37 = arith.constant 0 : index
    %c56 = arith.constant 56 : index
    %c0_38 = arith.constant 0 : index
    %75 = vector.load %arg7[%c0_37, %c56, %c0_38] : memref<1x64x8xf32, #tpu.memory_space<vmem>>, vector<1x8x8xf32>
    %76 = vector.shape_cast %75 : vector<1x8x8xf32> to vector<8x8xf32>
    %77 = vector.shape_cast %74 : vector<8x8xf32> to vector<1x8x8xf32>
    tpu.vector_store %arg7[%c0_37, %c56, %c0_38], %77 {strides = array<i32>} : memref<1x64x8xf32, #tpu.memory_space<vmem>>, vector<1x8x8xf32>,
    return
  }
  func.func @transform_0(%arg0: i32) -> (i32, i32, i32) {
    %c0_i32 = arith.constant 0 : i32
    %c0_i32_0 = arith.constant 0 : i32
    %c0_i32_1 = arith.constant 0 : i32
    return %arg0, %c0_i32, %c0_i32_0 : i32, i32, i32
  }
  func.func @transform_1(%arg0: i32) -> (i32, i32) {
    %c0_i32 = arith.constant 0 : i32
    %c0_i32_0 = arith.constant 0 : i32
    %c0_i32_1 = arith.constant 0 : i32
    return %c0_i32, %c0_i32_0 : i32, i32
  }
  func.func @transform_2(%arg0: i32) -> (i32, i32) {
    %c0_i32 = arith.constant 0 : i32
    %c0_i32_0 = arith.constant 0 : i32
    %c0_i32_1 = arith.constant 0 : i32
    return %c0_i32, %c0_i32_0 : i32, i32
  }
  func.func @transform_3(%arg0: i32) -> (i32, i32, i32) {
    %c0_i32 = arith.constant 0 : i32
    %c0_i32_0 = arith.constant 0 : i32
    %c0_i32_1 = arith.constant 0 : i32
    return %arg0, %c0_i32, %c0_i32_0 : i32, i32, i32
  }
  func.func @transform_4(%arg0: i32) -> (i32, i32) {
    %c0_i32 = arith.constant 0 : i32
    %c0_i32_0 = arith.constant 0 : i32
    %c0_i32_1 = arith.constant 0 : i32
    return %c0_i32, %c0_i32_0 : i32, i32
  }
  func.func @transform_5(%arg0: i32) -> (i32, i32) {
    %c0_i32 = arith.constant 0 : i32
    %c0_i32_0 = arith.constant 0 : i32
    %c0_i32_1 = arith.constant 0 : i32
    return %c0_i32, %c0_i32_0 : i32, i32
  }
  func.func @transform_6(%arg0: i32) -> (i32, i32, i32) {
    %c0_i32 = arith.constant 0 : i32
    %c0_i32_0 = arith.constant 0 : i32
    %c0_i32_1 = arith.constant 0 : i32
    return %arg0, %c0_i32, %c0_i32_0 : i32, i32, i32
  }
}

</mosaic_0001>

<bundles_post_ra>
// kernel: residual_unit3d_forward.3
= control target key start
LH: loop header
LB: loop body
LE: loop exit
PB: predicated region body
PF: predicated region fallthrough
CT: control target
= control target key end

     0   :  { %s1613_s12 = smov 0   ;;  %s1905_s0 = inlined_call_operand.vmem [shape: bf16[1024,4], index: 0, kind: input, shape index: {}]   ;;  %s1906_s1 = inlined_call_operand.vmem [shape: bf16[4,2], index: 1, kind: input, shape index: {}]   ;;  %s1907_s2 = inlined_call_operand.vmem [shape: f32[1,2], index: 2, kind: input, shape index: {}]   ;;  %s1908_s3 = inlined_call_operand.vmem [shape: bf16[1024,2], index: 3, kind: output, shape index: {}]  }
   0x1 LB: > { %s1238_s13 = sadd.s32 4294967295, %s1591_s12   ;;  %p1242_p0 = scmp.ge.s32.totalorder %s1591_s12, 1  ;;  %s1591_s12 = sphi %s1613_s12, %s13_s12  }
   0x2   : > { %p138_p1 = scmp.lt.s32.totalorder %s1591_s12, 3 }
   0x4   : > { %p139_p2 = pnand %p1242_p0, %p138_p1 }
   0x5   : > { %v239_v0 = vld [vmem:[%s1906_s1] sm:$0x3] (!%p139_p2)  ;;  %vm504_vm0 = vcmask (!%p139_p2), 1041408   ;;  %s1243_s16 = sshll.u32 (!%p139_p2), %s1238_s13, 6  ;;  %vm407_vm1 = vcmask (!%p139_p2), 31744   ;;  %vm1117_vm2 = vcmask (!%p139_p2), 11264  }
   0x6   : > { %142 = sbr.rel (%p139_p2) target bundleno = 297 (0x129), region = 32  ;;  %1543 = vmatprep.subr.msk.bf16.mxu0 (!%p139_p2), %vm504_vm0, %v239_v0  ;;  %1544 = vmatprep.subr.msk.bf16.mxu1 (!%p139_p2), %vm504_vm0, %v239_v0  ;;  %v506_v1 = vsel (!%p139_p2), %vm504_vm0, %v239_v0, 0  ;;  %p163_p3 = scmp.lt.s32.totalorder (!%p139_p2), %s1243_s16, 127  ;;  %v1701_v34 = vld [vmem:[%s1907_s2] ss:$0 sm:$0xff] (!%p139_p2) }
   0x7   : > { %1476 = vmatpush3.bf16.msra.mxu0 (!%p139_p2), %v506_v1  ;;  %1542 = vmatpush3.bf16.msra.mxu1 (!%p139_p2), %v506_v1 }
   0xd   : > { %s1910_s16 = smov (!%p163_p3, %s1243_s16), 127 }
   0xe   : > { %s1244_s17 = sshll.u32 %s1910_s16, 2 }
   0xf   : > { %s1632_s20 = scalar_lea.vmem %s1905_s0, %s1244_s17  ;;  %s1713_s25 = scalar_lea.vmem %s1908_s3, %s1244_s17 }
  0x10   : > { %v1553_v2 = vld [vmem:[%s1632_s20] sm:$0xff]   ;;  %v1555_v4 = vld [vmem:[%s1632_s20 + $0x8] sm:$0xff]   ;;  %v1557_v6 = vld [vmem:[%s1632_s20 + $0x10] sm:$0xff]  }
  0x11   : > { %v1554_v3 = vld [vmem:[%s1632_s20 + $0x80] sm:$0xff]   ;;  %1477 = vmatprep.mubr.msk.bf16.mxu0 %vm407_vm1, %v1553_v2  ;;  %v1556_v5 = vld [vmem:[%s1632_s20 + $0x88] sm:$0xff]   ;;  %v1558_v7 = vld [vmem:[%s1632_s20 + $0x90] sm:$0xff]  }
  0x12   : > { %1509 = vmatprep.mubr.msk.bf16.mxu1 %vm407_vm1, %v1554_v3  ;;  %1478 = vmatmul.mubr.msk.bf16.vlgmr.msra.gmra.mrb[0].mxu0 %vm407_vm1, %v1555_v4  ;;  %v1559_v8 = vld [vmem:[%s1632_s20 + $0x18] sm:$0xff]   ;;  %v1561_v10 = vld [vmem:[%s1632_s20 + $0x20] sm:$0xff]   ;;  %v1563_v12 = vld [vmem:[%s1632_s20 + $0x28] sm:$0xff]  }
  0x13   : > { %1510 = vmatmul.mubr.msk.bf16.vlgmr.msra.gmra.mrb[0].mxu1 %vm407_vm1, %v1556_v5  ;;  %1481 = vmatprep.mubr.msk.bf16.mxu0 %vm407_vm1, %v1557_v6  ;;  %v1560_v9 = vld [vmem:[%s1632_s20 + $0x98] sm:$0xff]   ;;  %v1562_v11 = vld [vmem:[%s1632_s20 + $0xa0] sm:$0xff]   ;;  %v1564_v13 = vld [vmem:[%s1632_s20 + $0xa8] sm:$0xff]  }
  0x14   : > { %1513 = vmatprep.mubr.msk.bf16.mxu1 %vm407_vm1, %v1558_v7  ;;  %v1565_v14 = vld [vmem:[%s1632_s20 + $0x30] sm:$0xff]   ;;  %v1567_v16 = vld [vmem:[%s1632_s20 + $0x38] sm:$0xff]   ;;  %v1569_v18 = vld [vmem:[%s1632_s20 + $0x40] sm:$0xff]  }
  0x15   : > { %v1566_v15 = vld [vmem:[%s1632_s20 + $0xb0] sm:$0xff]   ;;  %v1568_v17 = vld [vmem:[%s1632_s20 + $0xb8] sm:$0xff]   ;;  %v1570_v19 = vld [vmem:[%s1632_s20 + $0xc0] sm:$0xff]  }
  0x16   : > { %v1571_v20 = vld [vmem:[%s1632_s20 + $0x48] sm:$0xff]   ;;  %v1573_v22 = vld [vmem:[%s1632_s20 + $0x50] sm:$0xff]   ;;  %v1575_v24 = vld [vmem:[%s1632_s20 + $0x58] sm:$0xff]  }
  0x17   : > { %v1572_v21 = vld [vmem:[%s1632_s20 + $0xc8] sm:$0xff]   ;;  %v1574_v23 = vld [vmem:[%s1632_s20 + $0xd0] sm:$0xff]   ;;  %v1576_v25 = vld [vmem:[%s1632_s20 + $0xd8] sm:$0xff]  }
  0x18   : > { %v1577_v26 = vld [vmem:[%s1632_s20 + $0x60] sm:$0xff]   ;;  %v1579_v28 = vld [vmem:[%s1632_s20 + $0x68] sm:$0xff]   ;;  %v1581_v30 = vld [vmem:[%s1632_s20 + $0x70] sm:$0xff]  }
  0x19   : > { %v1578_v27 = vld [vmem:[%s1632_s20 + $0xe0] sm:$0xff]   ;;  %v1580_v29 = vld [vmem:[%s1632_s20 + $0xe8] sm:$0xff]   ;;  %v1582_v31 = vld [vmem:[%s1632_s20 + $0xf0] sm:$0xff]  }
  0x1a   : > { %1482 = vmatmul.mubr.msk.bf16.gmra.mrb[4].mxu0 %vm407_vm1, %v1559_v8  ;;  %v1583_v32 = vld [vmem:[%s1632_s20 + $0x78] sm:$0xff]  }
  0x1b   : > { %1514 = vmatmul.mubr.msk.bf16.gmra.mrb[4].mxu1 %vm407_vm1, %v1560_v9  ;;  %1485 = vmatprep.mubr.msk.bf16.mxu0 %vm407_vm1, %v1561_v10  ;;  %v1584_v33 = vld [vmem:[%s1632_s20 + $0xf8] sm:$0xff]  }
  0x1c   : > { %1517 = vmatprep.mubr.msk.bf16.mxu1 %vm407_vm1, %v1562_v11 }
  0x22   : > { %1486 = vmatmul.mubr.msk.bf16.gmra.mrb[8].mxu0 %vm407_vm1, %v1563_v12 }
  0x23   : > { %1518 = vmatmul.mubr.msk.bf16.gmra.mrb[8].mxu1 %vm407_vm1, %v1564_v13  ;;  %1489 = vmatprep.mubr.msk.bf16.mxu0 %vm407_vm1, %v1565_v14 }
  0x24   : > { %1521 = vmatprep.mubr.msk.bf16.mxu1 %vm407_vm1, %v1566_v15 }
  0x2a   : > { %1490 = vmatmul.mubr.msk.bf16.gmra.mrb[12].mxu0 %vm407_vm1, %v1567_v16 }
  0x2b   : > { %1522 = vmatmul.mubr.msk.bf16.gmra.mrb[12].mxu1 %vm407_vm1, %v1568_v17  ;;  %1493 = vmatprep.mubr.msk.bf16.mxu0 %vm407_vm1, %v1569_v18 }
  0x2c   : > { %1525 = vmatprep.mubr.msk.bf16.mxu1 %vm407_vm1, %v1570_v19 }
  0x32   : > { %1494 = vmatmul.mubr.msk.bf16.gmra.mrb[16].mxu0 %vm407_vm1, %v1571_v20 }
  0x33   : > { %1526 = vmatmul.mubr.msk.bf16.gmra.mrb[16].mxu1 %vm407_vm1, %v1572_v21  ;;  %1497 = vmatprep.mubr.msk.bf16.mxu0 %vm407_vm1, %v1573_v22 }
  0x34   : > { %1529 = vmatprep.mubr.msk.bf16.mxu1 %vm407_vm1, %v1574_v23 }
  0x3a   : > { %1498 = vmatmul.mubr.msk.bf16.gmra.mrb[20].mxu0 %vm407_vm1, %v1575_v24 }
  0x3b   : > { %1530 = vmatmul.mubr.msk.bf16.gmra.mrb[20].mxu1 %vm407_vm1, %v1576_v25  ;;  %1501 = vmatprep.mubr.msk.bf16.mxu0 %vm407_vm1, %v1577_v26 }
  0x3c   : > { %1533 = vmatprep.mubr.msk.bf16.mxu1 %vm407_vm1, %v1578_v27 }
  0x42   : > { %1502 = vmatmul.mubr.msk.bf16.gmra.mrb[24].mxu0 %vm407_vm1, %v1579_v28 }
  0x43   : > { %1534 = vmatmul.mubr.msk.bf16.gmra.mrb[24].mxu1 %vm407_vm1, %v1580_v29  ;;  %1505 = vmatprep.mubr.msk.bf16.mxu0 %vm407_vm1, %v1581_v30 }
  0x44   : > { %1537 = vmatprep.mubr.msk.bf16.mxu1 %vm407_vm1, %v1582_v31 }
  0x4a   : > { %1506 = vmatmul.mubr.msk.bf16.gmra.mrb[28].mxu0 %vm407_vm1, %v1583_v32 }
  0x4b   : > { %1538 = vmatmul.mubr.msk.bf16.gmra.mrb[28].mxu1 %vm407_vm1, %v1584_v33 }
  0xe5   : > { %v1479_v35 = vpop.f32.mrb[0].mxu0 }
  0xe6   : > { %v551_v36 = vadd.f32 %v1479_v35, %v1701_v34  ;;  %v1511_v37 = vpop.f32.mrb[0].mxu1  ;;  %v542_v38 = vpop.f32.mrb[1].mxu0 }
  0xe7   : > { %v679_v39 = vadd.f32 %v1511_v37, %v1701_v34  ;;  %v543_v40 = vadd.f32 %v1701_v34, %v542_v38  ;;  %v670_v41 = vpop.f32.mrb[1].mxu1  ;;  %v1480_v42 = vpop.f32.mrb[2].mxu0 }
  0xe8   : > { %v799_v43 = vmax.f32 %v551_v36, 0.0  ;;  %v671_v44 = vadd.f32 %v1701_v34, %v670_v41  ;;  %v554_v45 = vadd.f32 %v1480_v42, %v1701_v34  ;;  %v1512_v46 = vpop.f32.mrb[2].mxu1  ;;  %v545_v47 = vpop.f32.mrb[3].mxu0 }
  0xe9   : > { %v831_v48 = vmax.f32 %v679_v39, 0.0  ;;  %v797_v49 = vmax.f32 %v543_v40, 0.0  ;;  %v682_v50 = vadd.f32 %v1512_v46, %v1701_v34  ;;  %v546_v51 = vadd.f32 %v1701_v34, %v545_v47  ;;  %v673_v52 = vpop.f32.mrb[3].mxu1 }
  0xea   : > { %v1380_v53 = vpack.c.bf16 %v799_v43, %v799_v43  ;;  %v829_v54 = vmax.f32 %v671_v44, 0.0  ;;  %v800_v55 = vmax.f32 %v554_v45, 0.0  ;;  %v674_v56 = vadd.f32 %v1701_v34, %v673_v52 }
  0xeb   : > { %v1412_v57 = vpack.c.bf16 %v831_v48, %v831_v48  ;;  %v1378_v58 = vpack.c.bf16 %v797_v49, %v797_v49  ;;  %v832_v59 = vmax.f32 %v682_v50, 0.0  ;;  %v798_v60 = vmax.f32 %v546_v51, 0.0 }
  0xec   : > { %1120 = vst.msk [vmem:[%s1713_s25 + $0x8] sm:$0xf] %vm1117_vm2, %v1380_v53  ;;  %v1410_v61 = vpack.c.bf16 %v829_v54, %v829_v54  ;;  %v1381_v62 = vpack.c.bf16 %v800_v55, %v800_v55  ;;  %v830_v63 = vmax.f32 %v674_v56, 0.0 }
  0xed   : > { %1152 = vst.msk [vmem:[%s1713_s25 + $0x88] sm:$0xf] %vm1117_vm2, %v1412_v57  ;;  %1118 = vst.msk [vmem:[%s1713_s25] sm:$0xf] %vm1117_vm2, %v1378_v58  ;;  %v1413_v0 = vpack.c.bf16 %v832_v59, %v832_v59  ;;  %v1379_v1 = vpack.c.bf16 %v798_v60, %v798_v60  ;;  %v1483_v2 = vpop.f32.mrb[4].mxu0 }
  0xee   : > { %1150 = vst.msk [vmem:[%s1713_s25 + $0x80] sm:$0xf] %vm1117_vm2, %v1410_v61  ;;  %1121 = vst.msk [vmem:[%s1713_s25 + $0xc] sm:$0xf] %vm1117_vm2, %v1381_v62  ;;  %v1411_v3 = vpack.c.bf16 %v830_v63, %v830_v63  ;;  %v567_v4 = vadd.f32 %v1483_v2, %v1701_v34  ;;  %v1515_v5 = vpop.f32.mrb[4].mxu1  ;;  %v558_v6 = vpop.f32.mrb[5].mxu0 }
  0xef   : > { %1153 = vst.msk [vmem:[%s1713_s25 + $0x8c] sm:$0xf] %vm1117_vm2, %v1413_v0  ;;  %1119 = vst.msk [vmem:[%s1713_s25 + $0x4] sm:$0xf] %vm1117_vm2, %v1379_v1  ;;  %v695_v7 = vadd.f32 %v1515_v5, %v1701_v34  ;;  %v559_v8 = vadd.f32 %v1701_v34, %v558_v6  ;;  %v686_v9 = vpop.f32.mrb[5].mxu1  ;;  %v1484_v10 = vpop.f32.mrb[6].mxu0 }
  0xf0   : > { %1151 = vst.msk [vmem:[%s1713_s25 + $0x84] sm:$0xf] %vm1117_vm2, %v1411_v3  ;;  %v803_v11 = vmax.f32 %v567_v4, 0.0  ;;  %v687_v12 = vadd.f32 %v1701_v34, %v686_v9  ;;  %v570_v13 = vadd.f32 %v1484_v10, %v1701_v34  ;;  %v1516_v14 = vpop.f32.mrb[6].mxu1  ;;  %v561_v15 = vpop.f32.mrb[7].mxu0 }
  0xf1   : > { %v835_v16 = vmax.f32 %v695_v7, 0.0  ;;  %v801_v17 = vmax.f32 %v559_v8, 0.0  ;;  %v698_v18 = vadd.f32 %v1516_v14, %v1701_v34  ;;  %v562_v19 = vadd.f32 %v1701_v34, %v561_v15  ;;  %v689_v20 = vpop.f32.mrb[7].mxu1 }
  0xf2   : > { %v1384_v21 = vpack.c.bf16 %v803_v11, %v803_v11  ;;  %v833_v22 = vmax.f32 %v687_v12, 0.0  ;;  %v804_v23 = vmax.f32 %v570_v13, 0.0  ;;  %v690_v24 = vadd.f32 %v1701_v34, %v689_v20 }
  0xf3   : > { %v1416_v25 = vpack.c.bf16 %v835_v16, %v835_v16  ;;  %v1382_v26 = vpack.c.bf16 %v801_v17, %v801_v17  ;;  %v836_v27 = vmax.f32 %v698_v18, 0.0  ;;  %v802_v28 = vmax.f32 %v562_v19, 0.0 }
  0xf4   : > { %1124 = vst.msk [vmem:[%s1713_s25 + $0x18] sm:$0xf] %vm1117_vm2, %v1384_v21  ;;  %v1414_v29 = vpack.c.bf16 %v833_v22, %v833_v22  ;;  %v1385_v30 = vpack.c.bf16 %v804_v23, %v804_v23  ;;  %v834_v31 = vmax.f32 %v690_v24, 0.0 }
  0xf5   : > { %1156 = vst.msk [vmem:[%s1713_s25 + $0x98] sm:$0xf] %vm1117_vm2, %v1416_v25  ;;  %1122 = vst.msk [vmem:[%s1713_s25 + $0x10] sm:$0xf] %vm1117_vm2, %v1382_v26  ;;  %v1417_v32 = vpack.c.bf16 %v836_v27, %v836_v27  ;;  %v1383_v33 = vpack.c.bf16 %v802_v28, %v802_v28  ;;  %v1487_v35 = vpop.f32.mrb[8].mxu0 }
  0xf6   : > { %1154 = vst.msk [vmem:[%s1713_s25 + $0x90] sm:$0xf] %vm1117_vm2, %v1414_v29  ;;  %1125 = vst.msk [vmem:[%s1713_s25 + $0x1c] sm:$0xf] %vm1117_vm2, %v1385_v30  ;;  %v1415_v36 = vpack.c.bf16 %v834_v31, %v834_v31  ;;  %v583_v37 = vadd.f32 %v1487_v35, %v1701_v34  ;;  %v1519_v38 = vpop.f32.mrb[8].mxu1  ;;  %v574_v39 = vpop.f32.mrb[9].mxu0 }
  0xf7   : > { %1157 = vst.msk [vmem:[%s1713_s25 + $0x9c] sm:$0xf] %vm1117_vm2, %v1417_v32  ;;  %1123 = vst.msk [vmem:[%s1713_s25 + $0x14] sm:$0xf] %vm1117_vm2, %v1383_v33  ;;  %v711_v40 = vadd.f32 %v1519_v38, %v1701_v34  ;;  %v575_v41 = vadd.f32 %v1701_v34, %v574_v39  ;;  %v702_v42 = vpop.f32.mrb[9].mxu1  ;;  %v1488_v43 = vpop.f32.mrb[10].mxu0 }
  0xf8   : > { %1155 = vst.msk [vmem:[%s1713_s25 + $0x94] sm:$0xf] %vm1117_vm2, %v1415_v36  ;;  %v807_v44 = vmax.f32 %v583_v37, 0.0  ;;  %v703_v45 = vadd.f32 %v1701_v34, %v702_v42  ;;  %v586_v46 = vadd.f32 %v1488_v43, %v1701_v34  ;;  %v1520_v47 = vpop.f32.mrb[10].mxu1  ;;  %v577_v48 = vpop.f32.mrb[11].mxu0 }
  0xf9   : > { %v839_v49 = vmax.f32 %v711_v40, 0.0  ;;  %v805_v50 = vmax.f32 %v575_v41, 0.0  ;;  %v714_v51 = vadd.f32 %v1520_v47, %v1701_v34  ;;  %v578_v52 = vadd.f32 %v1701_v34, %v577_v48  ;;  %v705_v53 = vpop.f32.mrb[11].mxu1 }
  0xfa   : > { %v1388_v54 = vpack.c.bf16 %v807_v44, %v807_v44  ;;  %v837_v55 = vmax.f32 %v703_v45, 0.0  ;;  %v808_v56 = vmax.f32 %v586_v46, 0.0  ;;  %v706_v57 = vadd.f32 %v1701_v34, %v705_v53 }
  0xfb   : > { %v1420_v58 = vpack.c.bf16 %v839_v49, %v839_v49  ;;  %v1386_v59 = vpack.c.bf16 %v805_v50, %v805_v50  ;;  %v840_v60 = vmax.f32 %v714_v51, 0.0  ;;  %v806_v61 = vmax.f32 %v578_v52, 0.0 }
  0xfc   : > { %1128 = vst.msk [vmem:[%s1713_s25 + $0x28] sm:$0xf] %vm1117_vm2, %v1388_v54  ;;  %v1418_v62 = vpack.c.bf16 %v837_v55, %v837_v55  ;;  %v1389_v63 = vpack.c.bf16 %v808_v56, %v808_v56  ;;  %v838_v0 = vmax.f32 %v706_v57, 0.0 }
  0xfd   : > { %1160 = vst.msk [vmem:[%s1713_s25 + $0xa8] sm:$0xf] %vm1117_vm2, %v1420_v58  ;;  %1126 = vst.msk [vmem:[%s1713_s25 + $0x20] sm:$0xf] %vm1117_vm2, %v1386_v59  ;;  %v1421_v1 = vpack.c.bf16 %v840_v60, %v840_v60  ;;  %v1387_v2 = vpack.c.bf16 %v806_v61, %v806_v61  ;;  %v1491_v3 = vpop.f32.mrb[12].mxu0 }
  0xfe   : > { %1158 = vst.msk [vmem:[%s1713_s25 + $0xa0] sm:$0xf] %vm1117_vm2, %v1418_v62  ;;  %1129 = vst.msk [vmem:[%s1713_s25 + $0x2c] sm:$0xf] %vm1117_vm2, %v1389_v63  ;;  %v1419_v4 = vpack.c.bf16 %v838_v0, %v838_v0  ;;  %v599_v5 = vadd.f32 %v1491_v3, %v1701_v34  ;;  %v1523_v6 = vpop.f32.mrb[12].mxu1  ;;  %v590_v7 = vpop.f32.mrb[13].mxu0 }
  0xff   : > { %1161 = vst.msk [vmem:[%s1713_s25 + $0xac] sm:$0xf] %vm1117_vm2, %v1421_v1  ;;  %1127 = vst.msk [vmem:[%s1713_s25 + $0x24] sm:$0xf] %vm1117_vm2, %v1387_v2  ;;  %v727_v8 = vadd.f32 %v1523_v6, %v1701_v34  ;;  %v591_v9 = vadd.f32 %v1701_v34, %v590_v7  ;;  %v718_v10 = vpop.f32.mrb[13].mxu1  ;;  %v1492_v11 = vpop.f32.mrb[14].mxu0 }
 0x100   : > { %1159 = vst.msk [vmem:[%s1713_s25 + $0xa4] sm:$0xf] %vm1117_vm2, %v1419_v4  ;;  %v811_v12 = vmax.f32 %v599_v5, 0.0  ;;  %v719_v13 = vadd.f32 %v1701_v34, %v718_v10  ;;  %v602_v14 = vadd.f32 %v1492_v11, %v1701_v34  ;;  %v1524_v15 = vpop.f32.mrb[14].mxu1  ;;  %v593_v16 = vpop.f32.mrb[15].mxu0 }
 0x101   : > { %v843_v17 = vmax.f32 %v727_v8, 0.0  ;;  %v809_v18 = vmax.f32 %v591_v9, 0.0  ;;  %v730_v19 = vadd.f32 %v1524_v15, %v1701_v34  ;;  %v594_v20 = vadd.f32 %v1701_v34, %v593_v16  ;;  %v721_v21 = vpop.f32.mrb[15].mxu1 }
 0x102   : > { %v1392_v22 = vpack.c.bf16 %v811_v12, %v811_v12  ;;  %v841_v23 = vmax.f32 %v719_v13, 0.0  ;;  %v812_v24 = vmax.f32 %v602_v14, 0.0  ;;  %v722_v25 = vadd.f32 %v1701_v34, %v721_v21 }
 0x103   : > { %v1424_v26 = vpack.c.bf16 %v843_v17, %v843_v17  ;;  %v1390_v27 = vpack.c.bf16 %v809_v18, %v809_v18  ;;  %v844_v28 = vmax.f32 %v730_v19, 0.0  ;;  %v810_v29 = vmax.f32 %v594_v20, 0.0 }
 0x104   : > { %1132 = vst.msk [vmem:[%s1713_s25 + $0x38] sm:$0xf] %vm1117_vm2, %v1392_v22  ;;  %v1422_v30 = vpack.c.bf16 %v841_v23, %v841_v23  ;;  %v1393_v31 = vpack.c.bf16 %v812_v24, %v812_v24  ;;  %v842_v32 = vmax.f32 %v722_v25, 0.0 }
 0x105   : > { %1164 = vst.msk [vmem:[%s1713_s25 + $0xb8] sm:$0xf] %vm1117_vm2, %v1424_v26  ;;  %1130 = vst.msk [vmem:[%s1713_s25 + $0x30] sm:$0xf] %vm1117_vm2, %v1390_v27  ;;  %v1425_v33 = vpack.c.bf16 %v844_v28, %v844_v28  ;;  %v1391_v35 = vpack.c.bf16 %v810_v29, %v810_v29  ;;  %v1495_v36 = vpop.f32.mrb[16].mxu0 }
 0x106   : > { %1162 = vst.msk [vmem:[%s1713_s25 + $0xb0] sm:$0xf] %vm1117_vm2, %v1422_v30  ;;  %1133 = vst.msk [vmem:[%s1713_s25 + $0x3c] sm:$0xf] %vm1117_vm2, %v1393_v31  ;;  %v1423_v37 = vpack.c.bf16 %v842_v32, %v842_v32  ;;  %v615_v38 = vadd.f32 %v1495_v36, %v1701_v34  ;;  %v1527_v39 = vpop.f32.mrb[16].mxu1  ;;  %v606_v40 = vpop.f32.mrb[17].mxu0 }
 0x107   : > { %1165 = vst.msk [vmem:[%s1713_s25 + $0xbc] sm:$0xf] %vm1117_vm2, %v1425_v33  ;;  %1131 = vst.msk [vmem:[%s1713_s25 + $0x34] sm:$0xf] %vm1117_vm2, %v1391_v35  ;;  %v743_v41 = vadd.f32 %v1527_v39, %v1701_v34  ;;  %v607_v42 = vadd.f32 %v1701_v34, %v606_v40  ;;  %v734_v43 = vpop.f32.mrb[17].mxu1  ;;  %v1496_v44 = vpop.f32.mrb[18].mxu0 }
 0x108   : > { %1163 = vst.msk [vmem:[%s1713_s25 + $0xb4] sm:$0xf] %vm1117_vm2, %v1423_v37  ;;  %v815_v45 = vmax.f32 %v615_v38, 0.0  ;;  %v735_v46 = vadd.f32 %v1701_v34, %v734_v43  ;;  %v618_v47 = vadd.f32 %v1496_v44, %v1701_v34  ;;  %v1528_v48 = vpop.f32.mrb[18].mxu1  ;;  %v609_v49 = vpop.f32.mrb[19].mxu0 }
 0x109   : > { %v847_v50 = vmax.f32 %v743_v41, 0.0  ;;  %v813_v51 = vmax.f32 %v607_v42, 0.0  ;;  %v746_v52 = vadd.f32 %v1528_v48, %v1701_v34  ;;  %v610_v53 = vadd.f32 %v1701_v34, %v609_v49  ;;  %v737_v54 = vpop.f32.mrb[19].mxu1 }
 0x10a   : > { %v1396_v55 = vpack.c.bf16 %v815_v45, %v815_v45  ;;  %v845_v56 = vmax.f32 %v735_v46, 0.0  ;;  %v816_v57 = vmax.f32 %v618_v47, 0.0  ;;  %v738_v58 = vadd.f32 %v1701_v34, %v737_v54 }
 0x10b   : > { %v1428_v59 = vpack.c.bf16 %v847_v50, %v847_v50  ;;  %v1394_v60 = vpack.c.bf16 %v813_v51, %v813_v51  ;;  %v848_v61 = vmax.f32 %v746_v52, 0.0  ;;  %v814_v62 = vmax.f32 %v610_v53, 0.0 }
 0x10c   : > { %1136 = vst.msk [vmem:[%s1713_s25 + $0x48] sm:$0xf] %vm1117_vm2, %v1396_v55  ;;  %v1426_v63 = vpack.c.bf16 %v845_v56, %v845_v56  ;;  %v1397_v0 = vpack.c.bf16 %v816_v57, %v816_v57  ;;  %v846_v1 = vmax.f32 %v738_v58, 0.0 }
 0x10d   : > { %1168 = vst.msk [vmem:[%s1713_s25 + $0xc8] sm:$0xf] %vm1117_vm2, %v1428_v59  ;;  %1134 = vst.msk [vmem:[%s1713_s25 + $0x40] sm:$0xf] %vm1117_vm2, %v1394_v60  ;;  %v1429_v2 = vpack.c.bf16 %v848_v61, %v848_v61  ;;  %v1395_v3 = vpack.c.bf16 %v814_v62, %v814_v62  ;;  %v1499_v4 = vpop.f32.mrb[20].mxu0 }
 0x10e   : > { %1166 = vst.msk [vmem:[%s1713_s25 + $0xc0] sm:$0xf] %vm1117_vm2, %v1426_v63  ;;  %1137 = vst.msk [vmem:[%s1713_s25 + $0x4c] sm:$0xf] %vm1117_vm2, %v1397_v0  ;;  %v1427_v5 = vpack.c.bf16 %v846_v1, %v846_v1  ;;  %v631_v6 = vadd.f32 %v1499_v4, %v1701_v34  ;;  %v1531_v7 = vpop.f32.mrb[20].mxu1  ;;  %v622_v8 = vpop.f32.mrb[21].mxu0 }
 0x10f   : > { %1169 = vst.msk [vmem:[%s1713_s25 + $0xcc] sm:$0xf] %vm1117_vm2, %v1429_v2  ;;  %1135 = vst.msk [vmem:[%s1713_s25 + $0x44] sm:$0xf] %vm1117_vm2, %v1395_v3  ;;  %v759_v9 = vadd.f32 %v1531_v7, %v1701_v34  ;;  %v623_v10 = vadd.f32 %v1701_v34, %v622_v8  ;;  %v750_v11 = vpop.f32.mrb[21].mxu1  ;;  %v1500_v12 = vpop.f32.mrb[22].mxu0 }
 0x110   : > { %1167 = vst.msk [vmem:[%s1713_s25 + $0xc4] sm:$0xf] %vm1117_vm2, %v1427_v5  ;;  %v819_v13 = vmax.f32 %v631_v6, 0.0  ;;  %v751_v14 = vadd.f32 %v1701_v34, %v750_v11  ;;  %v634_v15 = vadd.f32 %v1500_v12, %v1701_v34  ;;  %v1532_v16 = vpop.f32.mrb[22].mxu1  ;;  %v625_v17 = vpop.f32.mrb[23].mxu0 }
 0x111   : > { %v851_v18 = vmax.f32 %v759_v9, 0.0  ;;  %v817_v19 = vmax.f32 %v623_v10, 0.0  ;;  %v762_v20 = vadd.f32 %v1532_v16, %v1701_v34  ;;  %v626_v21 = vadd.f32 %v1701_v34, %v625_v17  ;;  %v753_v22 = vpop.f32.mrb[23].mxu1 }
 0x112   : > { %v1400_v23 = vpack.c.bf16 %v819_v13, %v819_v13  ;;  %v849_v24 = vmax.f32 %v751_v14, 0.0  ;;  %v820_v25 = vmax.f32 %v634_v15, 0.0  ;;  %v754_v26 = vadd.f32 %v1701_v34, %v753_v22 }
 0x113   : > { %v1432_v27 = vpack.c.bf16 %v851_v18, %v851_v18  ;;  %v1398_v28 = vpack.c.bf16 %v817_v19, %v817_v19  ;;  %v852_v29 = vmax.f32 %v762_v20, 0.0  ;;  %v818_v30 = vmax.f32 %v626_v21, 0.0 }
 0x114   : > { %1140 = vst.msk [vmem:[%s1713_s25 + $0x58] sm:$0xf] %vm1117_vm2, %v1400_v23  ;;  %v1430_v31 = vpack.c.bf16 %v849_v24, %v849_v24  ;;  %v1401_v32 = vpack.c.bf16 %v820_v25, %v820_v25  ;;  %v850_v33 = vmax.f32 %v754_v26, 0.0 }
 0x115   : > { %1172 = vst.msk [vmem:[%s1713_s25 + $0xd8] sm:$0xf] %vm1117_vm2, %v1432_v27  ;;  %1138 = vst.msk [vmem:[%s1713_s25 + $0x50] sm:$0xf] %vm1117_vm2, %v1398_v28  ;;  %v1433_v35 = vpack.c.bf16 %v852_v29, %v852_v29  ;;  %v1399_v36 = vpack.c.bf16 %v818_v30, %v818_v30  ;;  %v1503_v37 = vpop.f32.mrb[24].mxu0 }
 0x116   : > { %1170 = vst.msk [vmem:[%s1713_s25 + $0xd0] sm:$0xf] %vm1117_vm2, %v1430_v31  ;;  %1141 = vst.msk [vmem:[%s1713_s25 + $0x5c] sm:$0xf] %vm1117_vm2, %v1401_v32  ;;  %v1431_v38 = vpack.c.bf16 %v850_v33, %v850_v33  ;;  %v647_v39 = vadd.f32 %v1503_v37, %v1701_v34  ;;  %v1535_v40 = vpop.f32.mrb[24].mxu1  ;;  %v638_v41 = vpop.f32.mrb[25].mxu0 }
 0x117   : > { %1173 = vst.msk [vmem:[%s1713_s25 + $0xdc] sm:$0xf] %vm1117_vm2, %v1433_v35  ;;  %1139 = vst.msk [vmem:[%s1713_s25 + $0x54] sm:$0xf] %vm1117_vm2, %v1399_v36  ;;  %v775_v42 = vadd.f32 %v1535_v40, %v1701_v34  ;;  %v639_v43 = vadd.f32 %v1701_v34, %v638_v41  ;;  %v766_v44 = vpop.f32.mrb[25].mxu1  ;;  %v1504_v45 = vpop.f32.mrb[26].mxu0 }
 0x118   : > { %1171 = vst.msk [vmem:[%s1713_s25 + $0xd4] sm:$0xf] %vm1117_vm2, %v1431_v38  ;;  %v823_v46 = vmax.f32 %v647_v39, 0.0  ;;  %v767_v47 = vadd.f32 %v1701_v34, %v766_v44  ;;  %v650_v48 = vadd.f32 %v1504_v45, %v1701_v34  ;;  %v1536_v49 = vpop.f32.mrb[26].mxu1  ;;  %v641_v50 = vpop.f32.mrb[27].mxu0 }
 0x119   : > { %v855_v51 = vmax.f32 %v775_v42, 0.0  ;;  %v821_v52 = vmax.f32 %v639_v43, 0.0  ;;  %v778_v53 = vadd.f32 %v1536_v49, %v1701_v34  ;;  %v642_v54 = vadd.f32 %v1701_v34, %v641_v50  ;;  %v769_v55 = vpop.f32.mrb[27].mxu1 }
 0x11a   : > { %v1404_v56 = vpack.c.bf16 %v823_v46, %v823_v46  ;;  %v853_v57 = vmax.f32 %v767_v47, 0.0  ;;  %v824_v58 = vmax.f32 %v650_v48, 0.0  ;;  %v770_v59 = vadd.f32 %v1701_v34, %v769_v55 }
 0x11b   : > { %v1436_v60 = vpack.c.bf16 %v855_v51, %v855_v51  ;;  %v1402_v61 = vpack.c.bf16 %v821_v52, %v821_v52  ;;  %v856_v62 = vmax.f32 %v778_v53, 0.0  ;;  %v822_v63 = vmax.f32 %v642_v54, 0.0 }
 0x11c   : > { %1144 = vst.msk [vmem:[%s1713_s25 + $0x68] sm:$0xf] %vm1117_vm2, %v1404_v56  ;;  %v1434_v0 = vpack.c.bf16 %v853_v57, %v853_v57  ;;  %v1405_v1 = vpack.c.bf16 %v824_v58, %v824_v58  ;;  %v854_v2 = vmax.f32 %v770_v59, 0.0 }
 0x11d   : > { %1176 = vst.msk [vmem:[%s1713_s25 + $0xe8] sm:$0xf] %vm1117_vm2, %v1436_v60  ;;  %1142 = vst.msk [vmem:[%s1713_s25 + $0x60] sm:$0xf] %vm1117_vm2, %v1402_v61  ;;  %v1437_v3 = vpack.c.bf16 %v856_v62, %v856_v62  ;;  %v1403_v4 = vpack.c.bf16 %v822_v63, %v822_v63  ;;  %v1507_v5 = vpop.f32.mrb[28].mxu0 }
 0x11e   : > { %1174 = vst.msk [vmem:[%s1713_s25 + $0xe0] sm:$0xf] %vm1117_vm2, %v1434_v0  ;;  %1145 = vst.msk [vmem:[%s1713_s25 + $0x6c] sm:$0xf] %vm1117_vm2, %v1405_v1  ;;  %v1435_v6 = vpack.c.bf16 %v854_v2, %v854_v2  ;;  %v663_v7 = vadd.f32 %v1507_v5, %v1701_v34  ;;  %v1539_v8 = vpop.f32.mrb[28].mxu1  ;;  %v654_v9 = vpop.f32.mrb[29].mxu0 }
 0x11f   : > { %1177 = vst.msk [vmem:[%s1713_s25 + $0xec] sm:$0xf] %vm1117_vm2, %v1437_v3  ;;  %1143 = vst.msk [vmem:[%s1713_s25 + $0x64] sm:$0xf] %vm1117_vm2, %v1403_v4  ;;  %v791_v10 = vadd.f32 %v1539_v8, %v1701_v34  ;;  %v655_v11 = vadd.f32 %v1701_v34, %v654_v9  ;;  %v782_v12 = vpop.f32.mrb[29].mxu1  ;;  %v1508_v13 = vpop.f32.mrb[30].mxu0 }
 0x120   : > { %1175 = vst.msk [vmem:[%s1713_s25 + $0xe4] sm:$0xf] %vm1117_vm2, %v1435_v6  ;;  %v827_v14 = vmax.f32 %v663_v7, 0.0  ;;  %v783_v15 = vadd.f32 %v1701_v34, %v782_v12  ;;  %v666_v16 = vadd.f32 %v1508_v13, %v1701_v34  ;;  %v1540_v17 = vpop.f32.mrb[30].mxu1  ;;  %v657_v18 = vpop.f32.mrb[31].mxu0 }
 0x121   : > { %v859_v19 = vmax.f32 %v791_v10, 0.0  ;;  %v825_v20 = vmax.f32 %v655_v11, 0.0  ;;  %v794_v21 = vadd.f32 %v1540_v17, %v1701_v34  ;;  %v658_v22 = vadd.f32 %v1701_v34, %v657_v18  ;;  %v785_v23 = vpop.f32.mrb[31].mxu1 }
 0x122   : > { %v1408_v24 = vpack.c.bf16 %v827_v14, %v827_v14  ;;  %v857_v25 = vmax.f32 %v783_v15, 0.0  ;;  %v828_v26 = vmax.f32 %v666_v16, 0.0  ;;  %v786_v27 = vadd.f32 %v1701_v34, %v785_v23 }
 0x123   : > { %v1440_v28 = vpack.c.bf16 %v859_v19, %v859_v19  ;;  %v1406_v29 = vpack.c.bf16 %v825_v20, %v825_v20  ;;  %v860_v30 = vmax.f32 %v794_v21, 0.0  ;;  %v826_v31 = vmax.f32 %v658_v22, 0.0 }
 0x124   : > { %1148 = vst.msk [vmem:[%s1713_s25 + $0x78] sm:$0xf] %vm1117_vm2, %v1408_v24  ;;  %v1438_v32 = vpack.c.bf16 %v857_v25, %v857_v25  ;;  %v1409_v33 = vpack.c.bf16 %v828_v26, %v828_v26  ;;  %v858_v35 = vmax.f32 %v786_v27, 0.0 }
 0x125   : > { %1180 = vst.msk [vmem:[%s1713_s25 + $0xf8] sm:$0xf] %vm1117_vm2, %v1440_v28  ;;  %1146 = vst.msk [vmem:[%s1713_s25 + $0x70] sm:$0xf] %vm1117_vm2, %v1406_v29  ;;  %v1441_v36 = vpack.c.bf16 %v860_v30, %v860_v30  ;;  %v1407_v37 = vpack.c.bf16 %v826_v31, %v826_v31 }
 0x126   : > { %1178 = vst.msk [vmem:[%s1713_s25 + $0xf0] sm:$0xf] %vm1117_vm2, %v1438_v32  ;;  %1149 = vst.msk [vmem:[%s1713_s25 + $0x7c] sm:$0xf] %vm1117_vm2, %v1409_v33  ;;  %v1439_v34 = vpack.c.bf16 %v858_v35, %v858_v35 }
 0x127   : > { %1181 = vst.msk [vmem:[%s1713_s25 + $0xfc] sm:$0xf] %vm1117_vm2, %v1441_v36  ;;  %1147 = vst.msk [vmem:[%s1713_s25 + $0x74] sm:$0xf] %vm1117_vm2, %v1407_v37 }
 0x128   : > { %1179 = vst.msk [vmem:[%s1713_s25 + $0xf4] sm:$0xf] %vm1117_vm2, %v1439_v34 }
 0x129 PF: > { %s13_s12 = sadd.s32 1, %s1591_s12  }
 0x12a   : > { %p10_p4 = scmp.ge.s32.totalorder %s13_s12, 4  }
 0x12c   :  { %12 = sbr.rel (!%p10_p4) target bundleno = 1 (0x1), region = 62 }

// kernel: residual_unit3d_forward.5
= control target key start
LH: loop header
LB: loop body
LE: loop exit
PB: predicated region body
PF: predicated region fallthrough
CT: control target
= control target key end

     0   :  { %s806_s21 = smov 0   ;;  %s914_s0 = inlined_call_operand.vmem [shape: bf16[16,80,2], index: 0, kind: input, shape index: {}]   ;;  %s915_s1 = inlined_call_operand.vmem [shape: bf16[2,8], index: 1, kind: input, shape index: {}]   ;;  %s916_s2 = inlined_call_operand.vmem [shape: f32[1,8], index: 2, kind: input, shape index: {}]   ;;  %s917_s3 = inlined_call_operand.vmem [shape: bf16[16,64,4], index: 3, kind: input, shape index: {}]   ;;  %s918_s4 = inlined_call_operand.vmem [shape: bf16[4,8], index: 4, kind: input, shape index: {}]   ;;  %s919_s5 = inlined_call_operand.vmem [shape: f32[1,8], index: 5, kind: input, shape index: {}]   ;;  %s920_s6 = inlined_call_operand.vmem [shape: f32[16,64,8], index: 6, kind: output, shape index: {}]  }
   0x1 LB: > { %s661_s22 = sadd.s32 4294967295, %s767_s21   ;;  %p665_p0 = scmp.ge.s32.totalorder %s767_s21, 1  ;;  %s767_s21 = sphi %s806_s21, %s16_s21  }
   0x2   : > { %p222_p1 = scmp.lt.s32.totalorder %s767_s21, 17 }
   0x4   : > { %p223_p2 = pnand %p665_p0, %p222_p1 }
   0x5   : > { %v283_v0 = vld [vmem:[%s915_s1] sm:$0x1] (!%p223_p2)  ;;  %vm332_vm0 = vcmask (!%p223_p2), 1040384   ;;  %p257_p3 = scmp.lt.s32.totalorder (!%p223_p2), %s661_s22, 15  ;;  %v769_v1 = vmov (!%p223_p2), 0.0   ;;  %vm458_vm1 = vcmask (!%p223_p2), 1041408  }
   0x6   : > { %226 = sbr.rel (%p223_p2) target bundleno = 264 (0x108), region = 44  ;;  %706 = vmatprep.subr.bf16.mxu0 (!%p223_p2), %v769_v1  ;;  %738 = vmatprep.subr.bf16.mxu1 (!%p223_p2), %v769_v1  ;;  %v334_v2 = vsel (!%p223_p2), %vm332_vm0, %v283_v0, 0  ;;  %v417_v3 = vld [vmem:[%s918_s4] sm:$0x3] (!%p223_p2)  ;;  %vm770_vm2 = vmmov (!%p223_p2), 0   ;;  %vm316_vm3 = vcmask (!%p223_p2), 15360  }
   0x7   : > { %707 = vmatpush3.bf16.msra.mxu0 (!%p223_p2), %v334_v2  ;;  %739 = vmatpush3.bf16.msra.mxu1 (!%p223_p2), %v334_v2  ;;  %vm445_vm4 = vcmask (!%p223_p2), 31744   ;;  %v460_v6 = vsel (!%p223_p2), %vm458_vm1, %v417_v3, 0  ;;  %v851_v22 = vld [vmem:[%s919_s5] ss:$0 sm:$0xff] (!%p223_p2)  ;;  %vm549_vm5 = vcmask (!%p223_p2), 64516   ;;  %vm529_vm6 = vcmask (!%p223_p2), 64512  }
   0x8   : > { %708 = vmatprep.mubr.msk.bf16.mxu0 (!%p223_p2), %vm770_vm2, %v769_v1  ;;  %724 = vmatprep.mubr.msk.bf16.mxu1 (!%p223_p2), %vm770_vm2, %v769_v1  ;;  %v856_v23 = vld [vmem:[%s916_s2] ss:$0 sm:$0xff] (!%p223_p2)  ;;  %vm551_vm7 = vcmask (!%p223_p2), 60416   ;;  %vm560_vm8 = vcmask (!%p223_p2), 64518   ;;  %vm538_vm9 = vcmask (!%p223_p2), 64514   ;;  %vm540_vm10 = vcmask (!%p223_p2), 58368  }
   0x9   : > { %740 = vmatprep.subr.msk.bf16.mxu1 (!%p223_p2), %vm458_vm1, %v417_v3  ;;  %vm562_vm11 = vcmask (!%p223_p2), 62464  }
   0xd   : > { %s922_s22 = smov (!%p257_p3, %s661_s22), 15 }
   0xe   : > { %s741_s27 = smul.u32 40, %s922_s22  ;;  %s693_s28 = sshll.u32 %s922_s22, 5 }
   0xf   : > { %s266_s10 = scalar_lea.vmem %s917_s3, %s693_s28  ;;  %s694_s15 = sshll.u32 %s922_s22, 6 }
  0x10   : > { %s261_s7 = scalar_lea.vmem %s914_s0, %s741_s27  ;;  %v754_v7 = vld [vmem:[%s266_s10] sm:$0xff]   ;;  %v756_v9 = vld [vmem:[%s266_s10 + $0x8] sm:$0xff]   ;;  %v757_v10 = vld [vmem:[%s266_s10 + $0x10] sm:$0xff]   ;;  %s869_s18 = scalar_lea.vmem %s920_s6, %s694_s15 }
  0x11   : > { %v752_v4 = vld [vmem:[%s261_s7] sm:$0xff]   ;;  %v755_v8 = vld [vmem:[%s261_s7 + $0x8] sm:$0xff]   ;;  %v758_v11 = vld [vmem:[%s261_s7 + $0x10] sm:$0xff]  }
  0x12   : > { %v753_v5 = vld [vmem:[%s261_s7 + $0x20] sm:$0xff]   ;;  %709 = vmatmul.mubr.msk.bf16.vlgmr.msra.gmra.mrb[0].mxu0 %vm316_vm3, %v752_v4  ;;  %v759_v12 = vld [vmem:[%s266_s10 + $0x18] sm:$0xff]  }
  0x13   : > { %725 = vmatmul.mubr.msk.bf16.vlgmr.msra.gmra.mrb[0].mxu1 %vm316_vm3, %v753_v5  ;;  %712 = vmatprep.mubr.msk.bf16.mxu0 %vm770_vm2, %v769_v1  ;;  %v760_v13 = vld [vmem:[%s261_s7 + $0x18] sm:$0xff]  }
  0x14   : > { %729 = vmatpush3.bf16.msra.mxu1 %v460_v6  ;;  %730 = vmatprep.mubr.msk.bf16.mxu1 %vm445_vm4, %v754_v7 }
  0x1a   : > { %713 = vmatmul.mubr.msk.bf16.gmra.mrb[4].mxu0 %vm316_vm3, %v755_v8 }
  0x1b   : > { %731 = vmatmul.mubr.msk.bf16.vlgmr.msra.gmra.mrb[4].mxu1 %vm445_vm4, %v756_v9  ;;  %716 = vmatprep.mubr.msk.bf16.mxu0 %vm770_vm2, %v769_v1 }
  0x1c   : > { %734 = vmatprep.mubr.msk.bf16.mxu1 %vm445_vm4, %v757_v10 }
  0x22   : > { %717 = vmatmul.mubr.msk.bf16.gmra.mrb[8].mxu0 %vm316_vm3, %v758_v11 }
  0x23   : > { %735 = vmatmul.mubr.msk.bf16.gmra.mrb[8].mxu1 %vm445_vm4, %v759_v12  ;;  %720 = vmatprep.mubr.msk.bf16.mxu0 %vm770_vm2, %v769_v1 }
  0x2a   : > { %721 = vmatmul.mubr.msk.bf16.gmra.mrb[12].mxu0 %vm316_vm3, %v760_v13 }
  0xe5   : > { %v370_v14 = vpop.f32.mrb[0].mxu0 }
  0xe6   : > { %v710_v15 = vpop.f32.mrb[1].mxu0  ;;  %v402_v16 = vpop.f32.mrb[0].mxu1  ;;  %v371_v30 = vadd.f32 %v856_v23, %v370_v14 }
  0xe7   : > { %v373_v17 = vpop.f32.mrb[2].mxu0  ;;  %v726_v18 = vpop.f32.mrb[1].mxu1  ;;  %v403_v2 = vadd.f32 %v856_v23, %v402_v16 }
  0xe8   : > { %v711_v19 = vpop.f32.mrb[3].mxu0  ;;  %v846_v20 = vpop.f32.mrb[2].mxu1  ;;  %v374_v44 = vadd.f32 %v856_v23, %v373_v17 }
  0xe9   : > { %v727_v21 = vpop.f32.mrb[3].mxu1  ;;  %v406_v9 = vadd.f32 %v856_v23, %v846_v20 }
  0xed   : > { %v378_v24 = vpop.f32.mrb[4].mxu0 }
  0xee   : > { %v732_v25 = vpop.f32.mrb[4].mxu1  ;;  %v714_v26 = vpop.f32.mrb[5].mxu0  ;;  %v379_v35 = vadd.f32 %v856_v23, %v378_v24 }
  0xef   : > { %v505_v27 = vadd.f32 %v732_v25, %v851_v22  ;;  %v496_v28 = vpop.f32.mrb[5].mxu1  ;;  %v381_v29 = vpop.f32.mrb[6].mxu0 }
  0xf0   : > { %v497_v31 = vadd.f32 %v851_v22, %v496_v28  ;;  %v382_v32 = vadd.f32 %v856_v23, %v381_v29  ;;  %v733_v33 = vpop.f32.mrb[6].mxu1  ;;  %v715_v34 = vpop.f32.mrb[7].mxu0 }
  0xf1   : > { %v543_v36 = vrot.slane %v505_v27, 4  ;;  %v508_v37 = vadd.f32 %v733_v33, %v851_v22  ;;  %v499_v38 = vpop.f32.mrb[7].mxu1 }
  0xf2   : > { %v527_v39 = vadd.f32 %v497_v31, %v371_v30  ;;  %v500_v40 = vadd.f32 %v851_v22, %v499_v38 }
  0xf3   : > { %v545_v41 = vadd.f32 %v543_v36, %v379_v35  ;;  %v546_v42 = vadd.f32 %v543_v36, %v382_v32  ;;  %v554_v43 = vrot.slane %v508_v37, 2 }
  0xf4   : > { %v528_v45 = vmax.f32 %v527_v39, 0.0  ;;  %v532_v46 = vrot.slane %v500_v40, 6 }
  0xf5   : > { %v547_v47 = vmax.f32 %v545_v41, 0.0  ;;  %v548_v48 = vmax.f32 %v546_v42, 0.0  ;;  %v556_v49 = vadd.f32 %v554_v43, %v382_v32  ;;  %v386_v50 = vpop.f32.mrb[8].mxu0 }
  0xf6   : > { %530 = vst.msk [vmem:[%s869_s18] sm:$0xff] %vm529_vm6, %v528_v45  ;;  %v534_v51 = vadd.f32 %v532_v46, %v374_v44  ;;  %v535_v52 = vadd.f32 %v532_v46, %v379_v35  ;;  %v387_v53 = vadd.f32 %v856_v23, %v386_v50  ;;  %v736_v54 = vpop.f32.mrb[8].mxu1  ;;  %v718_v55 = vpop.f32.mrb[9].mxu0 }
  0xf7   : > { %550 = vst.msk [vmem:[%s869_s18 + $0xc] sm:$0xf0] %vm549_vm5, %v547_v47  ;;  %v558_v56 = vmax.f32 %v556_v49, 0.0  ;;  %v521_v57 = vadd.f32 %v736_v54, %v851_v22  ;;  %v512_v58 = vpop.f32.mrb[9].mxu1  ;;  %v389_v59 = vpop.f32.mrb[10].mxu0 }
  0xf8   : > { %552 = vst.msk [vmem:[%s869_s18 + $0x14] sm:$0xf] %vm551_vm7, %v548_v48  ;;  %v536_v60 = vmax.f32 %v534_v51, 0.0  ;;  %v537_v61 = vmax.f32 %v535_v52, 0.0  ;;  %v557_v62 = vadd.f32 %v554_v43, %v387_v53  ;;  %v513_v63 = vadd.f32 %v851_v22, %v512_v58  ;;  %v737_v0 = vpop.f32.mrb[10].mxu1  ;;  %v719_v1 = vpop.f32.mrb[11].mxu0 }
  0xf9   : > { %561 = vst.msk [vmem:[%s869_s18 + $0x12] sm:$0xc0] %vm560_vm8, %v558_v56  ;;  %v577_v3 = vrot.slane %v521_v57, 4  ;;  %v390_v4 = vadd.f32 %v856_v23, %v389_v59  ;;  %v524_v5 = vadd.f32 %v737_v0, %v851_v22  ;;  %v515_v6 = vpop.f32.mrb[11].mxu1 }
  0xfa   : > { %539 = vst.msk [vmem:[%s869_s18 + $0x6] sm:$0xfc] %vm538_vm9, %v536_v60  ;;  %v559_v7 = vmax.f32 %v557_v62, 0.0  ;;  %v516_v8 = vadd.f32 %v851_v22, %v515_v6 }
  0xfb   : > { %541 = vst.msk [vmem:[%s869_s18 + $0xe] sm:$0x3] %vm540_vm10, %v537_v61  ;;  %v580_v10 = vadd.f32 %v577_v3, %v403_v2  ;;  %v564_v11 = vadd.f32 %v513_v63, %v390_v4  ;;  %v586_v12 = vrot.slane %v524_v5, 2 }
  0xfc   : > { %563 = vst.msk [vmem:[%s869_s18 + $0x1a] sm:$0x3f] %vm562_vm11, %v559_v7  ;;  %v568_v13 = vrot.slane %v516_v8, 6 }
  0xfd   : > { %v582_v14 = vmax.f32 %v580_v10, 0.0  ;;  %v565_v15 = vmax.f32 %v564_v11, 0.0  ;;  %v588_v16 = vadd.f32 %v586_v12, %v403_v2  ;;  %v589_v17 = vadd.f32 %v586_v12, %v406_v9  ;;  %v394_v18 = vpop.f32.mrb[12].mxu0 }
  0xfe   : > { %v395_v19 = vadd.f32 %v856_v23, %v394_v18  ;;  %v722_v21 = vpop.f32.mrb[13].mxu0 }
  0xff   : > { %584 = vst.msk [vmem:[%s869_s18 + $0x34] sm:$0xf] %vm551_vm7, %v582_v14  ;;  %v590_v20 = vmax.f32 %v588_v16, 0.0  ;;  %v591_v22 = vmax.f32 %v589_v17, 0.0  ;;  %v397_v24 = vpop.f32.mrb[14].mxu0 }
 0x100   : > { %566 = vst.msk [vmem:[%s869_s18 + $0x20] sm:$0xff] %vm529_vm6, %v565_v15  ;;  %v570_v25 = vadd.f32 %v568_v13, %v395_v19  ;;  %v398_v26 = vadd.f32 %v856_v23, %v397_v24  ;;  %v723_v27 = vpop.f32.mrb[15].mxu0 }
 0x101   : > { %592 = vst.msk [vmem:[%s869_s18 + $0x32] sm:$0xc0] %vm560_vm8, %v590_v20 }
 0x102   : > { %593 = vst.msk [vmem:[%s869_s18 + $0x3a] sm:$0x3f] %vm562_vm11, %v591_v22  ;;  %v572_v28 = vmax.f32 %v570_v25, 0.0  ;;  %v571_v29 = vadd.f32 %v568_v13, %v398_v26  ;;  %v579_v30 = vadd.f32 %v577_v3, %v398_v26 }
 0x104   : > { %574 = vst.msk [vmem:[%s869_s18 + $0x26] sm:$0xfc] %vm538_vm9, %v572_v28  ;;  %v573_v31 = vmax.f32 %v571_v29, 0.0  ;;  %v581_v32 = vmax.f32 %v579_v30, 0.0 }
 0x106   : > { %575 = vst.msk [vmem:[%s869_s18 + $0x2e] sm:$0x3] %vm540_vm10, %v573_v31 }
 0x107   : > { %583 = vst.msk [vmem:[%s869_s18 + $0x2c] sm:$0xf0] %vm549_vm5, %v581_v32 }
 0x108 PF: > { %s16_s21 = sadd.s32 1, %s767_s21  }
 0x109   : > { %p13_p4 = scmp.ge.s32.totalorder %s16_s21, 18  }
 0x10b   :  { %15 = sbr.rel (!%p13_p4) target bundleno = 1 (0x1), region = 77 }

// kernel: residual_unit3d_forward.4
= control target key start
LH: loop header
LB: loop body
LE: loop exit
PB: predicated region body
PF: predicated region fallthrough
CT: control target
= control target key end

     0   :  { %s5548_s12 = smov 0   ;;  %s5550_s13 = smov 0   ;;  %s6920_s0 = inlined_call_operand.vmem [shape: bf16[2,10,110,2], index: 0, kind: input, shape index: {}]   ;;  %s6921_s1 = inlined_call_operand.vmem [shape: bf16[3,3,3,2,2], index: 1, kind: input, shape index: {}]   ;;  %s6922_s2 = inlined_call_operand.vmem [shape: f32[1,2], index: 2, kind: input, shape index: {}]   ;;  %s6923_s3 = inlined_call_operand.vmem [shape: bf16[2,8,80,2], index: 3, kind: output, shape index: {}]  }
   0x1   :  { %s5552_s14 = smov 0   ;;  %s5554_s15 = smov 0  }
   0x2   :  { %s5556_s16 = smov 0  }
   0x3 LB: > { %s22_s17 = sadd.s32 1, %s5516_s14  ;;  %s25_s18 = sadd.s32 1, %s5520_s15  ;;  %s5524_s16 = sphi %s5556_s16, %s13_s16   ;;  %s5520_s15 = sphi %s5554_s15, %s6927_s15   ;;  %s5516_s14 = sphi %s5552_s14, %s6926_s14   ;;  %s5512_s13 = sphi %s5550_s13, %s6925_s13   ;;  %s5508_s12 = sphi %s5548_s12, %s6924_s12  }
   0x4   : > { %p23_p0 = scmp.ge.s32.totalorder %s22_s17, 8  ;;  %p4240_p1 = scmp.ge.s32.totalorder %s5524_s16, 1 }
   0x5   : > { %p151_p2 = scmp.lt.s32.totalorder %s5524_s16, 17 }
   0x6   : > { %s6929_s17 = smov (%p23_p0, %s22_s17), 0  ;;  %s6931_s18 = smov (!%p23_p0, %s25_s18), %s5520_s15 }
   0x7   : > { %p152_p3 = pnand %p4240_p1, %p151_p2  ;;  %p27_p4 = scmp.ge.s32.totalorder %s6931_s18, 2 }
   0x8   : > { %v4244_v0 = vld [vmem:[%s6921_s1 + $0x1] sm:$0x1] (!%p152_p3)  ;;  %vm300_vm0 = vcmask (!%p152_p3), 1040384   ;;  %p179_p5 = scmp.lt.s32.totalorder (!%p152_p3), %s5512_s13, 1  ;;  %v5526_v1 = vmov (!%p152_p3), 0.0   ;;  %vm5527_vm1 = vmmov (!%p152_p3), 0  }
   0x9   : > { %s6933_s18 = smov (%p27_p4, %s6931_s18), 0  ;;  %155 = sbr.rel (%p152_p3) target bundleno = 790 (0x316), region = 32 }
   0xa   : > { %4766 = vmatprep.subr.bf16.mxu0 (!%p152_p3), %v5526_v1  ;;  %5360 = vmatprep.subr.bf16.mxu1 (!%p152_p3), %v5526_v1  ;;  %v302_v2 = vsel (!%p152_p3), %vm300_vm0, %v4244_v0, 0  ;;  %s4593_s21 = smul.u32 (!%p152_p3), 56, %s5508_s12  ;;  %vm239_vm2 = vsmask.f32 (!%p152_p3), 7424  ;;  %v4261_v13 = vld [vmem:[%s6921_s1 + $0x2] sm:$0x1] (!%p152_p3) }
   0xb   : > { %4767 = vmatpush3.bf16.msra.mxu0 (!%p152_p3), %v302_v2  ;;  %5361 = vmatpush3.bf16.msra.mxu1 (!%p152_p3), %v302_v2  ;;  %vm284_vm3 = vcmask (!%p152_p3), 15360   ;;  %v207_v22 = vld [vmem:[%s6921_s1] sm:$0x1] (!%p152_p3)  ;;  %v497_v26 = vsel (!%p152_p3), %vm300_vm0, %v4261_v13, 0  ;;  %v4268_v43 = vld [vmem:[%s6921_s1 + $0x3] sm:$0x1] (!%p152_p3) }
   0xc   : > { %4768 = vmatprep.mubr.msk.bf16.mxu0 (!%p152_p3), %vm5527_vm1, %v5526_v1  ;;  %4780 = vmatprep.mubr.msk.bf16.mxu1 (!%p152_p3), %vm5527_vm1, %v5526_v1  ;;  %v388_v31 = vsel (!%p152_p3), %vm300_vm0, %v207_v22, 0  ;;  %v650_v45 = vsel (!%p152_p3), %vm300_vm0, %v4268_v43, 0  ;;  %vm469_vm4 = vcmask (!%p152_p3), 1046528   ;;  %v4280_v48 = vld [vmem:[%s6921_s1 + $0x4] sm:$0x1] (!%p152_p3)  ;;  %vm902_vm6 = vcmask (!%p152_p3), 1045504  }
   0xd   : > { %4810 = vmatprep.subr.bf16.mxu0 (!%p152_p3), %v5526_v1  ;;  %4788 = vmatprep.subr.bf16.mxu1 (!%p152_p3), %v5526_v1  ;;  %v811_v50 = vsel (!%p152_p3), %vm300_vm0, %v4280_v48, 0  ;;  %vm741_vm5 = vsmask.f32 (!%p152_p3), 6400  ;;  %vm1174_vm7 = vsmask.f32 (!%p152_p3), 5376  ;;  %vm1335_vm8 = vcmask (!%p152_p3), 1044480  }
   0xe   : > { %p186_p6 = scmp.lt.s32.totalorder (!%p152_p3), %s5508_s12, 7  ;;  %vm4131_vm9 = vcmask (!%p152_p3), 11264  }
  0x10   : > { %s6935_s13 = smov (!%p179_p5, %s5512_s13), 1  ;;  %s6937_s12 = smov (!%p186_p6, %s5508_s12), 7 }
  0x11   : > { %s5362_s22 = smul.u32 560, %s6935_s13 }
  0x13   : > { %s183_s25 = scalar_lea.vmem %s6920_s0, %s5362_s22 }
  0x14   : > { %s5599_s26 = scalar_lea.vmem %s183_s25, %s4593_s21  ;;  %s5363_s21 = smul.u32 10, %s6937_s12 }
  0x15   : > { %v197_v3 = vld [vmem:[%s5599_s26] sm:$0xf]  ;;  %v198_v4 = vld [vmem:[%s5599_s26 + $0x4] sm:$0xf]  ;;  %v5604_v6 = vld [vmem:[%s5599_s26 + $0x8] sm:$0xff]  }
  0x16   : > { %v4245_v5 = vcombine.low %v197_v3, %v198_v4  ;;  %v248_v9 = vshll.u32 %v5604_v6, 16  ;;  %v5608_v10 = vld [vmem:[%s5599_s26 + $0x18] sm:$0xff]   ;;  %v5611_v11 = vld [vmem:[%s5599_s26 + $0x20] sm:$0xff]   ;;  %v5614_v12 = vld [vmem:[%s5599_s26 + $0x10] sm:$0xff]   ;;  %v252_v23 = vshrl.u32 %v5604_v6, 16  ;;  %v471_v47 = vrot.slane %v5604_v6, 1 }
  0x17   : > { %v264_v16 = vshll.u32 %v5608_v10, 16  ;;  %v268_v17 = vshrl.u32 %v5608_v10, 16  ;;  %v272_v18 = vshll.u32 %v5611_v11, 16  ;;  %v5623_v19 = vld [vmem:[%s5599_s26 + $0x28] ss:$0 sps:$4 sm:$0x11]  }
  0x18   : > { %v241_v7 = vshrl.u32 %v4245_v5, 16  ;;  %v243_v8 = vshll.u32 %v4245_v5, 16  ;;  %v250_v15 = vrot.slane %v248_v9, 1  ;;  %v256_v24 = vshll.u32 %v5614_v12, 16  ;;  %v463_v41 = vld [vmem:[%s5599_s26] sm:$0xe] }
  0x19   : > { %v266_v21 = vrot.slane %v264_v16, 1  ;;  %v274_v25 = vrot.slane %v272_v18, 1  ;;  %v276_v29 = vshrl.u32 %v5611_v11, 16  ;;  %v280_v30 = vshll.u32 %v5623_v19, 16  ;;  %v5694_v56 = vld [vmem:[%s5599_s26 + $0xc] sm:$0xff]  }
  0x1a   : > { %v245_v14 = vrot.slane %v243_v8, 1  ;;  %v254_v33 = vor.u32 %v252_v23, %v250_v15  ;;  %v258_v34 = vrot.slane %v256_v24, 1  ;;  %v260_v38 = vshrl.u32 %v5614_v12, 16  ;;  %v582_v57 = vld [vmem:[%s5599_s26 + $0x4] sm:$0xe] }
  0x1b   : > { %v270_v28 = vor.u32 %v268_v17, %v266_v21  ;;  %v278_v35 = vor.u32 %v276_v29, %v274_v25  ;;  %v282_v36 = vrot.slane %v280_v30, 1  ;;  %v4262_v44 = vcombine.low %v463_v41, %v198_v4  ;;  %v5700_v58 = vld [vmem:[%s5599_s26 + $0x8] sm:$0xf] }
  0x1c   : > { %v246_v20 = vor.u32 %v245_v14, %v241_v7  ;;  %v259_v37 = vsel %vm239_vm2, %v254_v33, %v258_v34  ;;  %v262_v40 = vor.u32 %v260_v38, %v258_v34  ;;  %v473_v51 = vrot.slane %v5614_v12, 1  ;;  %v5760_v34 = vld [vmem:[%s5599_s26 + $0x24] sm:$0xff]  }
  0x1d   : > { %v275_v32 = vsel %vm239_vm2, %v270_v28, %v274_v25  ;;  %v283_v39 = vsel %vm239_vm2, %v278_v35, %v282_v36  ;;  %v470_v46 = vrot.slane %v4262_v44, 1  ;;  %v475_v53 = vrot.slane %v5608_v10, 1  ;;  %v5745_v25 = vld [vmem:[%s5599_s26 + $0x1c] sm:$0xff]   ;;  %v5419_v44 = vld [vmem:[%s5599_s26 + $0x2c] ss:$0 sps:$4 sm:$0x11]  }
  0x1e   : > { %v251_v27 = vsel %vm239_vm2, %v246_v20, %v250_v15  ;;  %4781 = vmatmul.mubr.msk.bf16.vlgmr.msra.gmra.mrb[0].mxu1 %vm284_vm3, %v275_v32  ;;  %v267_v42 = vsel %vm239_vm2, %v262_v40, %v266_v21  ;;  %v474_v52 = vsel %vm469_vm4, %v471_v47, %v473_v51  ;;  %v477_v55 = vrot.slane %v5611_v11, 1 }
  0x1f   : > { %4769 = vmatmul.mubr.msk.bf16.vlgmr.msra.gmra.mrb[0].mxu0 %vm284_vm3, %v251_v27  ;;  %4789 = vmatpush3.bf16.msra.mxu1 %v388_v31  ;;  %v472_v49 = vsel %vm469_vm4, %v470_v46, %v471_v47  ;;  %v476_v54 = vsel %vm469_vm4, %v473_v51, %v475_v53  ;;  %v751_v59 = vshrl.u32 %v5694_v56, 16  ;;  %v754_v60 = vshll.u32 %v5694_v56, 16 }
  0x20   : > { %4811 = vmatpush3.bf16.msra.mxu0 %v497_v26  ;;  %4772 = vmatprep.mubr.msk.bf16.mxu0 %vm5527_vm1, %v5526_v1  ;;  %v478_v61 = vsel %vm469_vm4, %v475_v53, %v477_v55  ;;  %v4269_v62 = vcombine.low %v582_v57, %v5700_v58  ;;  %v479_v2 = vrot.slane %v5623_v19, 1  ;;  %v624_v4 = vrot.slane %v5694_v56, 1  ;;  %v4294_v19 = vld [vmem:[%s6921_s1 + $0x6] sm:$0x1]  ;;  %v1015_v57 = vld [vmem:[%s5599_s26 + $0x8] sm:$0xc] }
  0x21   : > { %4854 = vmatprep.subr.bf16.mxu0 %v5526_v1  ;;  %4784 = vmatprep.mubr.msk.bf16.mxu1 %vm5527_vm1, %v5526_v1  ;;  %v756_v7 = vrot.slane %v754_v60, 2  ;;  %v1083_v23 = vsel %vm300_vm0, %v4294_v19, 0  ;;  %v769_v27 = vshrl.u32 %v5745_v25, 16  ;;  %v772_v28 = vshll.u32 %v5745_v25, 16  ;;  %v5852_v19 = vld [vmem:[%s5599_s26 + $0x28] sm:$0xff]  }
  0x22   : > { %4832 = vmatprep.subr.bf16.mxu1 %v5526_v1  ;;  %v743_v63 = vshrl.u32 %v4269_v62, 16  ;;  %v746_v0 = vshll.u32 %v4269_v62, 16  ;;  %v623_v3 = vrot.slane %v4269_v62, 1  ;;  %v628_v29 = vrot.slane %v5745_v25, 1  ;;  %v4306_v62 = vld [vmem:[%s6921_s1 + $0x7] sm:$0x1] }
  0x23   : > { %v771_v31 = vrot.slane %v769_v27, 1  ;;  %v774_v32 = vrot.slane %v772_v28, 2  ;;  %v778_v36 = vshrl.u32 %v5760_v34, 16  ;;  %v630_v38 = vrot.slane %v5760_v34, 1 }
  0x24   : > { %v745_v8 = vrot.slane %v743_v63, 1  ;;  %v748_v9 = vrot.slane %v746_v0, 2  ;;  %v632_v48 = vrot.slane %v5419_v44, 1  ;;  %v5806_v0 = vld [vmem:[%s5599_s26 + $0x10] sm:$0xff]  }
  0x25   : > { %v775_v35 = vor.u32 %v774_v32, %v771_v31  ;;  %v780_v40 = vrot.slane %v778_v36, 1  ;;  %v631_v43 = vsel %vm469_vm4, %v628_v29, %v630_v38  ;;  %v5427_v28 = vld [vmem:[%s5599_s26 + $0x30] ss:$0 sps:$4 sm:$0x33]  }
  0x26   : > { %4785 = vmatmul.mubr.msk.bf16.gmra.mrb[4].mxu1 %vm284_vm3, %v283_v39  ;;  %v749_v14 = vor.u32 %v748_v9, %v745_v8  ;;  %v633_v53 = vsel %vm469_vm4, %v630_v38, %v632_v48  ;;  %v5824_v8 = vld [vmem:[%s5599_s26 + $0x18] sm:$0xff]   ;;  %v1337_v48 = vrot.slane %v5806_v0, 3 }
  0x27   : > { %4773 = vmatmul.mubr.msk.bf16.gmra.mrb[4].mxu0 %vm284_vm3, %v259_v37  ;;  %4790 = vmatprep.mubr.msk.bf16.mxu1 %vm5527_vm1, %v5526_v1  ;;  %v781_v37 = vshll.u32 %v5760_v34, 16  ;;  %v1193_v38 = vshrl.u32 %v5824_v8, 16 }
  0x28   : > { %4776 = vmatprep.mubr.msk.bf16.mxu0 %vm5527_vm1, %v5526_v1 }
  0x29   : > { %v783_v41 = vrot.slane %v781_v37, 2  ;;  %v1195_v44 = vrot.slane %v1193_v38, 2 }
  0x2e   : > { %4791 = vmatmul.mubr.msk.bf16.vlgmr.msra.gmra.mrb[8].mxu1 %vm284_vm3, %v4245_v5  ;;  %v4287_v5 = vld [vmem:[%s6921_s1 + $0x5] sm:$0x1] }
  0x2f   : > { %4777 = vmatmul.mubr.msk.bf16.gmra.mrb[8].mxu0 %vm284_vm3, %v267_v42  ;;  %4833 = vmatpush3.bf16.msra.mxu1 %v650_v45  ;;  %v930_v13 = vsel %vm300_vm0, %v4287_v5, 0  ;;  %v5773_v42 = vld [vmem:[%s5599_s26 + $0x2c] ss:$0 sps:$4 sm:$0x33]   ;;  %v784_v45 = vor.u32 %v783_v41, %v780_v40  ;;  %v4330_v41 = vld [vmem:[%s6921_s1 + $0x9] sm:$0x1] }
  0x30   : > { %4812 = vmatprep.mubr.msk.bf16.mxu0 %vm5527_vm1, %v5526_v1  ;;  %4794 = vmatprep.mubr.msk.bf16.mxu1 %vm5527_vm1, %v5526_v1  ;;  %v787_v46 = vshrl.u32 %v5773_v42, 16  ;;  %v790_v47 = vshll.u32 %v5773_v42, 16 }
  0x31   : > { %4876 = vmatprep.subr.bf16.mxu1 %v5526_v1 }
  0x32   : > { %v789_v51 = vrot.slane %v787_v46, 1  ;;  %v1505_v46 = vsel %vm300_vm0, %v4330_v41, 0 }
  0x36   : > { %4795 = vmatmul.mubr.msk.bf16.gmra.mrb[12].mxu1 %vm284_vm3, %v5604_v6  ;;  %v753_v6 = vrot.slane %v751_v59, 1  ;;  %v5795_v59 = vld [vmem:[%s5599_s26 + $0xc] sm:$0xf] }
  0x37   : > { %4813 = vmatmul.mubr.msk.bf16.vlgmr.msra.gmra.mrb[12].mxu0 %vm284_vm3, %v472_v49  ;;  %4798 = vmatprep.mubr.msk.bf16.mxu1 %vm5527_vm1, %v5526_v1  ;;  %v896_v49 = vld [vmem:[%s5599_s26 + $0x4] sm:$0xc]  ;;  %v4295_v63 = vcombine.low %v1015_v57, %v5795_v59 }
  0x38   : > { %4855 = vmatpush3.bf16.msra.mxu0 %v811_v50  ;;  %4816 = vmatprep.mubr.msk.bf16.mxu0 %vm5527_vm1, %v5526_v1  ;;  %v757_v15 = vor.u32 %v756_v7, %v753_v6  ;;  %v785_v50 = vsel %vm741_vm5, %v775_v35, %v784_v45  ;;  %v4313_v6 = vld [vmem:[%s6921_s1 + $0x8] sm:$0x1] }
  0x39   : > { %4898 = vmatprep.subr.bf16.mxu0 %v5526_v1  ;;  %v1363_v9 = vsel %vm300_vm0, %v4313_v6, 0 }
  0x3a   : > { %v758_v20 = vsel %vm741_vm5, %v749_v14, %v757_v15  ;;  %v5839_v14 = vld [vmem:[%s5599_s26 + $0x20] sm:$0xff]  }
  0x3e   : > { %4799 = vmatmul.mubr.msk.bf16.gmra.mrb[16].mxu1 %vm284_vm3, %v5614_v12  ;;  %v5724_v12 = vld [vmem:[%s5599_s26 + $0x14] sm:$0xff]  }
  0x3f   : > { %4817 = vmatmul.mubr.msk.bf16.gmra.mrb[16].mxu0 %vm284_vm3, %v474_v52  ;;  %4802 = vmatprep.mubr.msk.bf16.mxu1 %vm5527_vm1, %v5526_v1  ;;  %v760_v16 = vshrl.u32 %v5724_v12, 16  ;;  %v763_v17 = vshll.u32 %v5724_v12, 16  ;;  %v626_v18 = vrot.slane %v5724_v12, 1  ;;  %v792_v52 = vrot.slane %v790_v47, 2 }
  0x40   : > { %4820 = vmatprep.mubr.msk.bf16.mxu0 %vm5527_vm1, %v5526_v1  ;;  %v906_v5 = vrot.slane %v5724_v12, 2  ;;  %v1059_v12 = vrot.slane %v5824_v8, 2 }
  0x41   : > { %v762_v21 = vrot.slane %v760_v16, 1  ;;  %v765_v22 = vrot.slane %v763_v17, 2  ;;  %v627_v24 = vsel %vm469_vm4, %v624_v4, %v626_v18  ;;  %v629_v33 = vsel %vm469_vm4, %v626_v18, %v628_v29 }
  0x42   : > { %v1061_v16 = vrot.slane %v5839_v14, 2  ;;  %v910_v17 = vrot.slane %v5760_v34, 2  ;;  %v1065_v34 = vrot.slane %v5427_v28, 2 }
  0x43   : > { %v766_v26 = vor.u32 %v765_v22, %v762_v21  ;;  %v1063_v21 = vrot.slane %v5852_v19, 2  ;;  %v912_v22 = vrot.slane %v5773_v42, 2 }
  0x44   : > { %v1062_v18 = vsel %vm902_vm6, %v1059_v12, %v1061_v16 }
  0x45   : > { %v767_v30 = vsel %vm741_vm5, %v757_v15, %v766_v26  ;;  %v776_v39 = vsel %vm741_vm5, %v766_v26, %v775_v35  ;;  %v1187_v26 = vshll.u32 %v5806_v0, 16  ;;  %v1064_v27 = vsel %vm902_vm6, %v1061_v16, %v1063_v21  ;;  %v1329_v35 = vld [vmem:[%s5599_s26 + $0x8] sm:$0x8] }
  0x46   : > { %4803 = vmatmul.mubr.msk.bf16.gmra.mrb[20].mxu1 %vm284_vm3, %v5608_v10  ;;  %v480_v10 = vsel %vm469_vm4, %v477_v55, %v479_v2  ;;  %v793_v55 = vor.u32 %v792_v52, %v789_v51  ;;  %v913_v29 = vsel %vm902_vm6, %v910_v17, %v912_v22  ;;  %v1066_v40 = vsel %vm902_vm6, %v1063_v21, %v1065_v34 }
  0x47   : > { %4821 = vmatmul.mubr.msk.bf16.gmra.mrb[20].mxu0 %vm284_vm3, %v476_v54  ;;  %4806 = vmatprep.mubr.msk.bf16.mxu1 %vm5527_vm1, %v5526_v1  ;;  %v4288_v54 = vcombine.low %v896_v49, %v5700_v58  ;;  %v4314_v42 = vcombine.low %v1329_v35, %v5795_v59  ;;  %v1202_v51 = vshrl.u32 %v5839_v14, 16  ;;  %v1205_v52 = vshll.u32 %v5839_v14, 16 }
  0x48   : > { %4824 = vmatprep.mubr.msk.bf16.mxu0 %vm5527_vm1, %v5526_v1  ;;  %v794_v58 = vsel %vm741_vm5, %v784_v45, %v793_v55 }
  0x49   : > { %v903_v60 = vrot.slane %v4288_v54, 2  ;;  %v1336_v47 = vrot.slane %v4314_v42, 3  ;;  %v1204_v57 = vrot.slane %v1202_v51, 2  ;;  %v1207_v59 = vrot.slane %v1205_v52, 3  ;;  %v5436_v51 = vld [vmem:[%s5599_s26 + $0x50] sm:$0xff]  }
  0x4e   : > { %4807 = vmatmul.mubr.msk.bf16.gmra.mrb[24].mxu1 %vm284_vm3, %v5611_v11  ;;  %v625_v11 = vsel %vm469_vm4, %v623_v3, %v624_v4  ;;  %v1244_v3 = vsel %vm300_vm0, %v4306_v62, 0  ;;  %v1057_v4 = vrot.slane %v5806_v0, 2  ;;  %v1214_v62 = vshll.u32 %v5852_v19, 16 }
  0x4f   : > { %4825 = vmatmul.mubr.msk.bf16.gmra.mrb[24].mxu0 %vm284_vm3, %v478_v61  ;;  %4834 = vmatprep.mubr.msk.bf16.mxu1 %vm5527_vm1, %v5526_v1  ;;  %v904_v61 = vrot.slane %v5694_v56, 2  ;;  %v1056_v56 = vrot.slane %v4295_v63, 2 }
  0x50   : > { %4828 = vmatprep.mubr.msk.bf16.mxu0 %vm5527_vm1, %v5526_v1 }
  0x51   : > { %v905_v2 = vsel %vm902_vm6, %v903_v60, %v904_v61  ;;  %v1058_v7 = vsel %vm902_vm6, %v1056_v56, %v1057_v4  ;;  %v1339_v60 = vrot.slane %v5824_v8, 3  ;;  %v5429_v56 = vld [vmem:[%s5599_s26 + $0x30] ss:$0 sps:$4 sm:$0x77]  }
  0x52   : > { %v1220_v6 = vshrl.u32 %v5429_v56, 16 }
  0x56   : > { %4835 = vmatmul.mubr.msk.bf16.vlgmr.msra.gmra.mrb[28].mxu1 %vm284_vm3, %v625_v11  ;;  %v908_v11 = vrot.slane %v5745_v25, 2  ;;  %v1184_v25 = vshrl.u32 %v5806_v0, 16 }
  0x57   : > { %4829 = vmatmul.mubr.msk.bf16.gmra.mrb[28].mxu0 %vm284_vm3, %v480_v10  ;;  %4877 = vmatpush3.bf16.msra.mxu1 %v930_v13  ;;  %v907_v10 = vsel %vm902_vm6, %v904_v61, %v906_v5  ;;  %v1060_v13 = vsel %vm902_vm6, %v1057_v4, %v1059_v12  ;;  %v1208_v61 = vor.u32 %v1207_v59, %v1204_v57  ;;  %v1341_v4 = vrot.slane %v5839_v14, 3  ;;  %v5929_v14 = vld [vmem:[%s5599_s26 + $0x3c] sm:$0xf] }
  0x58   : > { %4856 = vmatprep.mubr.msk.bf16.mxu0 %vm5527_vm1, %v5526_v1  ;;  %4838 = vmatprep.mubr.msk.bf16.mxu1 %vm5527_vm1, %v5526_v1  ;;  %v909_v15 = vsel %vm902_vm6, %v906_v5, %v908_v11  ;;  %v1186_v32 = vrot.slane %v1184_v25, 2 }
  0x59   : > { %4920 = vmatprep.subr.bf16.mxu1 %v5526_v1 }
  0x5e   : > { %4839 = vmatmul.mubr.msk.bf16.gmra.mrb[32].mxu1 %vm284_vm3, %v627_v24  ;;  %v1179_v24 = vshll.u32 %v4295_v63, 16 }
  0x5f   : > { %4857 = vmatmul.mubr.msk.bf16.vlgmr.msra.gmra.mrb[32].mxu0 %vm284_vm3, %v758_v20  ;;  %4842 = vmatprep.mubr.msk.bf16.mxu1 %vm5527_vm1, %v5526_v1  ;;  %v911_v20 = vsel %vm902_vm6, %v908_v11, %v910_v17  ;;  %v1343_v11 = vrot.slane %v5852_v19, 3 }
  0x60   : > { %4899 = vmatpush3.bf16.msra.mxu0 %v1083_v23  ;;  %4860 = vmatprep.mubr.msk.bf16.mxu0 %vm5527_vm1, %v5526_v1  ;;  %v1176_v23 = vshrl.u32 %v4295_v63, 16  ;;  %v1181_v31 = vrot.slane %v1179_v24, 3  ;;  %v1340_v63 = vsel %vm1335_vm8, %v1337_v48, %v1339_v60 }
  0x61   : > { %4942 = vmatprep.subr.bf16.mxu0 %v5526_v1  ;;  %v1344_v16 = vsel %vm1335_vm8, %v1341_v4, %v1343_v11 }
  0x66   : > { %4843 = vmatmul.mubr.msk.bf16.gmra.mrb[36].mxu1 %vm284_vm3, %v629_v33  ;;  %v1189_v33 = vrot.slane %v1187_v26, 3 }
  0x67   : > { %4861 = vmatmul.mubr.msk.bf16.gmra.mrb[36].mxu0 %vm284_vm3, %v767_v30  ;;  %4846 = vmatprep.mubr.msk.bf16.mxu1 %vm5527_vm1, %v5526_v1  ;;  %v1178_v30 = vrot.slane %v1176_v23, 2  ;;  %v4365_v23 = vld [vmem:[%s6921_s1 + $0xb] sm:$0x1] }
  0x68   : > { %4864 = vmatprep.mubr.msk.bf16.mxu0 %vm5527_vm1, %v5526_v1  ;;  %v1190_v37 = vor.u32 %v1189_v33, %v1186_v32  ;;  %v1809_v28 = vsel %vm300_vm0, %v4365_v23, 0  ;;  %v4383_v32 = vld [vmem:[%s6921_s1 + $0xc] sm:$0x1] }
  0x69   : > { %v1182_v36 = vor.u32 %v1181_v31, %v1178_v30  ;;  %v5956_v31 = vld [vmem:[%s5599_s26 + $0x48] sm:$0xff]  }
  0x6a   : > { %v1647_v35 = vshll.u32 %v5956_v31, 16  ;;  %v1651_v42 = vshrl.u32 %v5956_v31, 16 }
  0x6e   : > { %4847 = vmatmul.mubr.msk.bf16.gmra.mrb[40].mxu1 %vm284_vm3, %v631_v43  ;;  %v1191_v43 = vsel %vm1174_vm7, %v1182_v36, %v1190_v37  ;;  %v5431_v36 = vld [vmem:[%s5599_s26 + $0x40] sm:$0xff]  }
  0x6f   : > { %4865 = vmatmul.mubr.msk.bf16.gmra.mrb[40].mxu0 %vm284_vm3, %v776_v39  ;;  %4850 = vmatprep.mubr.msk.bf16.mxu1 %vm5527_vm1, %v5526_v1  ;;  %v1196_v39 = vshll.u32 %v5824_v8, 16  ;;  %v1342_v8 = vsel %vm1335_vm8, %v1339_v60, %v1341_v4 }
  0x70   : > { %4868 = vmatprep.mubr.msk.bf16.mxu0 %vm5527_vm1, %v5526_v1 }
  0x71   : > { %v1198_v45 = vrot.slane %v1196_v39, 3  ;;  %v1649_v39 = vrot.slane %v1647_v35, 1 }
  0x73   : > { %v1199_v49 = vor.u32 %v1198_v45, %v1195_v44  ;;  %v5434_v44 = vld [vmem:[%s5599_s26 + $0x48] sm:$0xff]   ;;  %v1653_v45 = vor.u32 %v1651_v42, %v1649_v39  ;;  %v6073_v42 = vld [vmem:[%s5599_s26 + $0x54] sm:$0xff]  }
  0x75   : > { %v1200_v55 = vsel %vm1174_vm7, %v1190_v37, %v1199_v49  ;;  %v1209_v0 = vsel %vm1174_vm7, %v1199_v49, %v1208_v61  ;;  %v1962_v37 = vsel %vm300_vm0, %v4383_v32, 0 }
  0x76   : > { %4851 = vmatmul.mubr.msk.bf16.gmra.mrb[44].mxu1 %vm284_vm3, %v633_v53  ;;  %v1338_v53 = vsel %vm1335_vm8, %v1336_v47, %v1337_v48  ;;  %v5988_v47 = vld [vmem:[%s5599_s26 + $0x58] sm:$0xff]  }
  0x77   : > { %4869 = vmatmul.mubr.msk.bf16.gmra.mrb[44].mxu0 %vm284_vm3, %v785_v50  ;;  %4878 = vmatprep.mubr.msk.bf16.mxu1 %vm5527_vm1, %v5526_v1  ;;  %v4352_v50 = vld [vmem:[%s6921_s1 + $0xa] sm:$0x1]  ;;  %v1667_v59 = vshrl.u32 %v5988_v47, 16 }
  0x78   : > { %4872 = vmatprep.mubr.msk.bf16.mxu0 %vm5527_vm1, %v5526_v1  ;;  %v1691_v54 = vsel %vm300_vm0, %v4352_v50, 0  ;;  %v1663_v50 = vshll.u32 %v5988_v47, 16 }
  0x7e   : > { %4879 = vmatmul.mubr.msk.bf16.vlgmr.msra.gmra.mrb[48].mxu1 %vm284_vm3, %v905_v2 }
  0x7f   : > { %4873 = vmatmul.mubr.msk.bf16.gmra.mrb[48].mxu0 %vm284_vm3, %v794_v58  ;;  %4921 = vmatpush3.bf16.msra.mxu1 %v1244_v3  ;;  %v1211_v58 = vshrl.u32 %v5852_v19, 16  ;;  %v1216_v3 = vrot.slane %v1214_v62, 3  ;;  %v1345_v19 = vrot.slane %v5429_v56, 3 }
  0x80   : > { %4900 = vmatprep.mubr.msk.bf16.mxu0 %vm5527_vm1, %v5526_v1  ;;  %4882 = vmatprep.mubr.msk.bf16.mxu1 %vm5527_vm1, %v5526_v1 }
  0x81   : > { %4964 = vmatprep.subr.bf16.mxu1 %v5526_v1  ;;  %v1213_v2 = vrot.slane %v1211_v58, 2  ;;  %v1346_v22 = vsel %vm1335_vm8, %v1343_v11, %v1345_v19 }
  0x83   : > { %v1217_v5 = vor.u32 %v1216_v3, %v1213_v2  ;;  %v6018_v2 = vld [vmem:[%s5599_s26 + $0x40] sm:$0xf] }
  0x86   : > { %4883 = vmatmul.mubr.msk.bf16.gmra.mrb[52].mxu1 %vm284_vm3, %v907_v10  ;;  %v1222_v10 = vrot.slane %v1220_v6, 2 }
  0x87   : > { %4901 = vmatmul.mubr.msk.bf16.vlgmr.msra.gmra.mrb[52].mxu0 %vm284_vm3, %v1058_v7  ;;  %4886 = vmatprep.mubr.msk.bf16.mxu1 %vm5527_vm1, %v5526_v1  ;;  %v1223_v7 = vshll.u32 %v5429_v56, 16 }
  0x88   : > { %4943 = vmatpush3.bf16.msra.mxu0 %v1363_v9  ;;  %4904 = vmatprep.mubr.msk.bf16.mxu0 %vm5527_vm1, %v5526_v1  ;;  %v1218_v9 = vsel %vm1174_vm7, %v1208_v61, %v1217_v5  ;;  %v5438_v61 = vld [vmem:[%s5599_s26 + $0x58] sm:$0xff]  }
  0x89   : > { %4986 = vmatprep.subr.bf16.mxu0 %v5526_v1  ;;  %v1225_v12 = vrot.slane %v1223_v7, 3 }
  0x8e   : > { %4887 = vmatmul.mubr.msk.bf16.gmra.mrb[56].mxu1 %vm284_vm3, %v909_v15  ;;  %v1226_v15 = vor.u32 %v1225_v12, %v1222_v10  ;;  %v6033_v12 = vld [vmem:[%s5599_s26 + $0x44] sm:$0xff]  }
  0x8f   : > { %4905 = vmatmul.mubr.msk.bf16.gmra.mrb[56].mxu0 %vm284_vm3, %v1060_v13  ;;  %4890 = vmatprep.mubr.msk.bf16.mxu1 %vm5527_vm1, %v5526_v1  ;;  %v4341_v13 = vld [vmem:[%s5599_s26 + $0x38] sm:$0xf]  ;;  %v1936_v19 = vrot.slane %v6033_v12, 1 }
  0x90   : > { %4908 = vmatprep.mubr.msk.bf16.mxu0 %vm5527_vm1, %v5526_v1  ;;  %v4353_v17 = vcombine.low %v4341_v13, %v5929_v14 }
  0x92   : > { %v1634_v21 = vshll.u32 %v4353_v17, 16  ;;  %v1632_v24 = vshrl.u32 %v4353_v17, 16 }
  0x94   : > { %v1636_v25 = vrot.slane %v1634_v21, 1  ;;  %v1785_v21 = vrot.slane %v5956_v31, 1 }
  0x96   : > { %4891 = vmatmul.mubr.msk.bf16.gmra.mrb[60].mxu1 %vm284_vm3, %v911_v20  ;;  %v5940_v20 = vld [vmem:[%s5599_s26 + $0x40] sm:$0xff]  }
  0x97   : > { %4909 = vmatmul.mubr.msk.bf16.gmra.mrb[60].mxu0 %vm284_vm3, %v1062_v18  ;;  %4894 = vmatprep.mubr.msk.bf16.mxu1 %vm5527_vm1, %v5526_v1  ;;  %v1227_v18 = vsel %vm1174_vm7, %v1217_v5, %v1226_v15  ;;  %v1639_v26 = vshll.u32 %v5940_v20, 16  ;;  %v1643_v34 = vshrl.u32 %v5940_v20, 16  ;;  %v1783_v4 = vrot.slane %v5940_v20, 1 }
  0x98   : > { %4912 = vmatprep.mubr.msk.bf16.mxu0 %vm5527_vm1, %v5526_v1 }
  0x99   : > { %v1641_v30 = vrot.slane %v1639_v26, 1  ;;  %v1786_v31 = vsel %vm469_vm4, %v1783_v4, %v1785_v21 }
  0x9b   : > { %v1645_v38 = vor.u32 %v1643_v34, %v1641_v30 }
  0x9d   : > { %v1650_v41 = vsel %vm239_vm2, %v1645_v38, %v1649_v39 }
  0x9e   : > { %4895 = vmatmul.mubr.msk.bf16.gmra.mrb[64].mxu1 %vm284_vm3, %v913_v29  ;;  %v1637_v29 = vor.u32 %v1636_v25, %v1632_v24 }
  0x9f   : > { %4913 = vmatmul.mubr.msk.bf16.gmra.mrb[64].mxu0 %vm284_vm3, %v1064_v27  ;;  %4922 = vmatprep.mubr.msk.bf16.mxu1 %vm5527_vm1, %v5526_v1  ;;  %v5430_v27 = vld [vmem:[%s5599_s26 + $0x38] sm:$0xff]  }
  0xa0   : > { %4916 = vmatprep.mubr.msk.bf16.mxu0 %vm5527_vm1, %v5526_v1  ;;  %v1642_v33 = vsel %vm239_vm2, %v1637_v29, %v1641_v30 }
  0xa6   : > { %4923 = vmatmul.mubr.msk.bf16.vlgmr.msra.gmra.mrb[68].mxu1 %vm284_vm3, %v1191_v43 }
  0xa7   : > { %4917 = vmatmul.mubr.msk.bf16.gmra.mrb[68].mxu0 %vm284_vm3, %v1066_v40  ;;  %4965 = vmatpush3.bf16.msra.mxu1 %v1505_v46  ;;  %v5974_v40 = vld [vmem:[%s5599_s26 + $0x50] sm:$0xff]  }
  0xa8   : > { %4944 = vmatprep.mubr.msk.bf16.mxu0 %vm5527_vm1, %v5526_v1  ;;  %4926 = vmatprep.mubr.msk.bf16.mxu1 %vm5527_vm1, %v5526_v1  ;;  %v1655_v43 = vshll.u32 %v5974_v40, 16  ;;  %v1659_v49 = vshrl.u32 %v5974_v40, 16 }
  0xa9   : > { %5008 = vmatprep.subr.bf16.mxu1 %v5526_v1 }
  0xaa   : > { %v1657_v46 = vrot.slane %v1655_v43, 1 }
  0xac   : > { %v1658_v48 = vsel %vm239_vm2, %v1653_v45, %v1657_v46  ;;  %v1661_v52 = vor.u32 %v1659_v49, %v1657_v46 }
  0xae   : > { %4927 = vmatmul.mubr.msk.bf16.gmra.mrb[72].mxu1 %vm284_vm3, %v1200_v55  ;;  %v4364_v55 = vld [vmem:[%s5599_s26 + $0x38] sm:$0xe] }
  0xaf   : > { %4945 = vmatmul.mubr.msk.bf16.vlgmr.msra.gmra.mrb[72].mxu0 %vm284_vm3, %v1338_v53  ;;  %4930 = vmatprep.mubr.msk.bf16.mxu1 %vm5527_vm1, %v5526_v1  ;;  %v1665_v53 = vrot.slane %v1663_v50, 1  ;;  %v4366_v58 = vcombine.low %v4364_v55, %v5929_v14 }
  0xb0   : > { %4987 = vmatpush3.bf16.msra.mxu0 %v1691_v54  ;;  %4948 = vmatprep.mubr.msk.bf16.mxu0 %vm5527_vm1, %v5526_v1  ;;  %v6001_v54 = vld [vmem:[%s5599_s26 + $0x60] ss:$0 sps:$4 sm:$0x11]  }
  0xb1   : > { %5030 = vmatprep.subr.bf16.mxu0 %v5526_v1  ;;  %v1666_v57 = vsel %vm239_vm2, %v1661_v52, %v1665_v53  ;;  %v1671_v60 = vshll.u32 %v6001_v54, 16  ;;  %v1669_v62 = vor.u32 %v1667_v59, %v1665_v53  ;;  %v1782_v56 = vrot.slane %v4366_v58, 1 }
  0xb2   : > { %v1789_v52 = vrot.slane %v5988_v47, 1 }
  0xb3   : > { %v1784_v15 = vsel %vm469_vm4, %v1782_v56, %v1783_v4 }
  0xb6   : > { %4931 = vmatmul.mubr.msk.bf16.gmra.mrb[76].mxu1 %vm284_vm3, %v1209_v0  ;;  %v4372_v0 = vld [vmem:[%s5599_s26 + $0x3c] sm:$0xe] }
  0xb7   : > { %4949 = vmatmul.mubr.msk.bf16.gmra.mrb[76].mxu0 %vm284_vm3, %v1340_v63  ;;  %4934 = vmatprep.mubr.msk.bf16.mxu1 %vm5527_vm1, %v5526_v1  ;;  %v1673_v63 = vrot.slane %v1671_v60, 1  ;;  %v6030_v10 = vcombine.low %v4372_v0, %v6018_v2 }
  0xb8   : > { %4952 = vmatprep.mubr.msk.bf16.mxu0 %vm5527_vm1, %v5526_v1 }
  0xbe   : > { %4935 = vmatmul.mubr.msk.bf16.gmra.mrb[80].mxu1 %vm284_vm3, %v1218_v9  ;;  %v4396_v9 = vld [vmem:[%s6921_s1 + $0xd] sm:$0x1] }
  0xbf   : > { %4953 = vmatmul.mubr.msk.bf16.gmra.mrb[80].mxu0 %vm284_vm3, %v1342_v8  ;;  %4938 = vmatprep.mubr.msk.bf16.mxu1 %vm5527_vm1, %v5526_v1  ;;  %v1674_v8 = vsel %vm239_vm2, %v1669_v62, %v1673_v63  ;;  %v2122_v17 = vsel %vm300_vm0, %v4396_v9, 0  ;;  %v2054_v9 = vshrl.u32 %v6030_v10, 16 }
  0xc0   : > { %4956 = vmatprep.mubr.msk.bf16.mxu0 %vm5527_vm1, %v5526_v1 }
  0xc6   : > { %4939 = vmatmul.mubr.msk.bf16.gmra.mrb[84].mxu1 %vm284_vm3, %v1227_v18  ;;  %v1935_v18 = vrot.slane %v6030_v10, 1 }
  0xc7   : > { %4957 = vmatmul.mubr.msk.bf16.gmra.mrb[84].mxu0 %vm284_vm3, %v1344_v16  ;;  %4966 = vmatprep.mubr.msk.bf16.mxu1 %vm5527_vm1, %v5526_v1 }
  0xc8   : > { %4960 = vmatprep.mubr.msk.bf16.mxu0 %vm5527_vm1, %v5526_v1  ;;  %v1937_v26 = vsel %vm469_vm4, %v1935_v18, %v1936_v19 }
  0xce   : > { %4967 = vmatmul.mubr.msk.bf16.vlgmr.msra.gmra.mrb[88].mxu1 %vm284_vm3, %v5430_v27  ;;  %v6056_v27 = vld [vmem:[%s5599_s26 + $0x4c] sm:$0xff]  }
  0xcf   : > { %4961 = vmatmul.mubr.msk.bf16.gmra.mrb[88].mxu0 %vm284_vm3, %v1346_v22  ;;  %5009 = vmatpush3.bf16.msra.mxu1 %v1809_v28  ;;  %v4404_v22 = vld [vmem:[%s6921_s1 + $0xe] sm:$0x1]  ;;  %v1938_v34 = vrot.slane %v6056_v27, 1 }
  0xd0   : > { %4988 = vmatprep.mubr.msk.bf16.mxu0 %vm5527_vm1, %v5526_v1  ;;  %4970 = vmatprep.mubr.msk.bf16.mxu1 %vm5527_vm1, %v5526_v1  ;;  %v2240_v30 = vsel %vm300_vm0, %v4404_v22, 0 }
  0xd1   : > { %5052 = vmatprep.subr.bf16.mxu1 %v5526_v1 }
  0xd6   : > { %4971 = vmatmul.mubr.msk.bf16.gmra.mrb[92].mxu1 %vm284_vm3, %v5431_v36  ;;  %v1787_v36 = vrot.slane %v5974_v40, 1  ;;  %v1940_v40 = vrot.slane %v6073_v42, 1 }
  0xd7   : > { %4989 = vmatmul.mubr.msk.bf16.vlgmr.msra.gmra.mrb[92].mxu0 %vm284_vm3, %v1642_v33  ;;  %4974 = vmatprep.mubr.msk.bf16.mxu1 %vm5527_vm1, %v5526_v1 }
  0xd8   : > { %5031 = vmatpush3.bf16.msra.mxu0 %v1962_v37  ;;  %4992 = vmatprep.mubr.msk.bf16.mxu0 %vm5527_vm1, %v5526_v1  ;;  %v1941_v60 = vsel %vm469_vm4, %v1938_v34, %v1940_v40  ;;  %v1790_v56 = vsel %vm469_vm4, %v1787_v36, %v1789_v52 }
  0xd9   : > { %5074 = vmatprep.subr.bf16.mxu0 %v5526_v1 }
  0xde   : > { %4975 = vmatmul.mubr.msk.bf16.gmra.mrb[96].mxu1 %vm284_vm3, %v5434_v44 }
  0xdf   : > { %4993 = vmatmul.mubr.msk.bf16.gmra.mrb[96].mxu0 %vm284_vm3, %v1650_v41  ;;  %4978 = vmatprep.mubr.msk.bf16.mxu1 %vm5527_vm1, %v5526_v1  ;;  %v1939_v41 = vsel %vm469_vm4, %v1936_v19, %v1938_v34 }
  0xe0   : > { %4996 = vmatprep.mubr.msk.bf16.mxu0 %vm5527_vm1, %v5526_v1 }
  0xe6   : > { %4979 = vmatmul.mubr.msk.bf16.gmra.mrb[100].mxu1 %vm284_vm3, %v5436_v51 }
  0xe7   : > { %4997 = vmatmul.mubr.msk.bf16.gmra.mrb[100].mxu0 %vm284_vm3, %v1658_v48  ;;  %4982 = vmatprep.mubr.msk.bf16.mxu1 %vm5527_vm1, %v5526_v1  ;;  %v1788_v48 = vsel %vm469_vm4, %v1785_v21, %v1787_v36  ;;  %v4403_v36 = vld [vmem:[%s5599_s26 + $0x3c] sm:$0xc] }
  0xe8   : > { %5000 = vmatprep.mubr.msk.bf16.mxu0 %vm5527_vm1, %v5526_v1 }
  0xee   : > { %4983 = vmatmul.mubr.msk.bf16.gmra.mrb[104].mxu1 %vm284_vm3, %v5438_v61  ;;  %v6088_v61 = vld [vmem:[%s5599_s26 + $0x5c] sm:$0xff]  }
  0xef   : > { %5001 = vmatmul.mubr.msk.bf16.gmra.mrb[104].mxu0 %vm284_vm3, %v1666_v57  ;;  %5010 = vmatprep.mubr.msk.bf16.mxu1 %vm5527_vm1, %v5526_v1 }
  0xf0   : > { %5004 = vmatprep.mubr.msk.bf16.mxu0 %vm5527_vm1, %v5526_v1 }
  0xf1   : > { %v6023_v7 = vpop.f32.mrb[0].mxu1 }
  0xf2   : > { %v338_v3 = vpop.f32.mrb[0].mxu0  ;;  %v4782_v13 = vpop.f32.mrb[1].mxu1 }
  0xf3   : > { %v4770_v5 = vpop.f32.mrb[1].mxu0  ;;  %v6035_v14 = vpop.f32.mrb[2].mxu1  ;;  %v2062_v13 = vshrl.u32 %v6033_v12, 16 }
  0xf4   : > { %v341_v6 = vpop.f32.mrb[2].mxu0  ;;  %v4783_v16 = vpop.f32.mrb[3].mxu1  ;;  %v1942_v5 = vrot.slane %v6088_v61, 1 }
  0xf5   : > { %v4771_v11 = vpop.f32.mrb[3].mxu0 }
  0xf6   : > { %5011 = vmatmul.mubr.msk.bf16.vlgmr.msra.gmra.mrb[108].mxu1 %vm284_vm3, %v1784_v15  ;;  %v2057_v11 = vshll.u32 %v6030_v10, 16  ;;  %v2065_v15 = vshll.u32 %v6033_v12, 16 }
  0xf7   : > { %5005 = vmatmul.mubr.msk.bf16.gmra.mrb[108].mxu0 %vm284_vm3, %v1674_v8  ;;  %5053 = vmatpush3.bf16.msra.mxu1 %v2122_v17 }
  0xf8   : > { %5032 = vmatprep.mubr.msk.bf16.mxu0 %vm5527_vm1, %v5526_v1  ;;  %5014 = vmatprep.mubr.msk.bf16.mxu1 %vm5527_vm1, %v5526_v1 }
  0xf9   : > { %5096 = vmatprep.subr.bf16.mxu1 %v5526_v1  ;;  %v6052_v25 = vpop.f32.mrb[4].mxu1 }
  0xfa   : > { %v346_v20 = vpop.f32.mrb[4].mxu0  ;;  %v4786_v29 = vpop.f32.mrb[5].mxu1 }
  0xfb   : > { %v4774_v23 = vpop.f32.mrb[5].mxu0  ;;  %v6059_v32 = vpop.f32.mrb[6].mxu1  ;;  %v2059_v29 = vrot.slane %v2057_v11, 2 }
  0xfc   : > { %v349_v24 = vpop.f32.mrb[6].mxu0  ;;  %v4787_v33 = vpop.f32.mrb[7].mxu1 }
  0xfd   : > { %v4775_v28 = vpop.f32.mrb[7].mxu0 }
  0xfe   : > { %5015 = vmatmul.mubr.msk.bf16.gmra.mrb[112].mxu1 %vm284_vm3, %v1786_v31  ;;  %v2056_v28 = vrot.slane %v2054_v9, 1  ;;  %v2067_v31 = vrot.slane %v2065_v15, 2 }
  0xff   : > { %5033 = vmatmul.mubr.msk.bf16.vlgmr.msra.gmra.mrb[112].mxu0 %vm284_vm3, %v1937_v26  ;;  %5018 = vmatprep.mubr.msk.bf16.mxu1 %vm5527_vm1, %v5526_v1 }
 0x100   : > { %5075 = vmatpush3.bf16.msra.mxu0 %v2240_v30  ;;  %5036 = vmatprep.mubr.msk.bf16.mxu0 %vm5527_vm1, %v5526_v1  ;;  %v2064_v30 = vrot.slane %v2062_v13, 1 }
 0x101   : > { %5118 = vmatprep.subr.bf16.mxu0 %v5526_v1  ;;  %v424_v38 = vpop.f32.mrb[8].mxu1 }
 0x102   : > { %v354_v35 = vpop.f32.mrb[8].mxu0  ;;  %v425_v43 = vadd.f32 %v424_v38, %v338_v3  ;;  %v4792_v44 = vpop.f32.mrb[9].mxu1  ;;  %v2060_v38 = vor.u32 %v2059_v29, %v2056_v28 }
 0x103   : > { %v4778_v37 = vpop.f32.mrb[9].mxu0  ;;  %v427_v46 = vpop.f32.mrb[10].mxu1 }
 0x104   : > { %v357_v39 = vpop.f32.mrb[10].mxu0  ;;  %v428_v49 = vadd.f32 %v427_v46, %v341_v6  ;;  %v4793_v50 = vpop.f32.mrb[11].mxu1  ;;  %v1791_v6 = vrot.slane %v6001_v54, 1  ;;  %v5447_v54 = vld [vmem:[%s5599_s26 + $0x64] ss:$0 sps:$4 sm:$0x11]  }
 0x105   : > { %v4779_v45 = vpop.f32.mrb[11].mxu0  ;;  %v4422_v50 = vld [vmem:[%s6921_s1 + $0xf] sm:$0x1] }
 0x106   : > { %5019 = vmatmul.mubr.msk.bf16.gmra.mrb[116].mxu1 %vm284_vm3, %v1788_v48  ;;  %v1792_v10 = vsel %vm469_vm4, %v1789_v52, %v1791_v6  ;;  %v2083_v6 = vshll.u32 %v6073_v42, 16 }
 0x107   : > { %5037 = vmatmul.mubr.msk.bf16.gmra.mrb[116].mxu0 %vm284_vm3, %v1939_v41  ;;  %5022 = vmatprep.mubr.msk.bf16.mxu1 %vm5527_vm1, %v5526_v1  ;;  %v2068_v41 = vor.u32 %v2067_v31, %v2064_v30  ;;  %v2092_v30 = vshll.u32 %v6088_v61, 16 }
 0x108   : > { %5040 = vmatprep.mubr.msk.bf16.mxu0 %vm5527_vm1, %v5526_v1 }
 0x109   : > { %v432_v57 = vpop.f32.mrb[12].mxu1 }
 0x10a   : > { %v533_v51 = vpop.f32.mrb[12].mxu0  ;;  %v433_v58 = vadd.f32 %v432_v57, %v346_v20  ;;  %v4796_v62 = vpop.f32.mrb[13].mxu1  ;;  %v1943_v20 = vsel %vm469_vm4, %v1940_v40, %v1942_v5  ;;  %v4405_v40 = vcombine.low %v4403_v36, %v6018_v2 }
 0x10b   : > { %v4814_v53 = vpop.f32.mrb[13].mxu0  ;;  %v6084_v55 = vadd.f32 %v533_v51, %v425_v43  ;;  %v435_v3 = vpop.f32.mrb[14].mxu1  ;;  %v2071_v43 = vshrl.u32 %v6056_v27, 16 }
 0x10c   : > { %v536_v59 = vpop.f32.mrb[14].mxu0  ;;  %v436_v4 = vadd.f32 %v435_v3, %v349_v24  ;;  %v4797_v47 = vpop.f32.mrb[15].mxu1  ;;  %v2213_v2 = vrot.slane %v4405_v40, 2 }
 0x10d   : > { %v4815_v63 = vpop.f32.mrb[15].mxu0  ;;  %v6090_v0 = vadd.f32 %v536_v59, %v428_v49 }
 0x10e   : > { %5023 = vmatmul.mubr.msk.bf16.gmra.mrb[120].mxu1 %vm284_vm3, %v1790_v56  ;;  %v2393_v56 = vsel %vm300_vm0, %v4422_v50, 0 }
 0x10f   : > { %5041 = vmatmul.mubr.msk.bf16.gmra.mrb[120].mxu0 %vm284_vm3, %v1941_v60  ;;  %5026 = vmatprep.mubr.msk.bf16.mxu1 %vm5527_vm1, %v5526_v1  ;;  %v2069_v60 = vsel %vm741_vm5, %v2060_v38, %v2068_v41 }
 0x110   : > { %5044 = vmatprep.mubr.msk.bf16.mxu0 %vm5527_vm1, %v5526_v1 }
 0x111   : > { %v440_v18 = vpop.f32.mrb[16].mxu1 }
 0x112   : > { %v541_v8 = vpop.f32.mrb[16].mxu0  ;;  %v441_v21 = vadd.f32 %v440_v18, %v354_v35  ;;  %v4800_v22 = vpop.f32.mrb[17].mxu1  ;;  %v1944_v35 = vrot.slane %v5447_v54, 1 }
 0x113   : > { %v6105_v16 = vadd.f32 %v541_v8, %v433_v58  ;;  %v4818_v17 = vpop.f32.mrb[17].mxu0  ;;  %v443_v26 = vpop.f32.mrb[18].mxu1  ;;  %v2073_v58 = vrot.slane %v2071_v43, 1 }
 0x114   : > { %v544_v19 = vpop.f32.mrb[18].mxu0  ;;  %v444_v33 = vadd.f32 %v443_v26, %v357_v39  ;;  %v4801_v34 = vpop.f32.mrb[19].mxu1  ;;  %v2074_v39 = vshll.u32 %v6056_v27, 16  ;;  %v1945_v49 = vsel %vm469_vm4, %v1942_v5, %v1944_v35  ;;  %v2080_v5 = vshrl.u32 %v6073_v42, 16 }
 0x115   : > { %v6109_v23 = vadd.f32 %v544_v19, %v436_v4  ;;  %v4819_v24 = vpop.f32.mrb[19].mxu0 }
 0x116   : > { %5027 = vmatmul.mubr.msk.bf16.gmra.mrb[124].mxu1 %vm284_vm3, %v1792_v10  ;;  %v2076_v62 = vrot.slane %v2074_v39, 2  ;;  %v2082_v22 = vrot.slane %v2080_v5, 1  ;;  %v2085_v24 = vrot.slane %v2083_v6, 2 }
 0x117   : > { %5045 = vmatmul.mubr.msk.bf16.gmra.mrb[124].mxu0 %vm284_vm3, %v1943_v20  ;;  %5054 = vmatprep.mubr.msk.bf16.mxu1 %vm5527_vm1, %v5526_v1 }
 0x118   : > { %5048 = vmatprep.mubr.msk.bf16.mxu0 %vm5527_vm1, %v5526_v1  ;;  %v2077_v47 = vor.u32 %v2076_v62, %v2073_v58  ;;  %v2086_v29 = vor.u32 %v2085_v24, %v2082_v22 }
 0x119   : > { %v448_v46 = vpop.f32.mrb[20].mxu1 }
 0x11a   : > { %v549_v37 = vpop.f32.mrb[20].mxu0  ;;  %v449_v51 = vadd.f32 %v448_v46, %v6023_v7  ;;  %v4804_v52 = vpop.f32.mrb[21].mxu1  ;;  %v2214_v7 = vrot.slane %v6033_v12, 2  ;;  %v2087_v39 = vsel %vm741_vm5, %v2077_v47, %v2086_v29  ;;  %v2094_v46 = vrot.slane %v2092_v30, 2 }
 0x11b   : > { %v6121_v44 = vadd.f32 %v549_v37, %v441_v21  ;;  %v4822_v45 = vpop.f32.mrb[21].mxu0  ;;  %v451_v59 = vpop.f32.mrb[22].mxu1  ;;  %v2078_v21 = vsel %vm741_vm5, %v2068_v41, %v2077_v47 }
 0x11c   : > { %v552_v48 = vpop.f32.mrb[22].mxu0  ;;  %v452_v63 = vadd.f32 %v451_v59, %v6035_v14  ;;  %v4805_v3 = vpop.f32.mrb[23].mxu1  ;;  %v4435_v14 = vld [vmem:[%s6921_s1 + $0x10] sm:$0x1]  ;;  %v2215_v13 = vsel %vm902_vm6, %v2213_v2, %v2214_v7 }
 0x11d   : > { %v6129_v53 = vadd.f32 %v552_v48, %v444_v33  ;;  %v4823_v57 = vpop.f32.mrb[23].mxu0  ;;  %v2553_v20 = vsel %vm300_vm0, %v4435_v14, 0  ;;  %v6174_v48 = vld [vmem:[%s5599_s26 + $0x64] ss:$0 sps:$4 sm:$0x33]  }
 0x11e   : > { %5055 = vmatmul.mubr.msk.bf16.vlgmr.msra.gmra.mrb[128].mxu1 %vm284_vm3, %v2069_v60  ;;  %v2098_v52 = vshrl.u32 %v6174_v48, 16  ;;  %v2101_v57 = vshll.u32 %v6174_v48, 16 }
 0x11f   : > { %5049 = vmatmul.mubr.msk.bf16.gmra.mrb[128].mxu0 %vm284_vm3, %v1945_v49  ;;  %5097 = vmatpush3.bf16.msra.mxu1 %v2393_v56 }
 0x120   : > { %5076 = vmatprep.mubr.msk.bf16.mxu0 %vm5527_vm1, %v5526_v1  ;;  %5058 = vmatprep.mubr.msk.bf16.mxu1 %vm5527_vm1, %v5526_v1  ;;  %v2103_v47 = vrot.slane %v2101_v57, 2 }
 0x121   : > { %5140 = vmatprep.subr.bf16.mxu1 %v5526_v1  ;;  %v456_v12 = vpop.f32.mrb[24].mxu1 }
 0x122   : > { %v557_v4 = vpop.f32.mrb[24].mxu0  ;;  %v457_v15 = vadd.f32 %v456_v12, %v6052_v25  ;;  %v4808_v17 = vpop.f32.mrb[25].mxu1  ;;  %v2216_v25 = vrot.slane %v6056_v27, 2  ;;  %v4411_v12 = vld [vmem:[%s5599_s26 + $0x40] sm:$0xc] }
 0x123   : > { %v6146_v8 = vadd.f32 %v557_v4, %v449_v51  ;;  %v4826_v9 = vpop.f32.mrb[25].mxu0  ;;  %v459_v54 = vpop.f32.mrb[26].mxu1  ;;  %v2100_v4 = vrot.slane %v2098_v52, 1 }
 0x124   : > { %v560_v11 = vpop.f32.mrb[26].mxu0  ;;  %v460_v10 = vadd.f32 %v459_v54, %v6059_v32  ;;  %v4809_v26 = vpop.f32.mrb[27].mxu1  ;;  %v2089_v32 = vshrl.u32 %v6088_v61, 16  ;;  %v2217_v27 = vsel %vm902_vm6, %v2214_v7, %v2216_v25 }
 0x125   : > { %v6151_v18 = vadd.f32 %v560_v11, %v452_v63  ;;  %v4827_v19 = vpop.f32.mrb[27].mxu0  ;;  %v2104_v9 = vor.u32 %v2103_v47, %v2100_v4  ;;  %v6203_v11 = vld [vmem:[%s5599_s26 + $0x44] sm:$0xf]  ;;  %v6214_v26 = vld [vmem:[%s5599_s26 + $0x48] sm:$0xff]  }
 0x126   : > { %5059 = vmatmul.mubr.msk.bf16.gmra.mrb[132].mxu1 %vm284_vm3, %v2078_v21  ;;  %v2091_v45 = vrot.slane %v2089_v32, 1  ;;  %v4423_v22 = vcombine.low %v4411_v12, %v6203_v11  ;;  %v2493_v30 = vshrl.u32 %v6214_v26, 16 }
 0x127   : > { %5077 = vmatmul.mubr.msk.bf16.vlgmr.msra.gmra.mrb[132].mxu0 %vm284_vm3, %v2215_v13  ;;  %5062 = vmatprep.mubr.msk.bf16.mxu1 %vm5527_vm1, %v5526_v1 }
 0x128   : > { %5119 = vmatpush3.bf16.msra.mxu0 %v2553_v20  ;;  %5080 = vmatprep.mubr.msk.bf16.mxu0 %vm5527_vm1, %v5526_v1  ;;  %v2095_v51 = vor.u32 %v2094_v46, %v2091_v45  ;;  %v2488_v32 = vshll.u32 %v4423_v22, 16  ;;  %v4443_v46 = vld [vmem:[%s6921_s1 + $0x11] sm:$0x1] }
 0x129   : > { %5162 = vmatprep.subr.bf16.mxu0 %v5526_v1  ;;  %v686_v34 = vpop.f32.mrb[28].mxu1 }
 0x12a   : > { %v565_v28 = vpop.f32.mrb[28].mxu0  ;;  %v725_v36 = vadd.f32 %v686_v34, %v6084_v55  ;;  %v4836_v37 = vpop.f32.mrb[29].mxu1  ;;  %v2218_v55 = vrot.slane %v6073_v42, 2  ;;  %v2096_v7 = vsel %vm741_vm5, %v2086_v29, %v2095_v51  ;;  %v2485_v29 = vshrl.u32 %v4423_v22, 16 }
 0x12b   : > { %v6166_v31 = vadd.f32 %v565_v28, %v457_v15  ;;  %v4830_v33 = vpop.f32.mrb[29].mxu0  ;;  %v689_v43 = vpop.f32.mrb[30].mxu1 }
 0x12c   : > { %v568_v35 = vpop.f32.mrb[30].mxu0  ;;  %v726_v49 = vadd.f32 %v689_v43, %v6090_v0  ;;  %v4837_v50 = vpop.f32.mrb[31].mxu1  ;;  %v2219_v62 = vsel %vm902_vm6, %v2216_v25, %v2218_v55  ;;  %v2496_v33 = vshll.u32 %v6214_v26, 16  ;;  %v2487_v37 = vrot.slane %v2485_v29, 2 }
 0x12d   : > { %v6170_v38 = vadd.f32 %v568_v35, %v460_v10  ;;  %v4831_v41 = vpop.f32.mrb[31].mxu0  ;;  %v2105_v10 = vsel %vm741_vm5, %v2095_v51, %v2104_v9  ;;  %v2367_v35 = vrot.slane %v6214_v26, 2 }
 0x12e   : > { %5063 = vmatmul.mubr.msk.bf16.gmra.mrb[136].mxu1 %vm284_vm3, %v2087_v39  ;;  %v2490_v41 = vrot.slane %v2488_v32, 3 }
 0x12f   : > { %5081 = vmatmul.mubr.msk.bf16.gmra.mrb[136].mxu0 %vm284_vm3, %v2217_v27  ;;  %5066 = vmatprep.mubr.msk.bf16.mxu1 %vm5527_vm1, %v5526_v1 }
 0x130   : > { %5084 = vmatprep.mubr.msk.bf16.mxu0 %vm5527_vm1, %v5526_v1 }
 0x131   : > { %v694_v60 = vpop.f32.mrb[32].mxu1 }
 0x132   : > { %v847_v40 = vpop.f32.mrb[32].mxu0  ;;  %v727_v42 = vadd.f32 %v694_v60, %v6105_v16  ;;  %v4840_v63 = vpop.f32.mrb[33].mxu1  ;;  %v2220_v16 = vrot.slane %v6088_v61, 2 }
 0x133   : > { %v6186_v0 = vadd.f32 %v847_v40, %v725_v36  ;;  %v4858_v59 = vpop.f32.mrb[33].mxu0  ;;  %v697_v2 = vpop.f32.mrb[34].mxu1 }
 0x134   : > { %v850_v58 = vpop.f32.mrb[34].mxu0  ;;  %v728_v14 = vadd.f32 %v697_v2, %v6109_v23  ;;  %v4841_v5 = vpop.f32.mrb[35].mxu1  ;;  %v2221_v19 = vsel %vm902_vm6, %v2218_v55, %v2220_v16  ;;  %v6238_v59 = vld [vmem:[%s5599_s26 + $0x50] sm:$0xff]  }
 0x135   : > { %v6190_v3 = vadd.f32 %v850_v58, %v726_v49  ;;  %v4859_v56 = vpop.f32.mrb[35].mxu0  ;;  %v2498_v49 = vrot.slane %v2496_v33, 3  ;;  %v2502_v63 = vshrl.u32 %v6238_v59, 16 }
 0x136   : > { %5067 = vmatmul.mubr.msk.bf16.gmra.mrb[140].mxu1 %vm284_vm3, %v2096_v7  ;;  %v2505_v56 = vshll.u32 %v6238_v59, 16  ;;  %v4460_v7 = vld [vmem:[%s6921_s1 + $0x12] sm:$0x1] }
 0x137   : > { %5085 = vmatmul.mubr.msk.bf16.gmra.mrb[140].mxu0 %vm284_vm3, %v2219_v62  ;;  %5070 = vmatprep.mubr.msk.bf16.mxu1 %vm5527_vm1, %v5526_v1  ;;  %v2671_v62 = vsel %vm300_vm0, %v4443_v46, 0 }
 0x138   : > { %5088 = vmatprep.mubr.msk.bf16.mxu0 %vm5527_vm1, %v5526_v1  ;;  %v2507_v9 = vrot.slane %v2505_v56, 3 }
 0x139   : > { %v702_v15 = vpop.f32.mrb[36].mxu1 }
 0x13a   : > { %v855_v6 = vpop.f32.mrb[36].mxu0  ;;  %v729_v61 = vadd.f32 %v702_v15, %v6121_v44  ;;  %v4844_v20 = vpop.f32.mrb[37].mxu1  ;;  %v2222_v44 = vrot.slane %v6174_v48, 2  ;;  %v2495_v48 = vrot.slane %v2493_v30, 2 }
 0x13b   : > { %v6205_v23 = vadd.f32 %v855_v6, %v727_v42  ;;  %v4862_v13 = vpop.f32.mrb[37].mxu0  ;;  %v705_v24 = vpop.f32.mrb[38].mxu1  ;;  %v2504_v6 = vrot.slane %v2502_v63, 2 }
 0x13c   : > { %v858_v17 = vpop.f32.mrb[38].mxu0  ;;  %v730_v25 = vadd.f32 %v705_v24, %v6129_v53  ;;  %v4845_v28 = vpop.f32.mrb[39].mxu1  ;;  %v2366_v53 = vrot.slane %v4423_v22, 2  ;;  %v2223_v45 = vsel %vm902_vm6, %v2220_v16, %v2222_v44  ;;  %v2499_v42 = vor.u32 %v2498_v49, %v2495_v48 }
 0x13d   : > { %v6209_v54 = vadd.f32 %v858_v17, %v728_v14  ;;  %v4863_v21 = vpop.f32.mrb[39].mxu0 }
 0x13e   : > { %5071 = vmatmul.mubr.msk.bf16.gmra.mrb[144].mxu1 %vm284_vm3, %v2105_v10  ;;  %v2368_v57 = vsel %vm902_vm6, %v2366_v53, %v2367_v35  ;;  %v6264_v21 = vld [vmem:[%s5599_s26 + $0x58] sm:$0xff]  }
 0x13f   : > { %5089 = vmatmul.mubr.msk.bf16.gmra.mrb[144].mxu0 %vm284_vm3, %v2221_v19  ;;  %5098 = vmatprep.mubr.msk.bf16.mxu1 %vm5527_vm1, %v5526_v1  ;;  %v2813_v19 = vsel %vm300_vm0, %v4460_v7, 0  ;;  %v2511_v10 = vshrl.u32 %v6264_v21, 16 }
 0x140   : > { %5092 = vmatprep.mubr.msk.bf16.mxu0 %vm5527_vm1, %v5526_v1 }
 0x141   : > { %v710_v43 = vpop.f32.mrb[40].mxu1 }
 0x142   : > { %v863_v34 = vpop.f32.mrb[40].mxu0  ;;  %v731_v50 = vadd.f32 %v710_v43, %v6146_v8  ;;  %v4848_v55 = vpop.f32.mrb[41].mxu1  ;;  %v2491_v8 = vor.u32 %v2490_v41, %v2487_v37  ;;  %v6284_v43 = vld [vmem:[%s5599_s26 + $0x60] sm:$0xff]  }
 0x143   : > { %v6227_v27 = vadd.f32 %v863_v34, %v729_v61  ;;  %v4866_v36 = vpop.f32.mrb[41].mxu0  ;;  %v713_v52 = vpop.f32.mrb[42].mxu1  ;;  %v2513_v34 = vrot.slane %v2511_v10, 2  ;;  %v2520_v49 = vshrl.u32 %v6284_v43, 16 }
 0x144   : > { %v866_v39 = vpop.f32.mrb[42].mxu0  ;;  %v732_v60 = vadd.f32 %v713_v52, %v6151_v18  ;;  %v4849_v58 = vpop.f32.mrb[43].mxu1  ;;  %v2369_v18 = vrot.slane %v6238_v59, 2  ;;  %v2500_v16 = vsel %vm1174_vm7, %v2491_v8, %v2499_v42 }
 0x145   : > { %v6234_v40 = vadd.f32 %v866_v39, %v730_v25  ;;  %v4867_v51 = vpop.f32.mrb[43].mxu0  ;;  %v2514_v25 = vshll.u32 %v6264_v21, 16 }
 0x146   : > { %5099 = vmatmul.mubr.msk.bf16.vlgmr.msra.gmra.mrb[148].mxu1 %vm284_vm3, %v2368_v57  ;;  %v2370_v20 = vsel %vm902_vm6, %v2367_v35, %v2369_v18  ;;  %v2522_v57 = vrot.slane %v2520_v49, 2 }
 0x147   : > { %5093 = vmatmul.mubr.msk.bf16.gmra.mrb[148].mxu0 %vm284_vm3, %v2223_v45  ;;  %5141 = vmatpush3.bf16.msra.mxu1 %v2671_v62  ;;  %v2516_v53 = vrot.slane %v2514_v25, 3 }
 0x148   : > { %5120 = vmatprep.mubr.msk.bf16.mxu0 %vm5527_vm1, %v5526_v1  ;;  %5102 = vmatprep.mubr.msk.bf16.mxu1 %vm5527_vm1, %v5526_v1 }
 0x149   : > { %5184 = vmatprep.subr.bf16.mxu1 %v5526_v1  ;;  %v718_v14 = vpop.f32.mrb[44].mxu1 }
 0x14a   : > { %v871_v2 = vpop.f32.mrb[44].mxu0  ;;  %v733_v12 = vadd.f32 %v718_v14, %v6166_v31  ;;  %v4852_v13 = vpop.f32.mrb[45].mxu1  ;;  %v2508_v31 = vor.u32 %v2507_v9, %v2504_v6  ;;  %v5455_v14 = vld [vmem:[%s5599_s26 + $0x68] ss:$0 sps:$4 sm:$0x33]  }
 0x14b   : > { %v6254_v4 = vadd.f32 %v871_v2, %v731_v50  ;;  %v4870_v47 = vpop.f32.mrb[45].mxu0  ;;  %v721_v61 = vpop.f32.mrb[46].mxu1  ;;  %v2523_v50 = vshll.u32 %v6284_v43, 16  ;;  %v2375_v13 = vrot.slane %v5455_v14, 2 }
 0x14c   : > { %v874_v5 = vpop.f32.mrb[46].mxu0  ;;  %v734_v22 = vadd.f32 %v721_v61, %v6170_v38  ;;  %v4853_v24 = vpop.f32.mrb[47].mxu1  ;;  %v2371_v38 = vrot.slane %v6264_v21, 2  ;;  %v2509_v33 = vsel %vm1174_vm7, %v2499_v42, %v2508_v31  ;;  %v6301_v42 = vld [vmem:[%s5599_s26 + $0x68] ss:$0 sps:$4 sm:$0x77]  }
 0x14d   : > { %v6259_v15 = vadd.f32 %v874_v5, %v732_v60  ;;  %v4871_v17 = vpop.f32.mrb[47].mxu0  ;;  %v2525_v8 = vrot.slane %v2523_v50, 3  ;;  %v2532_v9 = vshll.u32 %v6301_v42, 16 }
 0x14e   : > { %5103 = vmatmul.mubr.msk.bf16.gmra.mrb[152].mxu1 %vm284_vm3, %v2370_v20  ;;  %v2372_v45 = vsel %vm902_vm6, %v2369_v18, %v2371_v38 }
 0x14f   : > { %5121 = vmatmul.mubr.msk.bf16.vlgmr.msra.gmra.mrb[152].mxu0 %vm284_vm3, %v2500_v16  ;;  %5106 = vmatprep.mubr.msk.bf16.mxu1 %vm5527_vm1, %v5526_v1  ;;  %v2526_v6 = vor.u32 %v2525_v8, %v2522_v57  ;;  %v5458_v8 = vld [vmem:[%s5599_s26 + $0x70] sm:$0xff]  }
 0x150   : > { %5163 = vmatpush3.bf16.msra.mxu0 %v2813_v19  ;;  %5124 = vmatprep.mubr.msk.bf16.mxu0 %vm5527_vm1, %v5526_v1  ;;  %v4442_v19 = vld [vmem:[%s5599_s26 + $0x40] sm:$0x8] }
 0x151   : > { %5206 = vmatprep.subr.bf16.mxu0 %v5526_v1  ;;  %v966_v44 = vpop.f32.mrb[48].mxu1 }
 0x152   : > { %v879_v28 = vpop.f32.mrb[48].mxu0  ;;  %v1005_v35 = vadd.f32 %v966_v44, %v6186_v0  ;;  %v4880_v36 = vpop.f32.mrb[49].mxu1  ;;  %v2517_v0 = vor.u32 %v2516_v53, %v2513_v34 }
 0x153   : > { %v6277_v29 = vadd.f32 %v879_v28, %v733_v12  ;;  %v4874_v32 = vpop.f32.mrb[49].mxu0  ;;  %v969_v39 = vpop.f32.mrb[50].mxu1  ;;  %v2645_v36 = vrot.slane %v6214_v26, 3 }
 0x154   : > { %v882_v30 = vpop.f32.mrb[50].mxu0  ;;  %v1006_v46 = vadd.f32 %v969_v39, %v6190_v3  ;;  %v4881_v48 = vpop.f32.mrb[51].mxu1  ;;  %v2373_v3 = vrot.slane %v6284_v43, 2  ;;  %v2518_v62 = vsel %vm1174_vm7, %v2508_v31, %v2517_v0  ;;  %v2534_v31 = vrot.slane %v2532_v9, 3 }
 0x155   : > { %v6281_v37 = vadd.f32 %v882_v30, %v734_v22  ;;  %v4875_v41 = vpop.f32.mrb[51].mxu0  ;;  %v2527_v22 = vsel %vm1174_vm7, %v2517_v0, %v2526_v6  ;;  %v4444_v30 = vcombine.low %v4442_v19, %v6203_v11  ;;  %v2649_v9 = vrot.slane %v6264_v21, 3 }
 0x156   : > { %5107 = vmatmul.mubr.msk.bf16.gmra.mrb[156].mxu1 %vm284_vm3, %v2372_v45  ;;  %v2374_v47 = vsel %vm902_vm6, %v2371_v38, %v2373_v3  ;;  %v2376_v44 = vsel %vm902_vm6, %v2373_v3, %v2375_v13  ;;  %v5459_v13 = vld [vmem:[%s5599_s26 + $0x78] sm:$0xff]  }
 0x157   : > { %5125 = vmatmul.mubr.msk.bf16.gmra.mrb[156].mxu0 %vm284_vm3, %v2509_v33  ;;  %5110 = vmatprep.mubr.msk.bf16.mxu1 %vm5527_vm1, %v5526_v1 }
 0x158   : > { %5128 = vmatprep.mubr.msk.bf16.mxu0 %vm5527_vm1, %v5526_v1 }
 0x159   : > { %v974_v60 = vpop.f32.mrb[52].mxu1 }
 0x15a   : > { %v1119_v55 = vpop.f32.mrb[52].mxu0  ;;  %v1007_v63 = vadd.f32 %v974_v60, %v6205_v23  ;;  %v4884_v56 = vpop.f32.mrb[53].mxu1  ;;  %v2529_v23 = vshrl.u32 %v6301_v42, 16  ;;  %v2647_v60 = vrot.slane %v6238_v59, 3 }
 0x15b   : > { %v6297_v51 = vadd.f32 %v1119_v55, %v1005_v35  ;;  %v4902_v52 = vpop.f32.mrb[53].mxu0  ;;  %v977_v7 = vpop.f32.mrb[54].mxu1  ;;  %v2644_v35 = vrot.slane %v4444_v30, 3  ;;  %v5460_v30 = vld [vmem:[%s5599_s26 + $0x80] sm:$0xff]  }
 0x15c   : > { %v1122_v58 = vpop.f32.mrb[54].mxu0  ;;  %v1008_v5 = vadd.f32 %v977_v7, %v6209_v54  ;;  %v4885_v16 = vpop.f32.mrb[55].mxu1  ;;  %v2531_v24 = vrot.slane %v2529_v23, 2 }
 0x15d   : > { %v6304_v2 = vadd.f32 %v1122_v58, %v1006_v46  ;;  %v4903_v18 = vpop.f32.mrb[55].mxu0  ;;  %v4482_v46 = vld [vmem:[%s6921_s1 + $0x13] sm:$0x1]  ;;  %v2646_v26 = vsel %vm1335_vm8, %v2644_v35, %v2645_v36  ;;  %v2648_v16 = vsel %vm1335_vm8, %v2645_v36, %v2647_v60 }
 0x15e   : > { %5111 = vmatmul.mubr.msk.bf16.gmra.mrb[160].mxu1 %vm284_vm3, %v2374_v47  ;;  %v2535_v53 = vor.u32 %v2534_v31, %v2531_v24  ;;  %v2999_v57 = vsel %vm300_vm0, %v4482_v46, 0 }
 0x15f   : > { %5129 = vmatmul.mubr.msk.bf16.gmra.mrb[160].mxu0 %vm284_vm3, %v2518_v62  ;;  %5114 = vmatprep.mubr.msk.bf16.mxu1 %vm5527_vm1, %v5526_v1 }
 0x160   : > { %5132 = vmatprep.mubr.msk.bf16.mxu0 %vm5527_vm1, %v5526_v1  ;;  %v2536_v45 = vsel %vm1174_vm7, %v2526_v6, %v2535_v53 }
 0x161   : > { %v982_v61 = vpop.f32.mrb[56].mxu1 }
 0x162   : > { %v1127_v12 = vpop.f32.mrb[56].mxu0  ;;  %v1009_v10 = vadd.f32 %v982_v61, %v6227_v27  ;;  %v4888_v25 = vpop.f32.mrb[57].mxu1 }
 0x163   : > { %v6317_v17 = vadd.f32 %v1127_v12, %v1007_v63  ;;  %v4906_v54 = vpop.f32.mrb[57].mxu0  ;;  %v985_v32 = vpop.f32.mrb[58].mxu1 }
 0x164   : > { %v1130_v20 = vpop.f32.mrb[58].mxu0  ;;  %v1010_v33 = vadd.f32 %v985_v32, %v6234_v40  ;;  %v4889_v34 = vpop.f32.mrb[59].mxu1 }
 0x165   : > { %v6322_v28 = vadd.f32 %v1130_v20, %v1008_v5  ;;  %v4907_v38 = vpop.f32.mrb[59].mxu0 }
 0x166   : > { %5115 = vmatmul.mubr.msk.bf16.gmra.mrb[164].mxu1 %vm284_vm3, %v2376_v44  ;;  %v2651_v38 = vrot.slane %v6284_v43, 3 }
 0x167   : > { %5133 = vmatmul.mubr.msk.bf16.gmra.mrb[164].mxu0 %vm284_vm3, %v2527_v22  ;;  %5142 = vmatprep.mubr.msk.bf16.mxu1 %vm5527_vm1, %v5526_v1 }
 0x168   : > { %5136 = vmatprep.mubr.msk.bf16.mxu0 %vm5527_vm1, %v5526_v1  ;;  %v2652_v43 = vsel %vm1335_vm8, %v2649_v9, %v2651_v38 }
 0x169   : > { %v990_v40 = vpop.f32.mrb[60].mxu1 }
 0x16a   : > { %v1135_v27 = vpop.f32.mrb[60].mxu0  ;;  %v1011_v48 = vadd.f32 %v990_v40, %v6254_v4  ;;  %v4892_v49 = vpop.f32.mrb[61].mxu1 }
 0x16b   : > { %v6334_v41 = vadd.f32 %v1135_v27, %v1009_v10  ;;  %v4910_v11 = vpop.f32.mrb[61].mxu0  ;;  %v993_v55 = vpop.f32.mrb[62].mxu1  ;;  %v2650_v10 = vsel %vm1335_vm8, %v2647_v60, %v2649_v9  ;;  %v6410_v49 = vld [vmem:[%s5599_s26 + $0x78] sm:$0xff]  }
 0x16c   : > { %v1138_v39 = vpop.f32.mrb[62].mxu0  ;;  %v1012_v3 = vadd.f32 %v993_v55, %v6259_v15  ;;  %v4893_v52 = vpop.f32.mrb[63].mxu1  ;;  %v4495_v15 = vld [vmem:[%s6921_s1 + $0x14] sm:$0x1] }
 0x16d   : > { %v6341_v0 = vadd.f32 %v1138_v39, %v1010_v33  ;;  %v4911_v50 = vpop.f32.mrb[63].mxu0  ;;  %v3117_v59 = vsel %vm300_vm0, %v4495_v15, 0  ;;  %v4471_v33 = vld [vmem:[%s5599_s26 + $0x70] sm:$0xf] }
 0x16e   : > { %5143 = vmatmul.mubr.msk.bf16.vlgmr.msra.gmra.mrb[168].mxu1 %vm284_vm3, %v2646_v26  ;;  %v5461_v26 = vld [vmem:[%s5599_s26 + $0x88] sm:$0xff]  }
 0x16f   : > { %5137 = vmatmul.mubr.msk.bf16.gmra.mrb[168].mxu0 %vm284_vm3, %v2536_v45  ;;  %5185 = vmatpush3.bf16.msra.mxu1 %v2999_v57 }
 0x170   : > { %5164 = vmatprep.mubr.msk.bf16.mxu0 %vm5527_vm1, %v5526_v1  ;;  %5146 = vmatprep.mubr.msk.bf16.mxu1 %vm5527_vm1, %v5526_v1 }
 0x171   : > { %5228 = vmatprep.subr.bf16.mxu1 %v5526_v1  ;;  %v998_v63 = vpop.f32.mrb[64].mxu1 }
 0x172   : > { %v1143_v4 = vpop.f32.mrb[64].mxu0  ;;  %v1013_v18 = vadd.f32 %v998_v63, %v6277_v29  ;;  %v4896_v7 = vpop.f32.mrb[65].mxu1 }
 0x173   : > { %v6356_v58 = vadd.f32 %v1143_v4, %v1011_v48  ;;  %v4914_v62 = vpop.f32.mrb[65].mxu0  ;;  %v1001_v5 = vpop.f32.mrb[66].mxu1  ;;  %v2653_v48 = vrot.slane %v6301_v42, 3 }
 0x174   : > { %v1146_v56 = vpop.f32.mrb[66].mxu0  ;;  %v1014_v6 = vadd.f32 %v1001_v5, %v6281_v37  ;;  %v4897_v23 = vpop.f32.mrb[67].mxu1 }
 0x175   : > { %v6361_v47 = vadd.f32 %v1146_v56, %v1012_v3  ;;  %v4915_v14 = vpop.f32.mrb[67].mxu0  ;;  %v2654_v42 = vsel %vm1335_vm8, %v2651_v38, %v2653_v48  ;;  %v2947_v56 = vshll.u32 %v6410_v49, 16  ;;  %v5462_v23 = vld [vmem:[%s5599_s26 + $0x90] sm:$0xff]  }
 0x176   : > { %5147 = vmatmul.mubr.msk.bf16.gmra.mrb[172].mxu1 %vm284_vm3, %v2648_v16  ;;  %v6429_v16 = vld [vmem:[%s5599_s26 + $0x80] sm:$0xff]  }
 0x177   : > { %5165 = vmatmul.mubr.msk.bf16.vlgmr.msra.gmra.mrb[172].mxu0 %vm284_vm3, %v5458_v8  ;;  %5150 = vmatprep.mubr.msk.bf16.mxu1 %vm5527_vm1, %v5526_v1  ;;  %v2949_v5 = vrot.slane %v2947_v56, 1 }
 0x178   : > { %5207 = vmatpush3.bf16.msra.mxu0 %v3117_v59  ;;  %5168 = vmatprep.mubr.msk.bf16.mxu0 %vm5527_vm1, %v5526_v1 }
 0x179   : > { %5250 = vmatprep.subr.bf16.mxu0 %v5526_v1  ;;  %v1280_v54 = vpop.f32.mrb[68].mxu1 }
 0x17a   : > { %v1151_v29 = vpop.f32.mrb[68].mxu0  ;;  %v1319_v61 = vadd.f32 %v1280_v54, %v6297_v51  ;;  %v4924_v20 = vpop.f32.mrb[69].mxu1 }
 0x17b   : > { %v6374_v12 = vadd.f32 %v1151_v29, %v1013_v18  ;;  %v4918_v37 = vpop.f32.mrb[69].mxu0  ;;  %v1283_v31 = vpop.f32.mrb[70].mxu1 }
 0x17c   : > { %v1154_v19 = vpop.f32.mrb[70].mxu0  ;;  %v1320_v21 = vadd.f32 %v1283_v31, %v6304_v2  ;;  %v4925_v25 = vpop.f32.mrb[71].mxu1  ;;  %v6394_v2 = vld [vmem:[%s5599_s26 + $0x74] sm:$0xf] }
 0x17d   : > { %v6378_v22 = vadd.f32 %v1154_v19, %v1014_v6  ;;  %v4919_v24 = vpop.f32.mrb[71].mxu0  ;;  %v4483_v39 = vcombine.low %v4471_v33, %v6394_v2  ;;  %v4513_v37 = vld [vmem:[%s6921_s1 + $0x15] sm:$0x1] }
 0x17e   : > { %5151 = vmatmul.mubr.msk.bf16.gmra.mrb[176].mxu1 %vm284_vm3, %v2650_v10  ;;  %v2951_v10 = vshrl.u32 %v6410_v49, 16  ;;  %v3270_v38 = vsel %vm300_vm0, %v4513_v37, 0 }
 0x17f   : > { %5169 = vmatmul.mubr.msk.bf16.gmra.mrb[176].mxu0 %vm284_vm3, %v5459_v13  ;;  %5154 = vmatprep.mubr.msk.bf16.mxu1 %vm5527_vm1, %v5526_v1  ;;  %v2942_v50 = vshll.u32 %v4483_v39, 16  ;;  %v2940_v8 = vshrl.u32 %v4483_v39, 16 }
 0x180   : > { %5172 = vmatprep.mubr.msk.bf16.mxu0 %vm5527_vm1, %v5526_v1  ;;  %v2953_v33 = vor.u32 %v2951_v10, %v2949_v5 }
 0x181   : > { %v1288_v34 = vpop.f32.mrb[72].mxu1  ;;  %v2944_v63 = vrot.slane %v2942_v50, 1  ;;  %v2959_v50 = vshrl.u32 %v6429_v16, 16 }
 0x182   : > { %v1399_v51 = vpop.f32.mrb[72].mxu0  ;;  %v1321_v27 = vadd.f32 %v1288_v34, %v6317_v17  ;;  %v4928_v35 = vpop.f32.mrb[73].mxu1  ;;  %v6457_v34 = vld [vmem:[%s5599_s26 + $0x88] sm:$0xff]  }
 0x183   : > { %v6389_v32 = vadd.f32 %v1399_v51, %v1319_v61  ;;  %v4946_v44 = vpop.f32.mrb[73].mxu0  ;;  %v1291_v40 = vpop.f32.mrb[74].mxu1  ;;  %v2945_v59 = vor.u32 %v2944_v63, %v2940_v8 }
 0x184   : > { %v1402_v53 = vpop.f32.mrb[74].mxu0  ;;  %v1322_v45 = vadd.f32 %v1291_v40, %v6322_v28  ;;  %v4929_v46 = vpop.f32.mrb[75].mxu1  ;;  %v3091_v44 = vrot.slane %v6410_v49, 1 }
 0x185   : > { %v6397_v36 = vadd.f32 %v1402_v53, %v1320_v21  ;;  %v4947_v11 = vpop.f32.mrb[75].mxu0  ;;  %v2950_v31 = vsel %vm239_vm2, %v2945_v59, %v2949_v5  ;;  %v2955_v21 = vshll.u32 %v6429_v16, 16  ;;  %v2967_v5 = vshrl.u32 %v6457_v34, 16 }
 0x186   : > { %5155 = vmatmul.mubr.msk.bf16.gmra.mrb[180].mxu1 %vm284_vm3, %v2652_v43 }
 0x187   : > { %5173 = vmatmul.mubr.msk.bf16.gmra.mrb[180].mxu0 %vm284_vm3, %v5460_v30  ;;  %5158 = vmatprep.mubr.msk.bf16.mxu1 %vm5527_vm1, %v5526_v1 }
 0x188   : > { %5176 = vmatprep.mubr.msk.bf16.mxu0 %vm5527_vm1, %v5526_v1 }
 0x189   : > { %v1296_v3 = vpop.f32.mrb[76].mxu1 }
 0x18a   : > { %v1407_v17 = vpop.f32.mrb[76].mxu0  ;;  %v1323_v57 = vadd.f32 %v1296_v3, %v6334_v41  ;;  %v4932_v4 = vpop.f32.mrb[77].mxu1  ;;  %v4494_v41 = vld [vmem:[%s5599_s26 + $0x70] sm:$0xe] }
 0x18b   : > { %v6412_v55 = vadd.f32 %v1407_v17, %v1321_v27  ;;  %v4950_v28 = vpop.f32.mrb[77].mxu0  ;;  %v1299_v62 = vpop.f32.mrb[78].mxu1  ;;  %v4496_v13 = vcombine.low %v4494_v41, %v6394_v2  ;;  %v4526_v2 = vld [vmem:[%s6921_s1 + $0x16] sm:$0x1] }
 0x18c   : > { %v1410_v52 = vpop.f32.mrb[78].mxu0  ;;  %v1324_v18 = vadd.f32 %v1299_v62, %v6341_v0  ;;  %v4933_v7 = vpop.f32.mrb[79].mxu1  ;;  %v3430_v17 = vsel %vm300_vm0, %v4526_v2, 0  ;;  %v2963_v28 = vshll.u32 %v6457_v34, 16 }
 0x18d   : > { %v6416_v60 = vadd.f32 %v1410_v52, %v1322_v45  ;;  %v4951_v15 = vpop.f32.mrb[79].mxu0 }
 0x18e   : > { %5159 = vmatmul.mubr.msk.bf16.gmra.mrb[184].mxu1 %vm284_vm3, %v2654_v42  ;;  %v2965_v4 = vrot.slane %v2963_v28, 1 }
 0x18f   : > { %5177 = vmatmul.mubr.msk.bf16.gmra.mrb[184].mxu0 %vm284_vm3, %v5461_v26  ;;  %5186 = vmatprep.mubr.msk.bf16.mxu1 %vm5527_vm1, %v5526_v1 }
 0x190   : > { %5180 = vmatprep.mubr.msk.bf16.mxu0 %vm5527_vm1, %v5526_v1 }
 0x191   : > { %v1304_v29 = vpop.f32.mrb[80].mxu1 }
 0x192   : > { %v1415_v14 = vpop.f32.mrb[80].mxu0  ;;  %v1325_v54 = vadd.f32 %v1304_v29, %v6356_v58  ;;  %v4936_v19 = vpop.f32.mrb[81].mxu1  ;;  %v3090_v58 = vrot.slane %v4496_v13, 1  ;;  %v5469_v13 = vld [vmem:[%s5599_s26 + $0x98] ss:$0 sps:$4 sm:$0x11]  }
 0x193   : > { %v6431_v6 = vadd.f32 %v1415_v14, %v1323_v57  ;;  %v4954_v0 = vpop.f32.mrb[81].mxu0  ;;  %v1307_v24 = vpop.f32.mrb[82].mxu1 }
 0x194   : > { %v1418_v9 = vpop.f32.mrb[82].mxu0  ;;  %v1326_v25 = vadd.f32 %v1307_v24, %v6361_v47  ;;  %v4937_v51 = vpop.f32.mrb[83].mxu1  ;;  %v2957_v47 = vrot.slane %v2955_v21, 1  ;;  %v3092_v40 = vsel %vm469_vm4, %v3090_v58, %v3091_v44 }
 0x195   : > { %v6439_v61 = vadd.f32 %v1418_v9, %v1324_v18  ;;  %v4955_v20 = vpop.f32.mrb[83].mxu0  ;;  %v2969_v9 = vor.u32 %v2967_v5, %v2965_v4 }
 0x196   : > { %5187 = vmatmul.mubr.msk.bf16.vlgmr.msra.gmra.mrb[188].mxu1 %vm284_vm3, %v2950_v31  ;;  %v2958_v49 = vsel %vm239_vm2, %v2953_v33, %v2957_v47  ;;  %v2961_v57 = vor.u32 %v2959_v50, %v2957_v47 }
 0x197   : > { %5181 = vmatmul.mubr.msk.bf16.gmra.mrb[188].mxu0 %vm284_vm3, %v5462_v23  ;;  %5229 = vmatpush3.bf16.msra.mxu1 %v3270_v38 }
 0x198   : > { %5208 = vmatprep.mubr.msk.bf16.mxu0 %vm5527_vm1, %v5526_v1  ;;  %5190 = vmatprep.mubr.msk.bf16.mxu1 %vm5527_vm1, %v5526_v1  ;;  %v2966_v59 = vsel %vm239_vm2, %v2961_v57, %v2965_v4 }
 0x199   : > { %5272 = vmatprep.subr.bf16.mxu1 %v5526_v1  ;;  %v1312_v35 = vpop.f32.mrb[84].mxu1 }
 0x19a   : > { %v1423_v30 = vpop.f32.mrb[84].mxu0  ;;  %v1327_v43 = vadd.f32 %v1312_v35, %v6374_v12  ;;  %v4940_v39 = vpop.f32.mrb[85].mxu1  ;;  %v3093_v12 = vrot.slane %v6429_v16, 1  ;;  %v6518_v35 = vld [vmem:[%s5599_s26 + $0x78] sm:$0xf] }
 0x19b   : > { %v6459_v53 = vadd.f32 %v1423_v30, %v1325_v54  ;;  %v4958_v27 = vpop.f32.mrb[85].mxu0  ;;  %v1315_v48 = vpop.f32.mrb[86].mxu1 }
 0x19c   : > { %v1426_v11 = vpop.f32.mrb[86].mxu0  ;;  %v1328_v26 = vadd.f32 %v1315_v48, %v6378_v22  ;;  %v4941_v3 = vpop.f32.mrb[87].mxu1  ;;  %v6480_v22 = vld [vmem:[%s5599_s26 + $0x90] sm:$0xff]   ;;  %v3094_v63 = vsel %vm469_vm4, %v3091_v44, %v3093_v12  ;;  %v2979_v44 = vshll.u32 %v5469_v13, 16 }
 0x19d   : > { %v6464_v45 = vadd.f32 %v1426_v11, %v1326_v25  ;;  %v4959_v46 = vpop.f32.mrb[87].mxu0  ;;  %v2971_v16 = vshll.u32 %v6480_v22, 16  ;;  %v2975_v58 = vshrl.u32 %v6480_v22, 16  ;;  %v4502_v27 = vld [vmem:[%s5599_s26 + $0x74] sm:$0xe]  ;;  %v6529_v3 = vld [vmem:[%s5599_s26 + $0x7c] sm:$0xff]  }
 0x19e   : > { %5191 = vmatmul.mubr.msk.bf16.gmra.mrb[192].mxu1 %vm284_vm3, %v2958_v49  ;;  %v4514_v50 = vcombine.low %v4502_v27, %v6518_v35 }
 0x19f   : > { %5209 = vmatmul.mubr.msk.bf16.vlgmr.msra.gmra.mrb[192].mxu0 %vm284_vm3, %v3092_v40  ;;  %5194 = vmatprep.mubr.msk.bf16.mxu1 %vm5527_vm1, %v5526_v1  ;;  %v2973_v37 = vrot.slane %v2971_v16, 1  ;;  %v4534_v16 = vld [vmem:[%s6921_s1 + $0x17] sm:$0x1] }
 0x1a0   : > { %5251 = vmatpush3.bf16.msra.mxu0 %v3430_v17  ;;  %5212 = vmatprep.mubr.msk.bf16.mxu0 %vm5527_vm1, %v5526_v1  ;;  %v3362_v57 = vshrl.u32 %v4514_v50, 16  ;;  %v3365_v4 = vshll.u32 %v4514_v50, 16 }
 0x1a1   : > { %5294 = vmatprep.subr.bf16.mxu0 %v5526_v1  ;;  %v1541_v42 = vpop.f32.mrb[88].mxu1  ;;  %v2974_v38 = vsel %vm239_vm2, %v2969_v9, %v2973_v37  ;;  %v2977_v2 = vor.u32 %v2975_v58, %v2973_v37  ;;  %v4552_v58 = vld [vmem:[%s6921_s1 + $0x18] sm:$0x1] }
 0x1a2   : > { %v1431_v52 = vpop.f32.mrb[88].mxu0  ;;  %v1580_v56 = vadd.f32 %v1541_v42, %v6389_v32  ;;  %v4968_v18 = vpop.f32.mrb[89].mxu1  ;;  %v3095_v32 = vrot.slane %v6457_v34, 1  ;;  %v2981_v34 = vrot.slane %v2979_v44, 1 }
 0x1a3   : > { %v6482_v15 = vadd.f32 %v1431_v52, %v1327_v43  ;;  %v4962_v62 = vpop.f32.mrb[89].mxu0  ;;  %v1544_v14 = vpop.f32.mrb[90].mxu1  ;;  %v3364_v18 = vrot.slane %v3362_v57, 1 }
 0x1a4   : > { %v1434_v8 = vpop.f32.mrb[90].mxu0  ;;  %v1581_v0 = vadd.f32 %v1544_v14, %v6397_v36  ;;  %v4969_v23 = vpop.f32.mrb[91].mxu1  ;;  %v3096_v24 = vsel %vm469_vm4, %v3093_v12, %v3095_v32  ;;  %v3373_v62 = vshll.u32 %v6529_v3, 16 }
 0x1a5   : > { %v6486_v7 = vadd.f32 %v1434_v8, %v1328_v26  ;;  %v4963_v41 = vpop.f32.mrb[91].mxu0  ;;  %v2982_v26 = vsel %vm239_vm2, %v2977_v2, %v2981_v34  ;;  %v3244_v8 = vrot.slane %v6529_v3, 1 }
 0x1a6   : > { %5195 = vmatmul.mubr.msk.bf16.gmra.mrb[196].mxu1 %vm284_vm3, %v2966_v59  ;;  %v3367_v41 = vrot.slane %v3365_v4, 2  ;;  %v3375_v23 = vrot.slane %v3373_v62, 2 }
 0x1a7   : > { %5213 = vmatmul.mubr.msk.bf16.gmra.mrb[196].mxu0 %vm284_vm3, %v3094_v63  ;;  %5198 = vmatprep.mubr.msk.bf16.mxu1 %vm5527_vm1, %v5526_v1 }
 0x1a8   : > { %5216 = vmatprep.mubr.msk.bf16.mxu0 %vm5527_vm1, %v5526_v1 }
 0x1a9   : > { %v1549_v19 = vpop.f32.mrb[92].mxu1 }
 0x1aa   : > { %v1727_v29 = vpop.f32.mrb[92].mxu0  ;;  %v1582_v31 = vadd.f32 %v1549_v19, %v6412_v55  ;;  %v4972_v10 = vpop.f32.mrb[93].mxu1  ;;  %v3097_v55 = vrot.slane %v6480_v22, 1  ;;  %v3370_v22 = vshrl.u32 %v6529_v3, 16  ;;  %v6552_v19 = vld [vmem:[%s5599_s26 + $0x84] sm:$0xff]  }
 0x1ab   : > { %v6500_v54 = vadd.f32 %v1727_v29, %v1580_v56  ;;  %v4990_v36 = vpop.f32.mrb[93].mxu0  ;;  %v1552_v51 = vpop.f32.mrb[94].mxu1 }
 0x1ac   : > { %v1730_v20 = vpop.f32.mrb[94].mxu0  ;;  %v1583_v30 = vadd.f32 %v1552_v51, %v6416_v60  ;;  %v4973_v33 = vpop.f32.mrb[95].mxu1  ;;  %v3098_v39 = vsel %vm469_vm4, %v3095_v32, %v3097_v55  ;;  %v3382_v51 = vshll.u32 %v6552_v19, 16 }
 0x1ad   : > { %v6504_v21 = vadd.f32 %v1730_v20, %v1581_v0  ;;  %v4991_v25 = vpop.f32.mrb[95].mxu0  ;;  %v3372_v0 = vrot.slane %v3370_v22, 1 }
 0x1ae   : > { %5199 = vmatmul.mubr.msk.bf16.gmra.mrb[200].mxu1 %vm284_vm3, %v2974_v38  ;;  %v3379_v25 = vshrl.u32 %v6552_v19, 16  ;;  %v3384_v34 = vrot.slane %v3382_v51, 2 }
 0x1af   : > { %5217 = vmatmul.mubr.msk.bf16.gmra.mrb[200].mxu0 %vm284_vm3, %v3096_v24  ;;  %5202 = vmatprep.mubr.msk.bf16.mxu1 %vm5527_vm1, %v5526_v1  ;;  %v3376_v10 = vor.u32 %v3375_v23, %v3372_v0 }
 0x1b0   : > { %5220 = vmatprep.mubr.msk.bf16.mxu0 %vm5527_vm1, %v5526_v1  ;;  %v3381_v2 = vrot.slane %v3379_v25, 1 }
 0x1b1   : > { %v1557_v40 = vpop.f32.mrb[96].mxu1 }
 0x1b2   : > { %v1735_v47 = vpop.f32.mrb[96].mxu0  ;;  %v1584_v46 = vadd.f32 %v1557_v40, %v6431_v6  ;;  %v4976_v17 = vpop.f32.mrb[97].mxu1  ;;  %v3099_v6 = vrot.slane %v5469_v13, 1 }
 0x1b3   : > { %v6520_v60 = vadd.f32 %v1735_v47, %v1582_v31  ;;  %v4994_v11 = vpop.f32.mrb[97].mxu0  ;;  %v1560_v28 = vpop.f32.mrb[98].mxu1  ;;  %v3548_v31 = vsel %vm300_vm0, %v4534_v16, 0 }
 0x1b4   : > { %v1738_v43 = vpop.f32.mrb[98].mxu0  ;;  %v1585_v12 = vadd.f32 %v1560_v28, %v6439_v61  ;;  %v4977_v52 = vpop.f32.mrb[99].mxu1  ;;  %v3243_v61 = vrot.slane %v4514_v50, 1  ;;  %v3100_v5 = vsel %vm469_vm4, %v3097_v55, %v3099_v6 }
 0x1b5   : > { %v6524_v48 = vadd.f32 %v1738_v43, %v1583_v30  ;;  %v4995_v49 = vpop.f32.mrb[99].mxu0 }
 0x1b6   : > { %5203 = vmatmul.mubr.msk.bf16.gmra.mrb[204].mxu1 %vm284_vm3, %v2982_v26  ;;  %v3245_v36 = vsel %vm469_vm4, %v3243_v61, %v3244_v8  ;;  %v6578_v49 = vld [vmem:[%s5599_s26 + $0x8c] sm:$0xff]  }
 0x1b7   : > { %5221 = vmatmul.mubr.msk.bf16.gmra.mrb[204].mxu0 %vm284_vm3, %v3098_v39  ;;  %5230 = vmatprep.mubr.msk.bf16.mxu1 %vm5527_vm1, %v5526_v1  ;;  %v3701_v39 = vsel %vm300_vm0, %v4552_v58, 0  ;;  %v3388_v26 = vshrl.u32 %v6578_v49, 16 }
 0x1b8   : > { %5224 = vmatprep.mubr.msk.bf16.mxu0 %vm5527_vm1, %v5526_v1 }
 0x1b9   : > { %v1565_v14 = vpop.f32.mrb[100].mxu1 }
 0x1ba   : > { %v1743_v42 = vpop.f32.mrb[100].mxu0  ;;  %v1586_v32 = vadd.f32 %v1565_v14, %v6459_v53  ;;  %v4980_v29 = vpop.f32.mrb[101].mxu1  ;;  %v3368_v53 = vor.u32 %v3367_v41, %v3364_v18  ;;  %v6598_v14 = vld [vmem:[%s5599_s26 + $0x94] sm:$0xff]  }
 0x1bb   : > { %v6541_v63 = vadd.f32 %v1743_v42, %v1584_v46  ;;  %v4998_v56 = vpop.f32.mrb[101].mxu0  ;;  %v1568_v13 = vpop.f32.mrb[102].mxu1  ;;  %v3390_v42 = vrot.slane %v3388_v26, 1  ;;  %v3397_v23 = vshrl.u32 %v6598_v14, 16 }
 0x1bc   : > { %v1746_v59 = vpop.f32.mrb[102].mxu0  ;;  %v1587_v20 = vadd.f32 %v1568_v13, %v6464_v45  ;;  %v4981_v24 = vpop.f32.mrb[103].mxu1  ;;  %v3246_v45 = vrot.slane %v6552_v19, 1  ;;  %v3377_v47 = vsel %vm741_vm5, %v3368_v53, %v3376_v10 }
 0x1bd   : > { %v6548_v9 = vadd.f32 %v1746_v59, %v1585_v12  ;;  %v4999_v37 = vpop.f32.mrb[103].mxu0  ;;  %v3391_v12 = vshll.u32 %v6578_v49, 16 }
 0x1be   : > { %5231 = vmatmul.mubr.msk.bf16.vlgmr.msra.gmra.mrb[208].mxu1 %vm284_vm3, %v3245_v36  ;;  %v3247_v17 = vsel %vm469_vm4, %v3244_v8, %v3246_v45  ;;  %v3399_v36 = vrot.slane %v3397_v23, 1  ;;  %v4565_v23 = vld [vmem:[%s6921_s1 + $0x19] sm:$0x1] }
 0x1bf   : > { %5225 = vmatmul.mubr.msk.bf16.gmra.mrb[208].mxu0 %vm284_vm3, %v3100_v5  ;;  %5273 = vmatpush3.bf16.msra.mxu1 %v3548_v31  ;;  %v3393_v61 = vrot.slane %v3391_v12, 2 }
 0x1c0   : > { %5252 = vmatprep.mubr.msk.bf16.mxu0 %vm5527_vm1, %v5526_v1  ;;  %5234 = vmatprep.mubr.msk.bf16.mxu1 %vm5527_vm1, %v5526_v1 }
 0x1c1   : > { %5316 = vmatprep.subr.bf16.mxu1 %v5526_v1  ;;  %v1573_v33 = vpop.f32.mrb[104].mxu1 }
 0x1c2   : > { %v1751_v38 = vpop.f32.mrb[104].mxu0  ;;  %v1588_v27 = vadd.f32 %v1573_v33, %v6482_v15  ;;  %v4984_v11 = vpop.f32.mrb[105].mxu1  ;;  %v3385_v15 = vor.u32 %v3384_v34, %v3381_v2  ;;  %v5475_v33 = vld [vmem:[%s5599_s26 + $0x9c] ss:$0 sps:$4 sm:$0x11]  }
 0x1c3   : > { %v6568_v44 = vadd.f32 %v1751_v38, %v1586_v32  ;;  %v5002_v30 = vpop.f32.mrb[105].mxu0  ;;  %v1576_v46 = vpop.f32.mrb[106].mxu1  ;;  %v3400_v32 = vshll.u32 %v6598_v14, 16  ;;  %v3252_v11 = vrot.slane %v5475_v33, 1 }
 0x1c4   : > { %v1754_v55 = vpop.f32.mrb[106].mxu0  ;;  %v1589_v50 = vadd.f32 %v1576_v46, %v6486_v7  ;;  %v4985_v28 = vpop.f32.mrb[107].mxu1  ;;  %v3248_v7 = vrot.slane %v6578_v49, 1  ;;  %v3386_v62 = vsel %vm741_vm5, %v3376_v10, %v3385_v15  ;;  %v6615_v10 = vld [vmem:[%s5599_s26 + $0x9c] ss:$0 sps:$4 sm:$0x33]  }
 0x1c5   : > { %v6573_v40 = vadd.f32 %v1754_v55, %v1587_v20  ;;  %v5003_v43 = vpop.f32.mrb[107].mxu0  ;;  %v3402_v53 = vrot.slane %v3400_v32, 2  ;;  %v3409_v34 = vshll.u32 %v6615_v10, 16  ;;  %v6662_v32 = vld [vmem:[%s5599_s26 + $0x80] sm:$0xff]  }
 0x1c6   : > { %5235 = vmatmul.mubr.msk.bf16.gmra.mrb[212].mxu1 %vm284_vm3, %v3247_v17  ;;  %v3249_v5 = vsel %vm469_vm4, %v3246_v45, %v3248_v7 }
 0x1c7   : > { %5253 = vmatmul.mubr.msk.bf16.vlgmr.msra.gmra.mrb[212].mxu0 %vm284_vm3, %v3377_v47  ;;  %5238 = vmatprep.mubr.msk.bf16.mxu1 %vm5527_vm1, %v5526_v1  ;;  %v3403_v2 = vor.u32 %v3402_v53, %v3399_v36  ;;  %v3861_v53 = vsel %vm300_vm0, %v4565_v23, 0  ;;  %v6725_v23 = vld [vmem:[%s5599_s26 + $0x98] sm:$0xff]  }
 0x1c8   : > { %5295 = vmatpush3.bf16.msra.mxu0 %v3701_v39  ;;  %5256 = vmatprep.mubr.msk.bf16.mxu0 %vm5527_vm1, %v5526_v1  ;;  %v4533_v39 = vld [vmem:[%s5599_s26 + $0x74] sm:$0xc] }
 0x1c9   : > { %5338 = vmatprep.subr.bf16.mxu0 %v5526_v1  ;;  %v1845_v6 = vpop.f32.mrb[108].mxu1 }
 0x1ca   : > { %v1759_v52 = vpop.f32.mrb[108].mxu0  ;;  %v1884_v8 = vadd.f32 %v1845_v6, %v6500_v54  ;;  %v5012_v56 = vpop.f32.mrb[109].mxu1  ;;  %v3394_v54 = vor.u32 %v3393_v61, %v3390_v42 }
 0x1cb   : > { %v6591_v57 = vadd.f32 %v1759_v52, %v1588_v27  ;;  %v5006_v4 = vpop.f32.mrb[109].mxu0  ;;  %v1848_v59 = vpop.f32.mrb[110].mxu1 }
 0x1cc   : > { %v1762_v22 = vpop.f32.mrb[110].mxu0  ;;  %v1885_v16 = vadd.f32 %v1848_v59, %v6504_v21  ;;  %v5013_v0 = vpop.f32.mrb[111].mxu1  ;;  %v3250_v21 = vrot.slane %v6598_v14, 1  ;;  %v3395_v31 = vsel %vm741_vm5, %v3385_v15, %v3394_v54  ;;  %v3411_v15 = vrot.slane %v3409_v34, 2 }
 0x1cd   : > { %v6595_v18 = vadd.f32 %v1762_v22, %v1589_v50  ;;  %v5007_v41 = vpop.f32.mrb[111].mxu0  ;;  %v3404_v50 = vsel %vm741_vm5, %v3394_v54, %v3403_v2  ;;  %v4535_v22 = vcombine.low %v4533_v39, %v6518_v35 }
 0x1ce   : > { %5239 = vmatmul.mubr.msk.bf16.gmra.mrb[216].mxu1 %vm284_vm3, %v3249_v5  ;;  %v3251_v30 = vsel %vm469_vm4, %v3248_v7, %v3250_v21  ;;  %v3253_v6 = vsel %vm469_vm4, %v3250_v21, %v3252_v11 }
 0x1cf   : > { %5257 = vmatmul.mubr.msk.bf16.gmra.mrb[216].mxu0 %vm284_vm3, %v3386_v62  ;;  %5242 = vmatprep.mubr.msk.bf16.mxu1 %vm5527_vm1, %v5526_v1  ;;  %v3521_v35 = vrot.slane %v4535_v22, 2 }
 0x1d0   : > { %5260 = vmatprep.mubr.msk.bf16.mxu0 %vm5527_vm1, %v5526_v1 }
 0x1d1   : > { %v1853_v20 = vpop.f32.mrb[112].mxu1 }
 0x1d2   : > { %v1998_v29 = vpop.f32.mrb[112].mxu0  ;;  %v1886_v25 = vadd.f32 %v1853_v20, %v6520_v60  ;;  %v5016_v51 = vpop.f32.mrb[113].mxu1  ;;  %v3406_v60 = vshrl.u32 %v6615_v10, 16 }
 0x1d3   : > { %v6611_v37 = vadd.f32 %v1998_v29, %v1884_v8  ;;  %v5034_v13 = vpop.f32.mrb[113].mxu0  ;;  %v1856_v58 = vpop.f32.mrb[114].mxu1  ;;  %v6647_v8 = vld [vmem:[%s5599_s26 + $0x7c] sm:$0xf] }
 0x1d4   : > { %v2001_v24 = vpop.f32.mrb[114].mxu0  ;;  %v1887_v55 = vadd.f32 %v1856_v58, %v6524_v48  ;;  %v5017_v47 = vpop.f32.mrb[115].mxu1  ;;  %v3408_v28 = vrot.slane %v3406_v60, 1 }
 0x1d5   : > { %v6618_v38 = vadd.f32 %v2001_v24, %v1885_v16  ;;  %v5035_v45 = vpop.f32.mrb[115].mxu0 }
 0x1d6   : > { %5243 = vmatmul.mubr.msk.bf16.gmra.mrb[220].mxu1 %vm284_vm3, %v3251_v30  ;;  %v3412_v61 = vor.u32 %v3411_v15, %v3408_v28  ;;  %v4573_v45 = vld [vmem:[%s6921_s1 + $0x1a] sm:$0x1]  ;;  %v3526_v28 = vrot.slane %v6578_v49, 2 }
 0x1d7   : > { %5261 = vmatmul.mubr.msk.bf16.gmra.mrb[220].mxu0 %vm284_vm3, %v3395_v31  ;;  %5246 = vmatprep.mubr.msk.bf16.mxu1 %vm5527_vm1, %v5526_v1 }
 0x1d8   : > { %5264 = vmatprep.mubr.msk.bf16.mxu0 %vm5527_vm1, %v5526_v1  ;;  %v3413_v0 = vsel %vm741_vm5, %v3403_v2, %v3412_v61  ;;  %v6686_v2 = vld [vmem:[%s5599_s26 + $0x88] sm:$0xff]  }
 0x1d9   : > { %v1861_v46 = vpop.f32.mrb[116].mxu1 }
 0x1da   : > { %v2006_v27 = vpop.f32.mrb[116].mxu0  ;;  %v1888_v26 = vadd.f32 %v1861_v46, %v6541_v63  ;;  %v5020_v12 = vpop.f32.mrb[117].mxu1  ;;  %v4541_v63 = vld [vmem:[%s5599_s26 + $0x78] sm:$0xc] }
 0x1db   : > { %v6631_v43 = vadd.f32 %v2006_v27, %v1886_v25  ;;  %v5038_v48 = vpop.f32.mrb[117].mxu0  ;;  %v1864_v4 = vpop.f32.mrb[118].mxu1  ;;  %v6659_v54 = vcombine.low %v4541_v63, %v6647_v8  ;;  %v3675_v25 = vrot.slane %v6662_v32, 2 }
 0x1dc   : > { %v2009_v17 = vpop.f32.mrb[118].mxu0  ;;  %v1889_v62 = vadd.f32 %v1864_v4, %v6548_v9  ;;  %v5021_v42 = vpop.f32.mrb[119].mxu1  ;;  %v3522_v9 = vrot.slane %v6529_v3, 2  ;;  %v6706_v4 = vld [vmem:[%s5599_s26 + $0x90] sm:$0xff]  }
 0x1dd   : > { %v6636_v52 = vadd.f32 %v2009_v17, %v1887_v55  ;;  %v5039_v7 = vpop.f32.mrb[119].mxu0 }
 0x1de   : > { %5247 = vmatmul.mubr.msk.bf16.gmra.mrb[224].mxu1 %vm284_vm3, %v3253_v6  ;;  %v3523_v20 = vsel %vm902_vm6, %v3521_v35, %v3522_v9  ;;  %v3679_v35 = vrot.slane %v6706_v4, 2 }
 0x1df   : > { %5265 = vmatmul.mubr.msk.bf16.gmra.mrb[224].mxu0 %vm284_vm3, %v3404_v50  ;;  %5274 = vmatprep.mubr.msk.bf16.mxu1 %vm5527_vm1, %v5526_v1 }
 0x1e0   : > { %5268 = vmatprep.mubr.msk.bf16.mxu0 %vm5527_vm1, %v5526_v1 }
 0x1e1   : > { %v1869_v5 = vpop.f32.mrb[120].mxu1 }
 0x1e2   : > { %v2014_v56 = vpop.f32.mrb[120].mxu0  ;;  %v1890_v29 = vadd.f32 %v1869_v5, %v6568_v44  ;;  %v5024_v21 = vpop.f32.mrb[121].mxu1  ;;  %v3674_v44 = vrot.slane %v6659_v54, 2 }
 0x1e3   : > { %v6652_v41 = vadd.f32 %v2014_v56, %v1888_v26  ;;  %v5042_v59 = vpop.f32.mrb[121].mxu0  ;;  %v1872_v36 = vpop.f32.mrb[122].mxu1 }
 0x1e4   : > { %v2017_v16 = vpop.f32.mrb[122].mxu0  ;;  %v1891_v24 = vadd.f32 %v1872_v36, %v6573_v40  ;;  %v5025_v31 = vpop.f32.mrb[123].mxu1  ;;  %v3524_v40 = vrot.slane %v6552_v19, 2  ;;  %v3676_v47 = vsel %vm902_vm6, %v3674_v44, %v3675_v25  ;;  %v3979_v19 = vsel %vm300_vm0, %v4573_v45, 0 }
 0x1e5   : > { %v6665_v3 = vadd.f32 %v2017_v16, %v1889_v62  ;;  %v5043_v13 = vpop.f32.mrb[123].mxu0 }
 0x1e6   : > { %5275 = vmatmul.mubr.msk.bf16.vlgmr.msra.gmra.mrb[228].mxu1 %vm284_vm3, %v3523_v20  ;;  %v3525_v39 = vsel %vm902_vm6, %v3522_v9, %v3524_v40  ;;  %v3527_v63 = vsel %vm902_vm6, %v3524_v40, %v3526_v28  ;;  %v3528_v9 = vrot.slane %v6598_v14, 2  ;;  %v3804_v40 = vshll.u32 %v6662_v32, 16 }
 0x1e7   : > { %5269 = vmatmul.mubr.msk.bf16.gmra.mrb[228].mxu0 %vm284_vm3, %v3413_v0  ;;  %5317 = vmatpush3.bf16.msra.mxu1 %v3861_v53  ;;  %v3681_v53 = vrot.slane %v6725_v23, 2 }
 0x1e8   : > { %5296 = vmatprep.mubr.msk.bf16.mxu0 %vm5527_vm1, %v5526_v1  ;;  %5278 = vmatprep.mubr.msk.bf16.mxu1 %vm5527_vm1, %v5526_v1 }
 0x1e9   : > { %v1877_v33 = vpop.f32.mrb[124].mxu1 }
 0x1ea   : > { %v2022_v51 = vpop.f32.mrb[124].mxu0  ;;  %v1892_v60 = vadd.f32 %v1877_v33, %v6591_v57  ;;  %v5028_v34 = vpop.f32.mrb[125].mxu1  ;;  %v3677_v57 = vrot.slane %v6686_v2, 2 }
 0x1eb   : > { %v6682_v58 = vadd.f32 %v2022_v51, %v1890_v29  ;;  %v5046_v30 = vpop.f32.mrb[125].mxu0  ;;  %v1880_v48 = vpop.f32.mrb[126].mxu1  ;;  %v3801_v51 = vshrl.u32 %v6662_v32, 16 }
 0x1ec   : > { %v2025_v55 = vpop.f32.mrb[126].mxu0  ;;  %v1893_v46 = vadd.f32 %v1880_v48, %v6595_v18  ;;  %v5029_v17 = vpop.f32.mrb[127].mxu1  ;;  %v3678_v7 = vsel %vm902_vm6, %v3675_v25, %v3677_v57  ;;  %v3680_v0 = vsel %vm902_vm6, %v3677_v57, %v3679_v35  ;;  %v3793_v25 = vshrl.u32 %v6659_v54, 16 }
 0x1ed   : > { %v6689_v27 = vadd.f32 %v2025_v55, %v1891_v24  ;;  %v5047_v11 = vpop.f32.mrb[127].mxu0  ;;  %v3529_v24 = vsel %vm902_vm6, %v3526_v28, %v3528_v9  ;;  %v3803_v17 = vrot.slane %v3801_v51, 2  ;;  %v3806_v57 = vrot.slane %v3804_v40, 3 }
 0x1ee   : > { %5279 = vmatmul.mubr.msk.bf16.gmra.mrb[232].mxu1 %vm284_vm3, %v3525_v39  ;;  %v3795_v39 = vrot.slane %v3793_v25, 2 }
 0x1ef   : > { %5297 = vmatmul.mubr.msk.bf16.vlgmr.msra.gmra.mrb[232].mxu0 %vm284_vm3, %v3676_v47  ;;  %5282 = vmatprep.mubr.msk.bf16.mxu1 %vm5527_vm1, %v5526_v1  ;;  %v3682_v47 = vsel %vm902_vm6, %v3679_v35, %v3681_v53 }
 0x1f0   : > { %5339 = vmatpush3.bf16.msra.mxu0 %v3979_v19  ;;  %5300 = vmatprep.mubr.msk.bf16.mxu0 %vm5527_vm1, %v5526_v1 }
 0x1f1   : > { %v2158_v26 = vpop.f32.mrb[128].mxu1 }
 0x1f2   : > { %v2030_v50 = vpop.f32.mrb[128].mxu0  ;;  %v2197_v6 = vadd.f32 %v2158_v26, %v6611_v37  ;;  %v5056_v22 = vpop.f32.mrb[129].mxu1 }
 0x1f3   : > { %v6702_v15 = vadd.f32 %v2030_v50, %v1892_v60  ;;  %v5050_v18 = vpop.f32.mrb[129].mxu0  ;;  %v2161_v61 = vpop.f32.mrb[130].mxu1 }
 0x1f4   : > { %v2033_v12 = vpop.f32.mrb[130].mxu0  ;;  %v2198_v49 = vadd.f32 %v2161_v61, %v6618_v38  ;;  %v5057_v56 = vpop.f32.mrb[131].mxu1  ;;  %v4572_v18 = vld [vmem:[%s5599_s26 + $0x78] sm:$0x8] }
 0x1f5   : > { %v6709_v62 = vadd.f32 %v2033_v12, %v1893_v46  ;;  %v5051_v42 = vpop.f32.mrb[131].mxu0  ;;  %v4574_v56 = vcombine.low %v4572_v18, %v6647_v8 }
 0x1f6   : > { %5283 = vmatmul.mubr.msk.bf16.gmra.mrb[236].mxu1 %vm284_vm3, %v3527_v63 }
 0x1f7   : > { %5301 = vmatmul.mubr.msk.bf16.gmra.mrb[236].mxu0 %vm284_vm3, %v3678_v7  ;;  %5286 = vmatprep.mubr.msk.bf16.mxu1 %vm5527_vm1, %v5526_v1  ;;  %v3807_v7 = vor.u32 %v3806_v57, %v3803_v17  ;;  %v3952_v8 = vrot.slane %v4574_v56, 3 }
 0x1f8   : > { %5304 = vmatprep.mubr.msk.bf16.mxu0 %vm5527_vm1, %v5526_v1 }
 0x1f9   : > { %v2166_v38 = vpop.f32.mrb[132].mxu1 }
 0x1fa   : > { %v2276_v37 = vpop.f32.mrb[132].mxu0  ;;  %v2199_v29 = vadd.f32 %v2166_v38, %v6631_v43  ;;  %v5060_v21 = vpop.f32.mrb[133].mxu1  ;;  %v3530_v43 = vrot.slane %v6615_v10, 2  ;;  %v5483_v10 = vld [vmem:[%s5599_s26 + $0xa0] ss:$0 sps:$4 sm:$0x33]  }
 0x1fb   : > { %v6721_v59 = vadd.f32 %v2276_v37, %v2197_v6  ;;  %v5078_v5 = vpop.f32.mrb[133].mxu0  ;;  %v2169_v20 = vpop.f32.mrb[134].mxu1  ;;  %v3810_v6 = vshrl.u32 %v6686_v2, 16 }
 0x1fc   : > { %v2279_v16 = vpop.f32.mrb[134].mxu0  ;;  %v2200_v14 = vadd.f32 %v2169_v20, %v6636_v52  ;;  %v5061_v31 = vpop.f32.mrb[135].mxu1  ;;  %v3796_v52 = vshll.u32 %v6659_v54, 16  ;;  %v3531_v54 = vsel %vm902_vm6, %v3528_v9, %v3530_v43 }
 0x1fd   : > { %v6728_v13 = vadd.f32 %v2279_v16, %v2198_v49  ;;  %v5079_v36 = vpop.f32.mrb[135].mxu0 }
 0x1fe   : > { %5287 = vmatmul.mubr.msk.bf16.gmra.mrb[240].mxu1 %vm284_vm3, %v3529_v24  ;;  %v3798_v46 = vrot.slane %v3796_v52, 3 }
 0x1ff   : > { %5305 = vmatmul.mubr.msk.bf16.gmra.mrb[240].mxu0 %vm284_vm3, %v3680_v0  ;;  %5290 = vmatprep.mubr.msk.bf16.mxu1 %vm5527_vm1, %v5526_v1  ;;  %v3812_v0 = vrot.slane %v3810_v6, 2  ;;  %v5485_v6 = vld [vmem:[%s5599_s26 + $0xa0] ss:$0 sps:$4 sm:$0x77]   ;;  %s5364_s26 = smul.u32 80, %s6935_s13 }
 0x200   : > { %5308 = vmatprep.mubr.msk.bf16.mxu0 %vm5527_vm1, %v5526_v1  ;;  %v3799_v12 = vor.u32 %v3798_v46, %v3795_v39  ;;  %v3840_v56 = vshll.u32 %v5485_v6, 16 }
 0x201   : > { %v2174_v33 = vpop.f32.mrb[136].mxu1  ;;  %s190_s22 = sadd.s32 %s5364_s26, %s5363_s21 }
 0x202   : > { %v2284_v44 = vpop.f32.mrb[136].mxu0  ;;  %v2201_v60 = vadd.f32 %v2174_v33, %v6652_v41  ;;  %v5064_v34 = vpop.f32.mrb[137].mxu1  ;;  %v3683_v41 = vrot.slane %v5483_v10, 2  ;;  %v3808_v16 = vsel %vm1174_vm7, %v3799_v12, %v3807_v7  ;;  %s4242_s25 = sshll.u32 %s190_s22, 2 }
 0x203   : > { %v6744_v45 = vadd.f32 %v2284_v44, %v2199_v29  ;;  %v5082_v30 = vpop.f32.mrb[137].mxu0  ;;  %v2177_v48 = vpop.f32.mrb[138].mxu1  ;;  %v3955_v34 = vrot.slane %v6686_v2, 3  ;;  %s6869_s27 = scalar_lea.vmem %s6923_s3, %s4242_s25 }
 0x204   : > { %v2287_v55 = vpop.f32.mrb[138].mxu0  ;;  %v2202_v50 = vadd.f32 %v2177_v48, %v6665_v3  ;;  %v5065_v28 = vpop.f32.mrb[139].mxu1  ;;  %v3813_v3 = vshll.u32 %v6686_v2, 16  ;;  %v3684_v49 = vsel %vm902_vm6, %v3681_v53, %v3683_v41 }
 0x205   : > { %v6749_v11 = vadd.f32 %v2287_v55, %v2200_v14  ;;  %v5083_v19 = vpop.f32.mrb[139].mxu0  ;;  %v3819_v14 = vshrl.u32 %v6706_v4, 16 }
 0x206   : > { %5291 = vmatmul.mubr.msk.bf16.gmra.mrb[244].mxu1 %vm284_vm3, %v3531_v54  ;;  %v3815_v29 = vrot.slane %v3813_v3, 3  ;;  %v3828_v54 = vshrl.u32 %v6725_v23, 16 }
 0x207   : > { %5309 = vmatmul.mubr.msk.bf16.gmra.mrb[244].mxu0 %vm284_vm3, %v3682_v47  ;;  %5318 = vmatprep.mubr.msk.bf16.mxu1 %vm5527_vm1, %v5526_v1  ;;  %v3821_v55 = vrot.slane %v3819_v14, 2  ;;  %v3959_v14 = vrot.slane %v6725_v23, 3 }
 0x208   : > { %5312 = vmatprep.mubr.msk.bf16.mxu0 %vm5527_vm1, %v5526_v1  ;;  %v3816_v24 = vor.u32 %v3815_v29, %v3812_v0  ;;  %v3830_v12 = vrot.slane %v3828_v54, 2 }
 0x209   : > { %v2182_v61 = vpop.f32.mrb[140].mxu1 }
 0x20a   : > { %v2292_v26 = vpop.f32.mrb[140].mxu0  ;;  %v2203_v35 = vadd.f32 %v2182_v61, %v6682_v58  ;;  %v5068_v37 = vpop.f32.mrb[141].mxu1  ;;  %v3953_v58 = vrot.slane %v6662_v32, 3  ;;  %v3817_v33 = vsel %vm1174_vm7, %v3807_v7, %v3816_v24 }
 0x20b   : > { %v6762_v22 = vadd.f32 %v2292_v26, %v2201_v60  ;;  %v5086_v42 = vpop.f32.mrb[141].mxu0  ;;  %v2185_v38 = vpop.f32.mrb[142].mxu1 }
 0x20c   : > { %v2295_v63 = vpop.f32.mrb[142].mxu0  ;;  %v2204_v21 = vadd.f32 %v2185_v38, %v6689_v27  ;;  %v5069_v36 = vpop.f32.mrb[143].mxu1  ;;  %v3822_v27 = vshll.u32 %v6706_v4, 16  ;;  %v3954_v25 = vsel %vm1335_vm8, %v3952_v8, %v3953_v58  ;;  %v3956_v57 = vsel %vm1335_vm8, %v3953_v58, %v3955_v34 }
 0x20d   : > { %v6767_v9 = vadd.f32 %v2295_v63, %v2202_v50  ;;  %v5087_v5 = vpop.f32.mrb[143].mxu0  ;;  %v3842_v58 = vrot.slane %v3840_v56, 3 }
 0x20e   : > { %5319 = vmatmul.mubr.msk.bf16.vlgmr.msra.gmra.mrb[248].mxu1 %vm284_vm3, %v3808_v16  ;;  %v3824_v47 = vrot.slane %v3822_v27, 3 }
 0x20f   : > { %5313 = vmatmul.mubr.msk.bf16.gmra.mrb[248].mxu0 %vm284_vm3, %v3684_v49  ;;  %5322 = vmatprep.mubr.msk.bf16.mxu1 %vm5527_vm1, %v5526_v1  ;;  %v3837_v49 = vshrl.u32 %v5485_v6, 16 }
 0x210   : > { %5340 = vmatprep.mubr.msk.bf16.mxu0 %vm5527_vm1, %v5526_v1 }
 0x211   : > { %v2190_v43 = vpop.f32.mrb[144].mxu1  ;;  %v3839_v8 = vrot.slane %v3837_v49, 2 }
 0x212   : > { %v2300_v20 = vpop.f32.mrb[144].mxu0  ;;  %v2205_v32 = vadd.f32 %v2190_v43, %v6702_v15  ;;  %v5072_v52 = vpop.f32.mrb[145].mxu1  ;;  %v3825_v15 = vor.u32 %v3824_v47, %v3821_v55 }
 0x213   : > { %v6780_v31 = vadd.f32 %v2300_v20, %v2203_v35  ;;  %v5090_v53 = vpop.f32.mrb[145].mxu0  ;;  %v2193_v30 = vpop.f32.mrb[146].mxu1  ;;  %v3843_v27 = vor.u32 %v3842_v58, %v3839_v8 }
 0x214   : > { %v2303_v44 = vpop.f32.mrb[146].mxu0  ;;  %v2206_v10 = vadd.f32 %v2193_v30, %v6709_v62  ;;  %v5073_v60 = vpop.f32.mrb[147].mxu1  ;;  %v3831_v62 = vshll.u32 %v6725_v23, 16  ;;  %v3826_v18 = vsel %vm1174_vm7, %v3816_v24, %v3825_v15 }
 0x215   : > { %v6784_v51 = vadd.f32 %v2303_v44, %v2204_v21  ;;  %v5091_v40 = vpop.f32.mrb[147].mxu0 }
 0x216   : > { %5323 = vmatmul.mubr.msk.bf16.gmra.mrb[252].mxu1 %vm284_vm3, %v3817_v33  ;;  %v3833_v7 = vrot.slane %v3831_v62, 3 }
 0x217   : > { %5341 = vmatmul.mubr.msk.bf16.vlgmr.msra.gmra.mrb[252].mxu0 %vm284_vm3, %v3954_v25  ;;  %5326 = vmatprep.mubr.msk.bf16.mxu1 %vm5527_vm1, %v5526_v1 }
 0x218   : > { %5344 = vmatprep.mubr.msk.bf16.mxu0 %vm5527_vm1, %v5526_v1  ;;  %v3834_v63 = vor.u32 %v3833_v7, %v3830_v12 }
 0x219   : > { %v2429_v46 = vpop.f32.mrb[148].mxu1 }
 0x21a   : > { %v2308_v19 = vpop.f32.mrb[148].mxu0  ;;  %v2468_v2 = vadd.f32 %v2429_v46, %v6721_v59  ;;  %v5100_v50 = vpop.f32.mrb[149].mxu1  ;;  %v3957_v59 = vrot.slane %v6706_v4, 3  ;;  %v3835_v36 = vsel %vm1174_vm7, %v3825_v15, %v3834_v63  ;;  %v3844_v23 = vsel %vm1174_vm7, %v3834_v63, %v3843_v27 }
 0x21b   : > { %v6797_v48 = vadd.f32 %v2308_v19, %v2205_v32  ;;  %v5094_v39 = vpop.f32.mrb[149].mxu0  ;;  %v2432_v26 = vpop.f32.mrb[150].mxu1 }
 0x21c   : > { %v2311_v17 = vpop.f32.mrb[150].mxu0  ;;  %v2469_v3 = vadd.f32 %v2432_v26, %v6728_v13  ;;  %v5101_v42 = vpop.f32.mrb[151].mxu1  ;;  %v3958_v38 = vsel %vm1335_vm8, %v3955_v34, %v3957_v59 }
 0x21d   : > { %v6801_v28 = vadd.f32 %v2311_v17, %v2206_v10  ;;  %v5095_v41 = vpop.f32.mrb[151].mxu0  ;;  %v3961_v10 = vrot.slane %v5485_v6, 3 }
 0x21e   : > { %5327 = vmatmul.mubr.msk.bf16.gmra.mrb[0].mxu1 %vm284_vm3, %v3826_v18 }
 0x21f   : > { %5345 = vmatmul.mubr.msk.bf16.gmra.mrb[0].mxu0 %vm284_vm3, %v3956_v57  ;;  %5330 = vmatprep.mubr.msk.bf16.mxu1 %vm5527_vm1, %v5526_v1  ;;  %v3962_v54 = vsel %vm1335_vm8, %v3959_v14, %v3961_v10 }
 0x220   : > { %5348 = vmatprep.mubr.msk.bf16.mxu0 %vm5527_vm1, %v5526_v1 }
 0x221   : > { %v2437_v37 = vpop.f32.mrb[152].mxu1 }
 0x222   : > { %v2589_v61 = vpop.f32.mrb[152].mxu0  ;;  %v2470_v16 = vadd.f32 %v2437_v37, %v6744_v45  ;;  %v5104_v0 = vpop.f32.mrb[153].mxu1 }
 0x223   : > { %v6813_v35 = vadd.f32 %v2589_v61, %v2468_v2  ;;  %v5122_v13 = vpop.f32.mrb[153].mxu0  ;;  %v2440_v21 = vpop.f32.mrb[154].mxu1 }
 0x224   : > { %v2592_v5 = vpop.f32.mrb[154].mxu0  ;;  %v2471_v20 = vadd.f32 %v2440_v21, %v6749_v11  ;;  %v5105_v24 = vpop.f32.mrb[155].mxu1  ;;  %v3960_v11 = vsel %vm1335_vm8, %v3957_v59, %v3959_v14 }
 0x225   : > { %v6817_v4 = vadd.f32 %v2592_v5, %v2469_v3  ;;  %v5123_v29 = vpop.f32.mrb[155].mxu0 }
 0x226   : > { %5331 = vmatmul.mubr.msk.bf16.gmra.mrb[4].mxu1 %vm284_vm3, %v3835_v36 }
 0x227   : > { %5349 = vmatmul.mubr.msk.bf16.gmra.mrb[4].mxu0 %vm284_vm3, %v3958_v38  ;;  %5334 = vmatprep.mubr.msk.bf16.mxu1 %vm5527_vm1, %v5526_v1 }
 0x228   : > { %5352 = vmatprep.mubr.msk.bf16.mxu0 %vm5527_vm1, %v5526_v1 }
 0x229   : > { %v2445_v44 = vpop.f32.mrb[156].mxu1 }
 0x22a   : > { %v2597_v45 = vpop.f32.mrb[156].mxu0  ;;  %v2472_v32 = vadd.f32 %v2445_v44, %v6762_v22  ;;  %v5108_v52 = vpop.f32.mrb[157].mxu1 }
 0x22b   : > { %v2630_v53 = vadd.f32 %v2597_v45, %v2470_v16  ;;  %v5126_v43 = vpop.f32.mrb[157].mxu0  ;;  %v2448_v33 = vpop.f32.mrb[158].mxu1 }
 0x22c   : > { %v2600_v25 = vpop.f32.mrb[158].mxu0  ;;  %v2473_v55 = vadd.f32 %v2448_v33, %v6767_v9  ;;  %v5109_v47 = vpop.f32.mrb[159].mxu1 }
 0x22d   : > { %v2631_v40 = vadd.f32 %v2600_v25, %v2471_v20  ;;  %v5127_v30 = vpop.f32.mrb[159].mxu0 }
 0x22e   : > { %5335 = vmatmul.mubr.msk.bf16.gmra.mrb[8].mxu1 %vm284_vm3, %v3844_v23 }
 0x22f   : > { %5353 = vmatmul.mubr.msk.bf16.gmra.mrb[8].mxu0 %vm284_vm3, %v3960_v11 }
 0x230   : > { %5356 = vmatprep.mubr.msk.bf16.mxu0 %vm5527_vm1, %v5526_v1 }
 0x231   : > { %v2453_v15 = vpop.f32.mrb[160].mxu1 }
 0x232   : > { %v2605_v60 = vpop.f32.mrb[160].mxu0  ;;  %v2474_v62 = vadd.f32 %v2453_v15, %v6780_v31  ;;  %v5112_v39 = vpop.f32.mrb[161].mxu1 }
 0x233   : > { %v2632_v34 = vadd.f32 %v2605_v60, %v2472_v32  ;;  %v5130_v22 = vpop.f32.mrb[161].mxu0  ;;  %v2456_v17 = vpop.f32.mrb[162].mxu1 }
 0x234   : > { %v2608_v19 = vpop.f32.mrb[162].mxu0  ;;  %v2475_v57 = vadd.f32 %v2456_v17, %v6784_v51  ;;  %v5113_v1 = vpop.f32.mrb[163].mxu1 }
 0x235   : > { %v2633_v9 = vadd.f32 %v2608_v19, %v2473_v55  ;;  %v5131_v46 = vpop.f32.mrb[163].mxu0 }
 0x237   : > { %5357 = vmatmul.mubr.msk.bf16.gmra.mrb[12].mxu0 %vm284_vm3, %v3962_v54 }
 0x239   : > { %v2461_v18 = vpop.f32.mrb[164].mxu1 }
 0x23a   : > { %v2613_v2 = vpop.f32.mrb[164].mxu0  ;;  %v2476_v12 = vadd.f32 %v2461_v18, %v6797_v48  ;;  %v5116_v7 = vpop.f32.mrb[165].mxu1 }
 0x23b   : > { %v2634_v50 = vadd.f32 %v2613_v2, %v2474_v62  ;;  %v5134_v41 = vpop.f32.mrb[165].mxu0  ;;  %v2464_v31 = vpop.f32.mrb[166].mxu1 }
 0x23c   : > { %v2616_v26 = vpop.f32.mrb[166].mxu0  ;;  %v2477_v42 = vadd.f32 %v2464_v31, %v6801_v28  ;;  %v5117_v59 = vpop.f32.mrb[167].mxu1 }
 0x23d   : > { %v2635_v6 = vadd.f32 %v2616_v26, %v2475_v57  ;;  %v5135_v3 = vpop.f32.mrb[167].mxu0 }
 0x241   : > { %v2707_v49 = vpop.f32.mrb[168].mxu1 }
 0x242   : > { %v2621_v61 = vpop.f32.mrb[168].mxu0  ;;  %v2746_v13 = vadd.f32 %v2707_v49, %v6813_v35  ;;  %v5144_v37 = vpop.f32.mrb[169].mxu1 }
 0x243   : > { %v2636_v63 = vadd.f32 %v2621_v61, %v2476_v12  ;;  %v5138_v51 = vpop.f32.mrb[169].mxu0  ;;  %v2710_v16 = vpop.f32.mrb[170].mxu1 }
 0x244   : > { %v2624_v56 = vpop.f32.mrb[170].mxu0  ;;  %v2747_v48 = vadd.f32 %v2710_v16, %v6817_v4  ;;  %v5145_v0 = vpop.f32.mrb[171].mxu1 }
 0x245   : > { %v2637_v5 = vadd.f32 %v2624_v56, %v2477_v42  ;;  %v5139_v38 = vpop.f32.mrb[171].mxu0 }
 0x249   : > { %v2715_v8 = vpop.f32.mrb[172].mxu1 }
 0x24a   : > { %v2849_v29 = vpop.f32.mrb[172].mxu0  ;;  %v2748_v58 = vadd.f32 %v2715_v8, %v2630_v53  ;;  %v5148_v20 = vpop.f32.mrb[173].mxu1 }
 0x24b   : > { %v2888_v21 = vadd.f32 %v2849_v29, %v2746_v13  ;;  %v5166_v36 = vpop.f32.mrb[173].mxu0  ;;  %v2718_v45 = vpop.f32.mrb[174].mxu1 }
 0x24c   : > { %v2852_v28 = vpop.f32.mrb[174].mxu0  ;;  %v2749_v27 = vadd.f32 %v2718_v45, %v2631_v40  ;;  %v5149_v43 = vpop.f32.mrb[175].mxu1 }
 0x24d   : > { %v2889_v24 = vadd.f32 %v2852_v28, %v2747_v48  ;;  %v5167_v14 = vpop.f32.mrb[175].mxu0 }
 0x251   : > { %v2723_v11 = vpop.f32.mrb[176].mxu1 }
 0x252   : > { %v2857_v35 = vpop.f32.mrb[176].mxu0  ;;  %v2750_v52 = vadd.f32 %v2723_v11, %v2632_v34  ;;  %v5152_v4 = vpop.f32.mrb[177].mxu1 }
 0x253   : > { %v2890_v44 = vadd.f32 %v2857_v35, %v2748_v58  ;;  %v5170_v25 = vpop.f32.mrb[177].mxu0  ;;  %v2726_v23 = vpop.f32.mrb[178].mxu1 }
 0x254   : > { %v2860_v32 = vpop.f32.mrb[178].mxu0  ;;  %v2751_v55 = vadd.f32 %v2726_v23, %v2633_v9  ;;  %v5153_v47 = vpop.f32.mrb[179].mxu1 }
 0x255   : > { %v2891_v30 = vadd.f32 %v2860_v32, %v2749_v27  ;;  %v5171_v33 = vpop.f32.mrb[179].mxu0 }
 0x259   : > { %v2731_v22 = vpop.f32.mrb[180].mxu1 }
 0x25a   : > { %v2865_v10 = vpop.f32.mrb[180].mxu0  ;;  %v2752_v19 = vadd.f32 %v2731_v22, %v2634_v50  ;;  %v5156_v40 = vpop.f32.mrb[181].mxu1 }
 0x25b   : > { %v2892_v53 = vadd.f32 %v2865_v10, %v2750_v52  ;;  %v5174_v60 = vpop.f32.mrb[181].mxu0  ;;  %v2734_v39 = vpop.f32.mrb[182].mxu1 }
 0x25c   : > { %v2868_v15 = vpop.f32.mrb[182].mxu0  ;;  %v2753_v46 = vadd.f32 %v2734_v39, %v2635_v6  ;;  %v5157_v17 = vpop.f32.mrb[183].mxu1 }
 0x25d   : > { %v2893_v54 = vadd.f32 %v2868_v15, %v2751_v55  ;;  %v5175_v62 = vpop.f32.mrb[183].mxu0 }
 0x261   : > { %v2739_v2 = vpop.f32.mrb[184].mxu1 }
 0x262   : > { %v2873_v57 = vpop.f32.mrb[184].mxu0  ;;  %v2754_v18 = vadd.f32 %v2739_v2, %v2636_v63  ;;  %v5160_v9 = vpop.f32.mrb[185].mxu1 }
 0x263   : > { %v2894_v34 = vadd.f32 %v2873_v57, %v2752_v19  ;;  %v5178_v1 = vpop.f32.mrb[185].mxu0  ;;  %v2742_v7 = vpop.f32.mrb[186].mxu1 }
 0x264   : > { %v2876_v41 = vpop.f32.mrb[186].mxu0  ;;  %v2755_v3 = vadd.f32 %v2742_v7, %v2637_v5  ;;  %v5161_v31 = vpop.f32.mrb[187].mxu1 }
 0x265   : > { %v2895_v26 = vadd.f32 %v2876_v41, %v2753_v46  ;;  %v5179_v12 = vpop.f32.mrb[187].mxu0 }
 0x269   : > { %v3035_v61 = vpop.f32.mrb[188].mxu1 }
 0x26a   : > { %v2881_v42 = vpop.f32.mrb[188].mxu0  ;;  %v3074_v49 = vadd.f32 %v3035_v61, %v2888_v21  ;;  %v5188_v6 = vpop.f32.mrb[189].mxu1 }
 0x26b   : > { %v2896_v50 = vadd.f32 %v2881_v42, %v2754_v18  ;;  %v5182_v59 = vpop.f32.mrb[189].mxu0  ;;  %v3038_v37 = vpop.f32.mrb[190].mxu1 }
 0x26c   : > { %v2884_v51 = vpop.f32.mrb[190].mxu0  ;;  %v3075_v38 = vadd.f32 %v3038_v37, %v2889_v24  ;;  %v5189_v16 = vpop.f32.mrb[191].mxu1 }
 0x26d   : > { %v2897_v56 = vadd.f32 %v2884_v51, %v2755_v3  ;;  %v5183_v13 = vpop.f32.mrb[191].mxu0 }
 0x271   : > { %v3043_v29 = vpop.f32.mrb[192].mxu1 }
 0x272   : > { %v3153_v48 = vpop.f32.mrb[192].mxu0  ;;  %v3076_v8 = vadd.f32 %v3043_v29, %v2890_v44  ;;  %v5192_v5 = vpop.f32.mrb[193].mxu1 }
 0x273   : > { %v3192_v63 = vadd.f32 %v3153_v48, %v3074_v49  ;;  %v5210_v0 = vpop.f32.mrb[193].mxu0  ;;  %v3046_v20 = vpop.f32.mrb[194].mxu1 }
 0x274   : > { %v3156_v36 = vpop.f32.mrb[194].mxu0  ;;  %v3077_v14 = vadd.f32 %v3046_v20, %v2891_v30  ;;  %v5193_v45 = vpop.f32.mrb[195].mxu1 }
 0x275   : > { %v3193_v28 = vadd.f32 %v3156_v36, %v3075_v38  ;;  %v5211_v58 = vpop.f32.mrb[195].mxu0 }
 0x279   : > { %v3051_v35 = vpop.f32.mrb[196].mxu1 }
 0x27a   : > { %v3161_v27 = vpop.f32.mrb[196].mxu0  ;;  %v3078_v11 = vadd.f32 %v3051_v35, %v2892_v53  ;;  %v5196_v24 = vpop.f32.mrb[197].mxu1 }
 0x27b   : > { %v3194_v21 = vadd.f32 %v3161_v27, %v3076_v8  ;;  %v5214_v43 = vpop.f32.mrb[197].mxu0  ;;  %v3054_v4 = vpop.f32.mrb[198].mxu1 }
 0x27c   : > { %v3164_v25 = vpop.f32.mrb[198].mxu0  ;;  %v3079_v33 = vadd.f32 %v3054_v4, %v2893_v54  ;;  %v5197_v23 = vpop.f32.mrb[199].mxu1 }
 0x27d   : > { %v3195_v32 = vadd.f32 %v3164_v25, %v3077_v14  ;;  %v5215_v52 = vpop.f32.mrb[199].mxu0 }
 0x281   : > { %v3059_v10 = vpop.f32.mrb[200].mxu1 }
 0x282   : > { %v3169_v55 = vpop.f32.mrb[200].mxu0  ;;  %v3080_v22 = vadd.f32 %v3059_v10, %v2894_v34  ;;  %v5200_v30 = vpop.f32.mrb[201].mxu1 }
 0x283   : > { %v3196_v44 = vadd.f32 %v3169_v55, %v3078_v11  ;;  %v5218_v47 = vpop.f32.mrb[201].mxu0  ;;  %v3062_v40 = vpop.f32.mrb[202].mxu1 }
 0x284   : > { %v3172_v60 = vpop.f32.mrb[202].mxu0  ;;  %v3081_v62 = vadd.f32 %v3062_v40, %v2895_v26  ;;  %v5201_v39 = vpop.f32.mrb[203].mxu1 }
 0x285   : > { %v3197_v15 = vadd.f32 %v3172_v60, %v3079_v33  ;;  %v5219_v19 = vpop.f32.mrb[203].mxu0 }
 0x289   : > { %v3067_v57 = vpop.f32.mrb[204].mxu1 }
 0x28a   : > { %v3177_v46 = vpop.f32.mrb[204].mxu0  ;;  %v3082_v2 = vadd.f32 %v3067_v57, %v2896_v50  ;;  %v5204_v54 = vpop.f32.mrb[205].mxu1 }
 0x28b   : > { %v3198_v53 = vadd.f32 %v3177_v46, %v3080_v22  ;;  %v5222_v17 = vpop.f32.mrb[205].mxu0  ;;  %v3070_v9 = vpop.f32.mrb[206].mxu1 }
 0x28c   : > { %v3180_v1 = vpop.f32.mrb[206].mxu0  ;;  %v3083_v12 = vadd.f32 %v3070_v9, %v2897_v56  ;;  %v5205_v7 = vpop.f32.mrb[207].mxu1 }
 0x28d   : > { %v3199_v41 = vadd.f32 %v3180_v1, %v3081_v62  ;;  %v5223_v18 = vpop.f32.mrb[207].mxu0 }
 0x291   : > { %v3306_v42 = vpop.f32.mrb[208].mxu1 }
 0x292   : > { %v3185_v3 = vpop.f32.mrb[208].mxu0  ;;  %v3345_v61 = vadd.f32 %v3306_v42, %v3192_v63  ;;  %v5232_v26 = vpop.f32.mrb[209].mxu1 }
 0x293   : > { %v3200_v34 = vadd.f32 %v3185_v3, %v3082_v2  ;;  %v5226_v31 = vpop.f32.mrb[209].mxu0  ;;  %v3309_v6 = vpop.f32.mrb[210].mxu1 }
 0x294   : > { %v3188_v59 = vpop.f32.mrb[210].mxu0  ;;  %v3346_v13 = vadd.f32 %v3309_v6, %v3193_v28  ;;  %v5233_v37 = vpop.f32.mrb[211].mxu1 }
 0x295   : > { %v3201_v51 = vadd.f32 %v3188_v59, %v3083_v12  ;;  %v5227_v49 = vpop.f32.mrb[211].mxu0 }
 0x299   : > { %v3314_v48 = vpop.f32.mrb[212].mxu1 }
 0x29a   : > { %v3466_v38 = vpop.f32.mrb[212].mxu0  ;;  %v3347_v29 = vadd.f32 %v3314_v48, %v3194_v21  ;;  %v5236_v56 = vpop.f32.mrb[213].mxu1 }
 0x29b   : > { %v3505_v50 = vadd.f32 %v3466_v38, %v3345_v61  ;;  %v5254_v16 = vpop.f32.mrb[213].mxu0  ;;  %v3317_v5 = vpop.f32.mrb[214].mxu1 }
 0x29c   : > { %v3469_v0 = vpop.f32.mrb[214].mxu0  ;;  %v3348_v58 = vadd.f32 %v3317_v5, %v3195_v32  ;;  %v5237_v20 = vpop.f32.mrb[215].mxu1 }
 0x29d   : > { %v3506_v36 = vadd.f32 %v3469_v0, %v3346_v13  ;;  %v5255_v8 = vpop.f32.mrb[215].mxu0 }
 0x2a1   : > { %v3322_v27 = vpop.f32.mrb[216].mxu1 }
 0x2a2   : > { %v3474_v14 = vpop.f32.mrb[216].mxu0  ;;  %v3349_v35 = vadd.f32 %v3322_v27, %v3196_v44  ;;  %v5240_v28 = vpop.f32.mrb[217].mxu1 }
 0x2a3   : > { %v3507_v63 = vadd.f32 %v3474_v14, %v3347_v29  ;;  %v5258_v45 = vpop.f32.mrb[217].mxu0  ;;  %v3325_v24 = vpop.f32.mrb[218].mxu1 }
 0x2a4   : > { %v3477_v43 = vpop.f32.mrb[218].mxu0  ;;  %v3350_v52 = vadd.f32 %v3325_v24, %v3197_v15  ;;  %v5241_v4 = vpop.f32.mrb[219].mxu1 }
 0x2a5   : > { %v3508_v25 = vadd.f32 %v3477_v43, %v3348_v58  ;;  %v5259_v11 = vpop.f32.mrb[219].mxu0 }
 0x2a9   : > { %v3330_v55 = vpop.f32.mrb[220].mxu1 }
 0x2aa   : > { %v3482_v33 = vpop.f32.mrb[220].mxu0  ;;  %v3351_v10 = vadd.f32 %v3330_v55, %v3198_v53  ;;  %v5244_v32 = vpop.f32.mrb[221].mxu1 }
 0x2ab   : > { %v3509_v21 = vadd.f32 %v3482_v33, %v3349_v35  ;;  %v5262_v23 = vpop.f32.mrb[221].mxu0  ;;  %v3333_v30 = vpop.f32.mrb[222].mxu1 }
 0x2ac   : > { %v3485_v47 = vpop.f32.mrb[222].mxu0  ;;  %v3352_v19 = vadd.f32 %v3333_v30, %v3199_v41  ;;  %v5245_v40 = vpop.f32.mrb[223].mxu1 }
 0x2ad   : > { %v3510_v60 = vadd.f32 %v3485_v47, %v3350_v52  ;;  %v5263_v22 = vpop.f32.mrb[223].mxu0 }
 0x2b1   : > { %v3338_v46 = vpop.f32.mrb[224].mxu1 }
 0x2b2   : > { %v3490_v62 = vpop.f32.mrb[224].mxu0  ;;  %v3353_v57 = vadd.f32 %v3338_v46, %v3200_v34  ;;  %v5248_v15 = vpop.f32.mrb[225].mxu1 }
 0x2b3   : > { %v3511_v44 = vadd.f32 %v3490_v62, %v3351_v10  ;;  %v5266_v39 = vpop.f32.mrb[225].mxu0  ;;  %v3341_v54 = vpop.f32.mrb[226].mxu1 }
 0x2b4   : > { %v3493_v17 = vpop.f32.mrb[226].mxu0  ;;  %v3354_v18 = vadd.f32 %v3341_v54, %v3201_v51  ;;  %v5249_v9 = vpop.f32.mrb[227].mxu1 }
 0x2b5   : > { %v3512_v1 = vadd.f32 %v3493_v17, %v3352_v19  ;;  %v5267_v2 = vpop.f32.mrb[227].mxu0 }
 0x2b9   : > { %v3584_v3 = vpop.f32.mrb[228].mxu1 }
 0x2ba   : > { %v3498_v12 = vpop.f32.mrb[228].mxu0  ;;  %v3623_v42 = vadd.f32 %v3584_v3, %v3505_v50  ;;  %v5276_v41 = vpop.f32.mrb[229].mxu1 }
 0x2bb   : > { %v3513_v53 = vadd.f32 %v3498_v12, %v3353_v57  ;;  %v5270_v7 = vpop.f32.mrb[229].mxu0  ;;  %v3587_v26 = vpop.f32.mrb[230].mxu1 }
 0x2bc   : > { %v3501_v31 = vpop.f32.mrb[230].mxu0  ;;  %v3624_v49 = vadd.f32 %v3587_v26, %v3506_v36  ;;  %v5277_v6 = vpop.f32.mrb[231].mxu1  ;;  %v6862_v26 = vld [vmem:[%s6922_s2] ss:$0 sm:$0xff] }
 0x2bd   : > { %v3514_v59 = vadd.f32 %v3501_v31, %v3354_v18  ;;  %v5271_v61 = vpop.f32.mrb[231].mxu0 }
 0x2c1   : > { %v3592_v38 = vpop.f32.mrb[232].mxu1 }
 0x2c2   : > { %v3737_v13 = vpop.f32.mrb[232].mxu0  ;;  %v3625_v48 = vadd.f32 %v3592_v38, %v3507_v63  ;;  %v5280_v51 = vpop.f32.mrb[233].mxu1 }
 0x2c3   : > { %v3776_v34 = vadd.f32 %v3737_v13, %v3623_v42  ;;  %v5298_v37 = vpop.f32.mrb[233].mxu0  ;;  %v3595_v56 = vpop.f32.mrb[234].mxu1 }
 0x2c4   : > { %v3740_v16 = vpop.f32.mrb[234].mxu0  ;;  %v3626_v8 = vadd.f32 %v3595_v56, %v3508_v25  ;;  %v5281_v5 = vpop.f32.mrb[235].mxu1 }
 0x2c5   : > { %v3777_v0 = vadd.f32 %v3740_v16, %v3624_v49  ;;  %v5299_v29 = vpop.f32.mrb[235].mxu0 }
 0x2c9   : > { %v3600_v14 = vpop.f32.mrb[236].mxu1 }
 0x2ca   : > { %v3745_v58 = vpop.f32.mrb[236].mxu0  ;;  %v3627_v27 = vadd.f32 %v3600_v14, %v3509_v21  ;;  %v5284_v36 = vpop.f32.mrb[237].mxu1 }
 0x2cb   : > { %v3778_v50 = vadd.f32 %v3745_v58, %v3625_v48  ;;  %v5302_v20 = vpop.f32.mrb[237].mxu0  ;;  %v3603_v28 = vpop.f32.mrb[238].mxu1 }
 0x2cc   : > { %v3748_v45 = vpop.f32.mrb[238].mxu0  ;;  %v3628_v11 = vadd.f32 %v3603_v28, %v3510_v60  ;;  %v5285_v24 = vpop.f32.mrb[239].mxu1 }
 0x2cd   : > { %v3779_v43 = vadd.f32 %v3748_v45, %v3626_v8  ;;  %v5303_v35 = vpop.f32.mrb[239].mxu0 }
 0x2d1   : > { %v3608_v33 = vpop.f32.mrb[240].mxu1 }
 0x2d2   : > { %v3753_v52 = vpop.f32.mrb[240].mxu0  ;;  %v3629_v25 = vadd.f32 %v3608_v33, %v3511_v44  ;;  %v5288_v55 = vpop.f32.mrb[241].mxu1 }
 0x2d3   : > { %v6844_v63 = vadd.f32 %v3753_v52, %v3627_v27  ;;  %v5306_v4 = vpop.f32.mrb[241].mxu0  ;;  %v3611_v32 = vpop.f32.mrb[242].mxu1 }
 0x2d4   : > { %v3756_v23 = vpop.f32.mrb[242].mxu0  ;;  %v3630_v21 = vadd.f32 %v3611_v32, %v3512_v1  ;;  %v5289_v22 = vpop.f32.mrb[243].mxu1 }
 0x2d5   : > { %v6846_v47 = vadd.f32 %v3756_v23, %v3628_v11  ;;  %v5307_v10 = vpop.f32.mrb[243].mxu0 }
 0x2d9   : > { %v3616_v40 = vpop.f32.mrb[244].mxu1 }
 0x2da   : > { %v3761_v30 = vpop.f32.mrb[244].mxu0  ;;  %v3631_v39 = vadd.f32 %v3616_v40, %v3513_v53  ;;  %v5292_v46 = vpop.f32.mrb[245].mxu1 }
 0x2db   : > { %v6848_v19 = vadd.f32 %v3761_v30, %v3629_v25  ;;  %v5310_v60 = vpop.f32.mrb[245].mxu0  ;;  %v3619_v57 = vpop.f32.mrb[246].mxu1 }
 0x2dc   : > { %v3764_v62 = vpop.f32.mrb[246].mxu0  ;;  %v3632_v15 = vadd.f32 %v3619_v57, %v3514_v59  ;;  %v5293_v2 = vpop.f32.mrb[247].mxu1 }
 0x2dd   : > { %v6850_v17 = vadd.f32 %v3764_v62, %v3630_v21  ;;  %v5311_v44 = vpop.f32.mrb[247].mxu0 }
 0x2e1   : > { %v3897_v9 = vpop.f32.mrb[248].mxu1 }
 0x2e2   : > { %v3769_v54 = vpop.f32.mrb[248].mxu0  ;;  %v3936_v7 = vadd.f32 %v3897_v9, %v3776_v34  ;;  %v5320_v3 = vpop.f32.mrb[249].mxu1 }
 0x2e3   : > { %v6854_v1 = vadd.f32 %v3769_v54, %v3631_v39  ;;  %v5314_v18 = vpop.f32.mrb[249].mxu0  ;;  %v3900_v42 = vpop.f32.mrb[250].mxu1 }
 0x2e4   : > { %v3772_v12 = vpop.f32.mrb[250].mxu0  ;;  %v3937_v41 = vadd.f32 %v3900_v42, %v3777_v0  ;;  %v5321_v61 = vpop.f32.mrb[251].mxu1 }
 0x2e5   : > { %v6856_v31 = vadd.f32 %v3772_v12, %v3632_v15  ;;  %v5315_v53 = vpop.f32.mrb[251].mxu0 }
 0x2e9   : > { %v3905_v13 = vpop.f32.mrb[252].mxu1 }
 0x2ea   : > { %v4015_v59 = vpop.f32.mrb[252].mxu0  ;;  %v3938_v37 = vadd.f32 %v3905_v13, %v3778_v50  ;;  %v5324_v16 = vpop.f32.mrb[253].mxu1 }
 0x2eb   : > { %v4054_v49 = vadd.f32 %v4015_v59, %v3936_v7  ;;  %v5342_v6 = vpop.f32.mrb[253].mxu0  ;;  %v3908_v0 = vpop.f32.mrb[254].mxu1 }
 0x2ec   : > { %v4018_v34 = vpop.f32.mrb[254].mxu0  ;;  %v3939_v56 = vadd.f32 %v3908_v0, %v3779_v43  ;;  %v5325_v5 = vpop.f32.mrb[255].mxu1 }
 0x2ed   : > { %v4071_v38 = vadd.f32 %v6862_v26, %v4054_v49  ;;  %v4055_v48 = vadd.f32 %v4018_v34, %v3937_v41  ;;  %v5343_v51 = vpop.f32.mrb[255].mxu0 }
 0x2ef   : > { %v4081_v29 = vmax.f32 %v4071_v38, 0.0  ;;  %v4072_v8 = vadd.f32 %v6862_v26, %v4055_v48 }
 0x2f1   : > { %v4594_v58 = vpack.c.bf16 %v4081_v29, %v4081_v29  ;;  %v4082_v50 = vmax.f32 %v4072_v8, 0.0  ;;  %v3913_v36 = vpop.f32.mrb[0].mxu1 }
 0x2f2   : > { %v4023_v20 = vpop.f32.mrb[0].mxu0  ;;  %v3940_v35 = vadd.f32 %v3913_v36, %v6844_v63  ;;  %v5328_v11 = vpop.f32.mrb[1].mxu1 }
 0x2f3   : > { %4132 = vst.msk [vmem:[%s6869_s27] sm:$0xf] %vm4131_vm9, %v4594_v58  ;;  %v4595_v14 = vpack.c.bf16 %v4082_v50, %v4082_v50  ;;  %v4056_v45 = vadd.f32 %v4023_v20, %v3938_v37  ;;  %v5346_v27 = vpop.f32.mrb[1].mxu0  ;;  %v3916_v4 = vpop.f32.mrb[2].mxu1 }
 0x2f4   : > { %v4026_v43 = vpop.f32.mrb[2].mxu0  ;;  %v3941_v23 = vadd.f32 %v3916_v4, %v6846_v47  ;;  %v5329_v55 = vpop.f32.mrb[3].mxu1 }
 0x2f5   : > { %4133 = vst.msk [vmem:[%s6869_s27 + $0x4] sm:$0xf] %vm4131_vm9, %v4595_v14  ;;  %v4073_v28 = vadd.f32 %v6862_v26, %v4056_v45  ;;  %v4057_v24 = vadd.f32 %v4026_v43, %v3939_v56  ;;  %v5347_v52 = vpop.f32.mrb[3].mxu0 }
 0x2f7   : > { %v4083_v33 = vmax.f32 %v4073_v28, 0.0  ;;  %v4074_v25 = vadd.f32 %v6862_v26, %v4057_v24 }
 0x2f9   : > { %v4596_v10 = vpack.c.bf16 %v4083_v33, %v4083_v33  ;;  %v4084_v32 = vmax.f32 %v4074_v25, 0.0  ;;  %v3921_v60 = vpop.f32.mrb[4].mxu1 }
 0x2fa   : > { %v4031_v21 = vpop.f32.mrb[4].mxu0  ;;  %v3942_v62 = vadd.f32 %v3921_v60, %v6848_v19  ;;  %v5332_v39 = vpop.f32.mrb[5].mxu1 }
 0x2fb   : > { %4134 = vst.msk [vmem:[%s6869_s27 + $0x8] sm:$0xf] %vm4131_vm9, %v4596_v10  ;;  %v4597_v22 = vpack.c.bf16 %v4084_v32, %v4084_v32  ;;  %v4058_v63 = vadd.f32 %v4031_v21, %v3940_v35  ;;  %v5350_v30 = vpop.f32.mrb[5].mxu0  ;;  %v3924_v57 = vpop.f32.mrb[6].mxu1 }
 0x2fc   : > { %v4034_v40 = vpop.f32.mrb[6].mxu0  ;;  %v3943_v2 = vadd.f32 %v3924_v57, %v6850_v17  ;;  %v5333_v18 = vpop.f32.mrb[7].mxu1 }
 0x2fd   : > { %4135 = vst.msk [vmem:[%s6869_s27 + $0xc] sm:$0xf] %vm4131_vm9, %v4597_v22  ;;  %v4075_v47 = vadd.f32 %v6862_v26, %v4058_v63  ;;  %v4059_v46 = vadd.f32 %v4034_v40, %v3941_v23  ;;  %v5351_v44 = vpop.f32.mrb[7].mxu0 }
 0x2ff   : > { %v4085_v15 = vmax.f32 %v4075_v47, 0.0  ;;  %v4076_v54 = vadd.f32 %v6862_v26, %v4059_v46 }
 0x301   : > { %v4598_v9 = vpack.c.bf16 %v4085_v15, %v4085_v15  ;;  %v4086_v12 = vmax.f32 %v4076_v54, 0.0  ;;  %v3929_v42 = vpop.f32.mrb[8].mxu1 }
 0x302   : > { %v4039_v7 = vpop.f32.mrb[8].mxu0  ;;  %v3944_v61 = vadd.f32 %v3929_v42, %v6854_v1  ;;  %v5336_v59 = vpop.f32.mrb[9].mxu1 }
 0x303   : > { %4136 = vst.msk [vmem:[%s6869_s27 + $0x10] sm:$0xf] %vm4131_vm9, %v4598_v9  ;;  %v4599_v3 = vpack.c.bf16 %v4086_v12, %v4086_v12  ;;  %v4060_v19 = vadd.f32 %v4039_v7, %v3942_v62  ;;  %v5354_v53 = vpop.f32.mrb[9].mxu0  ;;  %v3932_v13 = vpop.f32.mrb[10].mxu1 }
 0x304   : > { %v4042_v41 = vpop.f32.mrb[10].mxu0  ;;  %v3945_v37 = vadd.f32 %v3932_v13, %v6856_v31  ;;  %v5337_v16 = vpop.f32.mrb[11].mxu1 }
 0x305   : > { %4137 = vst.msk [vmem:[%s6869_s27 + $0x14] sm:$0xf] %vm4131_vm9, %v4599_v3  ;;  %v4077_v17 = vadd.f32 %v6862_v26, %v4060_v19  ;;  %v4061_v49 = vadd.f32 %v4042_v41, %v3943_v2  ;;  %v5355_v6 = vpop.f32.mrb[11].mxu0 }
 0x307   : > { %v4087_v34 = vmax.f32 %v4077_v17, 0.0  ;;  %v4078_v38 = vadd.f32 %v6862_v26, %v4061_v49 }
 0x309   : > { %v4600_v48 = vpack.c.bf16 %v4087_v34, %v4087_v34  ;;  %v4088_v51 = vmax.f32 %v4078_v38, 0.0 }
 0x30a   : > { %v4047_v0 = vpop.f32.mrb[12].mxu0 }
 0x30b   : > { %4138 = vst.msk [vmem:[%s6869_s27 + $0x18] sm:$0xf] %vm4131_vm9, %v4600_v48  ;;  %v4601_v1 = vpack.c.bf16 %v4088_v51, %v4088_v51  ;;  %v4062_v29 = vadd.f32 %v4047_v0, %v3944_v61  ;;  %v5358_v56 = vpop.f32.mrb[13].mxu0 }
 0x30c   : > { %v4050_v8 = vpop.f32.mrb[14].mxu0 }
 0x30d   : > { %4139 = vst.msk [vmem:[%s6869_s27 + $0x1c] sm:$0xf] %vm4131_vm9, %v4601_v1  ;;  %v4079_v5 = vadd.f32 %v6862_v26, %v4062_v29  ;;  %v4063_v58 = vadd.f32 %v4050_v8, %v3945_v37  ;;  %v5359_v31 = vpop.f32.mrb[15].mxu0 }
 0x30f   : > { %v4089_v50 = vmax.f32 %v4079_v5, 0.0  ;;  %v4080_v20 = vadd.f32 %v6862_v26, %v4063_v58 }
 0x311   : > { %v4602_v14 = vpack.c.bf16 %v4089_v50, %v4089_v50  ;;  %v4090_v45 = vmax.f32 %v4080_v20, 0.0 }
 0x313   : > { %4140 = vst.msk [vmem:[%s6869_s27 + $0x20] sm:$0xf] %vm4131_vm9, %v4602_v14  ;;  %v4603_v27 = vpack.c.bf16 %v4090_v45, %v4090_v45 }
 0x315   : > { %4141 = vst.msk [vmem:[%s6869_s27 + $0x24] sm:$0xf] %vm4131_vm9, %v4603_v27 }
 0x316 PF: > { %s13_s16 = sadd.s32 1, %s5524_s16   ;;  %s6924_s12 = smov %s5516_s14 }
 0x317   : > { %p10_p7 = scmp.ge.s32.totalorder %s13_s16, 18   ;;  %s6925_s13 = smov %s5520_s15 }
 0x318   : > { %s6926_s14 = smov %s6929_s17  ;;  %s6927_s15 = smov %s6933_s18 }
 0x319   :  { %12 = sbr.rel (!%p10_p7) target bundleno = 3 (0x3), region = 91 }

</bundles_post_ra>
